<compile_context>
chip_gen: v7x
topology: tpu7x:2x2x1
jax: 0.10.0
libtpu: 0.0.40
codegen_flags: <defaults>
</compile_context>

<pallas_src>
import jax
import jax.numpy as jnp
from jax.experimental import pallas as pl
from jax.experimental.pallas import tpu as pltpu

_OUT_ROWS = 8       # packed output rows (sublane-aligned): row0=pi, row1=logp(a), row2=logp_pi
_MAX_TILE_B = 4096  # large tiles amortize per-step overhead; still only a few MiB of VMEM


def _round_up(n, m):
    return ((n + m - 1) // m) * m


def _choose_tile_b(B):
    """Pick the batch tile: as large as possible, but >=2 grid steps when batch allows (v7x TCs)."""
    tile = min(_MAX_TILE_B, _round_up(B, 128))
    if 256 <= B <= _MAX_TILE_B:
        tile = _round_up(pl.cdiv(B, 2), 128)
    return tile


def _policy_kernel(x_ref, w1_ref, b1_ref, w2_ref, b2_ref, w3_ref, b3_ref,
                   a_ref, g_ref, out_ref):
    # --- MLP: tanh hidden layers (bf16 MXU matmuls, f32 accumulate), f32 output layer ---
    h1 = jnp.tanh(jnp.dot(x_ref[...], w1_ref[...],
                          preferred_element_type=jnp.float32) + b1_ref[...])
    h2 = jnp.tanh(jnp.dot(h1.astype(jnp.bfloat16), w2_ref[...],
                          preferred_element_type=jnp.float32) + b2_ref[...])
    logits = (jnp.dot(h2, w3_ref[...],
                      preferred_element_type=jnp.float32) + b3_ref[...])   # (TB, A) f32

    TB, A = logits.shape
    lane = jax.lax.broadcasted_iota(jnp.int32, (TB, A), 1)

    # --- log_softmax (Categorical log_prob table), max-stabilized, f32 ---
    m = jnp.max(logits, axis=-1, keepdims=True)
    z = logits - m
    lse = jnp.log(jnp.sum(jnp.exp(z), axis=-1, keepdims=True))
    logp_all = z - lse                                                      # (TB, A)

    # --- sample via Gumbel-max: pi = argmax(logits + gumbel), lowest-index tie-break ---
    perturbed = logits + g_ref[...]
    pmax = jnp.max(perturbed, axis=-1, keepdims=True)
    pi = jnp.min(jnp.where(perturbed == pmax, lane, A), axis=-1, keepdims=True)  # (TB,1) int32

    # --- logp_pi = log_prob(pi), logp = log_prob(a) ---
    onehot_pi = (lane == pi).astype(jnp.float32)
    logp_pi = jnp.sum(logp_all * onehot_pi, axis=-1, keepdims=True)          # (TB,1)
    onehot_a = (lane == a_ref[...]).astype(jnp.float32)
    logp_a = jnp.sum(logp_all * onehot_a, axis=-1, keepdims=True)            # (TB,1)

    # --- pack batch-on-lanes: (8, TB) slab, row0=pi, row1=logp(a), row2=logp_pi ---
    lane8 = jax.lax.broadcasted_iota(jnp.int32, (TB, _OUT_ROWS), 1)
    slab = jnp.where(lane8 == 0, pi.astype(jnp.float32),
                     jnp.where(lane8 == 1, logp_a,
                               jnp.where(lane8 == 2, logp_pi, 0.0)))         # (TB, 8)
    out_ref[...] = slab.T                                                    # (8, TB)


def categorical_policy_forward(x, params, a=None, rng=None):
    """Fused MLP + Categorical forward.

    x:      (B, in_features) float32
    params: dict with w1 (F,H1), b1 (1,H1), w2 (H1,H2), b2 (1,H2), w3 (H2,A), b3 (1,A)  (f32)
    a:      (B,) int actions or None
    rng:    jax PRNG key for the Gumbel-max sampling noise
    Returns (pi, logp, logp_pi); logp is None when a is None (mirrors the torch module).
    """
    B, F = x.shape
    H1 = params["w1"].shape[1]
    H2 = params["w2"].shape[1]
    A = params["w3"].shape[1]

    have_a = a is not None
    if a is None:
        a = jnp.zeros((B,), jnp.int32)
    if rng is None:
        rng = jax.random.PRNGKey(0)

    TILE_B = _choose_tile_b(B)
    grid = (pl.cdiv(B, TILE_B),)

    # bf16 streams for the MXU-fed operands; final layer + biases stay f32.
    x_bf16 = x.astype(jnp.bfloat16)
    w1 = params["w1"].astype(jnp.bfloat16)
    w2 = params["w2"].astype(jnp.bfloat16)
    w3 = params["w3"]
    b1, b2, b3 = params["b1"], params["b2"], params["b3"]

    a2d = a.astype(jnp.int32).reshape(B, 1)
    gumbel = jax.random.gumbel(rng, (B, A), jnp.float32)

    def tiled(i):       # batch-streamed operands (batch on sublanes)
        return (i, 0)

    def resident(i):    # weights / biases stay VMEM-resident across the grid
        return (0, 0)

    def out_map(i):     # packed output: batch on lanes
        return (0, i)

    packed = pl.pallas_call(
        _policy_kernel,
        out_shape=jax.ShapeDtypeStruct((_OUT_ROWS, B), jnp.float32),
        grid=grid,
        in_specs=[
            pl.BlockSpec((TILE_B, F), tiled),      # x (bf16)
            pl.BlockSpec((F, H1), resident),       # w1
            pl.BlockSpec((1, H1), resident),       # b1
            pl.BlockSpec((H1, H2), resident),      # w2
            pl.BlockSpec((1, H2), resident),       # b2
            pl.BlockSpec((H2, A), resident),       # w3 (f32)
            pl.BlockSpec((1, A), resident),        # b3
            pl.BlockSpec((TILE_B, 1), tiled),      # actions
            pl.BlockSpec((TILE_B, A), tiled),      # gumbel noise
        ],
        out_specs=pl.BlockSpec((_OUT_ROWS, TILE_B), out_map),
        compiler_params=pltpu.CompilerParams(
            dimension_semantics=("parallel",)),
        cost_estimate=pl.CostEstimate(
            flops=2 * B * (F * H1 + H1 * H2 + H2 * A),
            transcendentals=B * (H1 + H2 + 2 * A + 2),
            bytes_accessed=(x_bf16.size * 2 + a2d.size * 4 + gumbel.size * 4
                            + _OUT_ROWS * B * 4
                            + (w1.size + w2.size) * 2 + w3.size * 4
                            + (b1.size + b2.size + b3.size) * 4),
        ),
    )(x_bf16, w1, b1, w2, b2, w3, b3, a2d, gumbel)

    pi = packed[0, :].astype(jnp.int32)
    logp = packed[1, :]
    logp_pi = packed[2, :]
    return pi, (logp if have_a else None), logp_pi


def init_params(key, in_features, hidden_sizes, action_dim):
    """Deterministic init mirroring nn.Linear default weight init + zero biases."""
    sizes = [in_features] + list(hidden_sizes) + [action_dim]
    params = {}
    for i in range(len(sizes) - 1):
        key, sub = jax.random.split(key)
        fan_in, fan_out = sizes[i], sizes[i + 1]
        bound = 1.0 / jnp.sqrt(jnp.float32(fan_in))
        w = jax.random.uniform(sub, (fan_in, fan_out), jnp.float32, -bound, bound)
        params[f"w{i + 1}"] = w
        params[f"b{i + 1}"] = jnp.zeros((1, fan_out), jnp.float32)
    return params


if __name__ == "__main__":
    in_features = 16
    hidden_sizes = (32, 32)
    action_dim = 8
    batch = 384   # -> TILE_B=256, grid=(2,): exercises multi-tile + ragged last block

    key = jax.random.PRNGKey(0)
    k_x, k_a, k_p, k_g = jax.random.split(key, 4)

    x = jax.random.normal(k_x, (batch, in_features), jnp.float32)
    a = jax.random.randint(k_a, (batch,), 0, action_dim, jnp.int32)
    params = init_params(k_p, in_features, hidden_sizes, action_dim)

    pi, logp, logp_pi = categorical_policy_forward(x, params, a, rng=k_g)
    jax.block_until_ready((pi, logp, logp_pi))

    # Shape / range sanity (mirrors torch .squeeze() outputs).
    assert pi.shape == (batch,) and logp.shape == (batch,) and logp_pi.shape == (batch,)
    assert bool(jnp.all((pi >= 0) & (pi < action_dim)))
    assert bool(jnp.all(logp <= 0.0)) and bool(jnp.all(logp_pi <= 0.0))

    # Numerical check against a pure-JAX f32 reference (bf16-matmul tolerance).
    h1 = jnp.tanh(x @ params["w1"] + params["b1"])
    h2 = jnp.tanh(h1 @ params["w2"] + params["b2"])
    logits_ref = h2 @ params["w3"] + params["b3"]
    logp_all_ref = jax.nn.log_softmax(logits_ref, axis=-1)
    logp_ref = jnp.take_along_axis(logp_all_ref, a[:, None], axis=-1)[:, 0]
    assert bool(jnp.allclose(logp, logp_ref, atol=0.1, rtol=0.05)), \
        float(jnp.max(jnp.abs(logp - logp_ref)))
    logp_pi_ref = jnp.take_along_axis(logp_all_ref, pi[:, None], axis=-1)[:, 0]
    assert bool(jnp.allclose(logp_pi, logp_pi_ref, atol=0.1, rtol=0.05)), \
        float(jnp.max(jnp.abs(logp_pi - logp_pi_ref)))

    print("KERNEL_OK")
</pallas_src>

<mosaic_0001>
module attributes {stable_mosaic.version = 11 : i64} {
  func.func @_policy_kernel(%arg0: i32, %arg1: memref<256x16xbf16, #tpu.memory_space<vmem>>, %arg2: memref<16x32xbf16, #tpu.memory_space<vmem>>, %arg3: memref<1x32xf32, #tpu.memory_space<vmem>>, %arg4: memref<32x32xbf16, #tpu.memory_space<vmem>>, %arg5: memref<1x32xf32, #tpu.memory_space<vmem>>, %arg6: memref<32x8xf32, #tpu.memory_space<vmem>>, %arg7: memref<1x8xf32, #tpu.memory_space<vmem>>, %arg8: memref<256x1xi32, #tpu.memory_space<vmem>>, %arg9: memref<256x8xf32, #tpu.memory_space<vmem>>, %arg10: memref<8x256xf32, #tpu.memory_space<vmem>>) attributes {dimension_semantics = [#tpu.dimension_semantics<parallel>], iteration_bounds = array<i64: 2>, scalar_prefetch = 0 : i64, scratch_operands = 0 : i64, tpu.core_type = #tpu.core_type<tc>, window_params = [{transform_indices = @transform_0, window_bounds = array<i64: 256, 16>}, {pipeline_mode = #tpu.pipeline_mode<synchronous>, transform_indices = @transform_1, window_bounds = array<i64: 16, 32>}, {pipeline_mode = #tpu.pipeline_mode<synchronous>, transform_indices = @transform_2, window_bounds = array<i64: 1, 32>}, {pipeline_mode = #tpu.pipeline_mode<synchronous>, transform_indices = @transform_3, window_bounds = array<i64: 32, 32>}, {pipeline_mode = #tpu.pipeline_mode<synchronous>, transform_indices = @transform_4, window_bounds = array<i64: 1, 32>}, {pipeline_mode = #tpu.pipeline_mode<synchronous>, transform_indices = @transform_5, window_bounds = array<i64: 32, 8>}, {pipeline_mode = #tpu.pipeline_mode<synchronous>, transform_indices = @transform_6, window_bounds = array<i64: 1, 8>}, {transform_indices = @transform_7, window_bounds = array<i64: 256, 1>}, {transform_indices = @transform_8, window_bounds = array<i64: 256, 8>}, {transform_indices = @transform_9, window_bounds = array<i64: 8, 256>}]} {
    %c0 = arith.constant 0 : index
    %c0_0 = arith.constant 0 : index
    %0 = vector.load %arg1[%c0, %c0_0] : memref<256x16xbf16, #tpu.memory_space<vmem>>, vector<256x16xbf16>
    %c0_1 = arith.constant 0 : index
    %c0_2 = arith.constant 0 : index
    %1 = vector.load %arg2[%c0_1, %c0_2] : memref<16x32xbf16, #tpu.memory_space<vmem>>, vector<16x32xbf16>
    %cst = arith.constant dense<0.000000e+00> : vector<256x32xf32>
    %2 = tpu.matmul %0, %1, %cst {dimension_numbers = #tpu.dot_dimension_numbers<[1], [0], [0], [1], [0, 0, 1, 1], [], []>} : vector<256x16xbf16>, vector<16x32xbf16>, vector<256x32xf32> -> vector<256x32xf32>
    %c0_3 = arith.constant 0 : index
    %c0_4 = arith.constant 0 : index
    %3 = vector.load %arg3[%c0_3, %c0_4] : memref<1x32xf32, #tpu.memory_space<vmem>>, vector<1x32xf32>
    %4 = vector.broadcast %3 : vector<1x32xf32> to vector<256x32xf32>
    %5 = arith.addf %2, %4 : vector<256x32xf32>
    %6 = math.tanh %5 : vector<256x32xf32>
    %7 = arith.truncf %6 : vector<256x32xf32> to vector<256x32xbf16>
    %c0_5 = arith.constant 0 : index
    %c0_6 = arith.constant 0 : index
    %8 = vector.load %arg4[%c0_5, %c0_6] : memref<32x32xbf16, #tpu.memory_space<vmem>>, vector<32x32xbf16>
    %cst_7 = arith.constant dense<0.000000e+00> : vector<256x32xf32>
    %9 = tpu.matmul %7, %8, %cst_7 {dimension_numbers = #tpu.dot_dimension_numbers<[1], [0], [0], [1], [0, 0, 1, 1], [], []>} : vector<256x32xbf16>, vector<32x32xbf16>, vector<256x32xf32> -> vector<256x32xf32>
    %c0_8 = arith.constant 0 : index
    %c0_9 = arith.constant 0 : index
    %10 = vector.load %arg5[%c0_8, %c0_9] : memref<1x32xf32, #tpu.memory_space<vmem>>, vector<1x32xf32>
    %11 = vector.broadcast %10 : vector<1x32xf32> to vector<256x32xf32>
    %12 = arith.addf %9, %11 : vector<256x32xf32>
    %13 = math.tanh %12 : vector<256x32xf32>
    %c0_10 = arith.constant 0 : index
    %c0_11 = arith.constant 0 : index
    %14 = vector.load %arg6[%c0_10, %c0_11] : memref<32x8xf32, #tpu.memory_space<vmem>>, vector<32x8xf32>
    %cst_12 = arith.constant dense<0.000000e+00> : vector<256x8xf32>
    %15 = tpu.matmul %13, %14, %cst_12 {dimension_numbers = #tpu.dot_dimension_numbers<[1], [0], [0], [1], [0, 0, 1, 1], [], []>} : vector<256x32xf32>, vector<32x8xf32>, vector<256x8xf32> -> vector<256x8xf32>
    %c0_13 = arith.constant 0 : index
    %c0_14 = arith.constant 0 : index
    %16 = vector.load %arg7[%c0_13, %c0_14] : memref<1x8xf32, #tpu.memory_space<vmem>>, vector<1x8xf32>
    %17 = vector.broadcast %16 : vector<1x8xf32> to vector<256x8xf32>
    %18 = arith.addf %15, %17 : vector<256x8xf32>
    %19 = tpu.iota {dimensions = array<i32: 1>} : vector<256x8xi32>
    %cst_15 = arith.constant dense<0xFF800000> : vector<256xf32>
    %20 = vector.multi_reduction <maximumf>, %18, %cst_15 [1] : vector<256x8xf32> to vector<256xf32>
    %21 = vector.shape_cast %20 : vector<256xf32> to vector<256x1xf32>
    %22 = vector.broadcast %21 : vector<256x1xf32> to vector<256x8xf32>
    %23 = arith.subf %18, %22 : vector<256x8xf32>
    %24 = math.exp %23 : vector<256x8xf32>
    %cst_16 = arith.constant dense<0.000000e+00> : vector<256xf32>
    %25 = vector.multi_reduction <add>, %24, %cst_16 [1] : vector<256x8xf32> to vector<256xf32>
    %26 = vector.shape_cast %25 : vector<256xf32> to vector<256x1xf32>
    %27 = math.log %26 : vector<256x1xf32>
    %28 = vector.broadcast %27 : vector<256x1xf32> to vector<256x8xf32>
    %29 = arith.subf %23, %28 : vector<256x8xf32>
    %c0_17 = arith.constant 0 : index
    %c0_18 = arith.constant 0 : index
    %30 = vector.load %arg9[%c0_17, %c0_18] : memref<256x8xf32, #tpu.memory_space<vmem>>, vector<256x8xf32>
    %31 = arith.addf %18, %30 : vector<256x8xf32>
    %cst_19 = arith.constant dense<0xFF800000> : vector<256xf32>
    %32 = vector.multi_reduction <maximumf>, %31, %cst_19 [1] : vector<256x8xf32> to vector<256xf32>
    %33 = vector.shape_cast %32 : vector<256xf32> to vector<256x1xf32>
    %34 = vector.broadcast %33 : vector<256x1xf32> to vector<256x8xf32>
    %35 = arith.cmpf oeq, %31, %34 : vector<256x8xf32>
    %c8_i32 = arith.constant 8 : i32
    %36 = vector.broadcast %c8_i32 : i32 to vector<256x8xi32>
    %37 = arith.select %35, %19, %36 : vector<256x8xi1>, vector<256x8xi32>
    %cst_20 = arith.constant dense<2147483647> : vector<256xi32>
    %38 = vector.multi_reduction <minsi>, %37, %cst_20 [1] : vector<256x8xi32> to vector<256xi32>
    %39 = vector.shape_cast %38 : vector<256xi32> to vector<256x1xi32>
    %40 = vector.broadcast %39 : vector<256x1xi32> to vector<256x8xi32>
    %41 = arith.cmpi eq, %19, %40 : vector<256x8xi32>
    %42 = arith.extui %41 : vector<256x8xi1> to vector<256x8xi32>
    %43 = arith.sitofp %42 : vector<256x8xi32> to vector<256x8xf32>
    %44 = arith.mulf %29, %43 : vector<256x8xf32>
    %cst_21 = arith.constant dense<0.000000e+00> : vector<256xf32>
    %45 = vector.multi_reduction <add>, %44, %cst_21 [1] : vector<256x8xf32> to vector<256xf32>
    %46 = vector.shape_cast %45 : vector<256xf32> to vector<256x1xf32>
    %c0_22 = arith.constant 0 : index
    %c0_23 = arith.constant 0 : index
    %47 = vector.load %arg8[%c0_22, %c0_23] : memref<256x1xi32, #tpu.memory_space<vmem>>, vector<256x1xi32>
    %48 = vector.broadcast %47 : vector<256x1xi32> to vector<256x8xi32>
    %49 = arith.cmpi eq, %19, %48 : vector<256x8xi32>
    %50 = arith.extui %49 : vector<256x8xi1> to vector<256x8xi32>
    %51 = arith.sitofp %50 : vector<256x8xi32> to vector<256x8xf32>
    %52 = arith.mulf %29, %51 : vector<256x8xf32>
    %cst_24 = arith.constant dense<0.000000e+00> : vector<256xf32>
    %53 = vector.multi_reduction <add>, %52, %cst_24 [1] : vector<256x8xf32> to vector<256xf32>
    %54 = vector.shape_cast %53 : vector<256xf32> to vector<256x1xf32>
    %55 = tpu.iota {dimensions = array<i32: 1>} : vector<256x8xi32>
    %c0_i32 = arith.constant 0 : i32
    %56 = vector.broadcast %c0_i32 : i32 to vector<256x8xi32>
    %57 = arith.cmpi eq, %55, %56 : vector<256x8xi32>
    %58 = arith.sitofp %39 : vector<256x1xi32> to vector<256x1xf32>
    %c1_i32 = arith.constant 1 : i32
    %59 = vector.broadcast %c1_i32 : i32 to vector<256x8xi32>
    %60 = arith.cmpi eq, %55, %59 : vector<256x8xi32>
    %c2_i32 = arith.constant 2 : i32
    %61 = vector.broadcast %c2_i32 : i32 to vector<256x8xi32>
    %62 = arith.cmpi eq, %55, %61 : vector<256x8xi32>
    %cst_25 = arith.constant 0.000000e+00 : f32
    %63 = vector.shape_cast %46 : vector<256x1xf32> to vector<256x1xf32>
    %64 = vector.broadcast %63 : vector<256x1xf32> to vector<256x8xf32>
    %65 = vector.broadcast %cst_25 : f32 to vector<256x8xf32>
    %66 = arith.select %62, %64, %65 : vector<256x8xi1>, vector<256x8xf32>
    %67 = vector.shape_cast %54 : vector<256x1xf32> to vector<256x1xf32>
    %68 = vector.broadcast %67 : vector<256x1xf32> to vector<256x8xf32>
    %69 = arith.select %60, %68, %66 : vector<256x8xi1>, vector<256x8xf32>
    %70 = vector.shape_cast %58 : vector<256x1xf32> to vector<256x1xf32>
    %71 = vector.broadcast %70 : vector<256x1xf32> to vector<256x8xf32>
    %72 = arith.select %57, %71, %69 : vector<256x8xi1>, vector<256x8xf32>
    %73 = tpu.transpose %72, [1, 0] : vector<256x8xf32> -> vector<8x256xf32>
    %c0_26 = arith.constant 0 : index
    %c0_27 = arith.constant 0 : index
    %74 = vector.load %arg10[%c0_26, %c0_27] : memref<8x256xf32, #tpu.memory_space<vmem>>, vector<8x256xf32>
    tpu.vector_store %arg10[%c0_26, %c0_27], %73 {strides = array<i32>} : memref<8x256xf32, #tpu.memory_space<vmem>>, vector<8x256xf32>,
    return
  }
  func.func @transform_0(%arg0: i32) -> (i32, i32) {
    %c0_i32 = arith.constant 0 : i32
    %c0_i32_0 = arith.constant 0 : i32
    return %arg0, %c0_i32 : i32, i32
  }
  func.func @transform_1(%arg0: i32) -> (i32, i32) {
    %c0_i32 = arith.constant 0 : i32
    %c0_i32_0 = arith.constant 0 : i32
    %c0_i32_1 = arith.constant 0 : i32
    return %c0_i32, %c0_i32_0 : i32, i32
  }
  func.func @transform_2(%arg0: i32) -> (i32, i32) {
    %c0_i32 = arith.constant 0 : i32
    %c0_i32_0 = arith.constant 0 : i32
    %c0_i32_1 = arith.constant 0 : i32
    return %c0_i32, %c0_i32_0 : i32, i32
  }
  func.func @transform_3(%arg0: i32) -> (i32, i32) {
    %c0_i32 = arith.constant 0 : i32
    %c0_i32_0 = arith.constant 0 : i32
    %c0_i32_1 = arith.constant 0 : i32
    return %c0_i32, %c0_i32_0 : i32, i32
  }
  func.func @transform_4(%arg0: i32) -> (i32, i32) {
    %c0_i32 = arith.constant 0 : i32
    %c0_i32_0 = arith.constant 0 : i32
    %c0_i32_1 = arith.constant 0 : i32
    return %c0_i32, %c0_i32_0 : i32, i32
  }
  func.func @transform_5(%arg0: i32) -> (i32, i32) {
    %c0_i32 = arith.constant 0 : i32
    %c0_i32_0 = arith.constant 0 : i32
    %c0_i32_1 = arith.constant 0 : i32
    return %c0_i32, %c0_i32_0 : i32, i32
  }
  func.func @transform_6(%arg0: i32) -> (i32, i32) {
    %c0_i32 = arith.constant 0 : i32
    %c0_i32_0 = arith.constant 0 : i32
    %c0_i32_1 = arith.constant 0 : i32
    return %c0_i32, %c0_i32_0 : i32, i32
  }
  func.func @transform_7(%arg0: i32) -> (i32, i32) {
    %c0_i32 = arith.constant 0 : i32
    %c0_i32_0 = arith.constant 0 : i32
    return %arg0, %c0_i32 : i32, i32
  }
  func.func @transform_8(%arg0: i32) -> (i32, i32) {
    %c0_i32 = arith.constant 0 : i32
    %c0_i32_0 = arith.constant 0 : i32
    return %arg0, %c0_i32 : i32, i32
  }
  func.func @transform_9(%arg0: i32) -> (i32, i32) {
    %c0_i32 = arith.constant 0 : i32
    %c0_i32_0 = arith.constant 0 : i32
    return %c0_i32, %arg0 : i32, i32
  }
}

</mosaic_0001>

<bundles_post_ra>
// kernel: tpu_custom_call.1
= control target key start
LH: loop header
LB: loop body
LE: loop exit
PB: predicated region body
PF: predicated region fallthrough
CT: control target
= control target key end

     0   :  { %14 = vsyncpa [#allocation3], 0  ;;  %s6592_s0 = inlined_call_operand.vmem [shape: bf16[384,16], index: 0, kind: input, shape index: {}]   ;;  %s6593_s1 = inlined_call_operand.vmem [shape: bf16[16,32], index: 1, kind: input, shape index: {}]   ;;  %s6594_s2 = inlined_call_operand.vmem [shape: f32[1,32], index: 2, kind: input, shape index: {}]   ;;  %s6595_s3 = inlined_call_operand.vmem [shape: bf16[32,32], index: 3, kind: input, shape index: {}]   ;;  %s6596_s4 = inlined_call_operand.vmem [shape: f32[1,32], index: 4, kind: input, shape index: {}]   ;;  %s6597_s5 = inlined_call_operand.vmem [shape: f32[32,8], index: 5, kind: input, shape index: {}]   ;;  %s6598_s6 = inlined_call_operand.vmem [shape: f32[1,8], index: 6, kind: input, shape index: {}]   ;;  %s6599_s7 = inlined_call_operand.vmem [shape: s32[384,1], index: 7, kind: input, shape index: {}]   ;;  %s6600_s8 = inlined_call_operand.vmem [shape: f32[384,8], index: 8, kind: input, shape index: {}]   ;;  %s6601_s9 = inlined_call_operand.hbm [shape: f32[8,384], index: 9, kind: output, shape index: {}]  }
   0x1   :  { %16 = vsyncpa [#allocation3 + $0x1], 0  ;;  %s4205_s30 = smov 0   ;;  %s4207_s10 = smov 0  }
   0x2   :  { %s4209_s11 = smov 0   ;;  %s4211_s12 = smov 0  }
   0x3 LB: > { %s4226_s13 = sadd.s32 4294967295, %s4150_s12   ;;  %s3393_s14 = sadd.s32 4294967294, %s4150_s12   ;;  %s4150_s12 = sphi %s4211_s12, %s6939_s12   ;;  %s4146_s11 = sphi %s4209_s11, %s6938_s11   ;;  %s4142_s10 = sphi %s4207_s10, %s6937_s10   ;;  %s4138_s30 = sphi %s4205_s30, %s6936_s30  }
   0x4   : > { %s4230_s15 = sadd.s32 1, %s4150_s12   ;;  %s233_s16 = sadd.s32 1, %s4146_s11 }
   0x5   : > { %s230_s17 = ssub.s32 %s4150_s12, %s4230_s15  ;;  %p243_p0 = scmp.ne.s32.totalorder %s4146_s11, %s4142_s10 }
   0x6   : > { %p231_p1 = scmp.eq.s32.totalorder %s230_s17, 0  ;;  %p244_p2 = scmp.eq.s32.totalorder %s4226_s13, 1 }
   0x7   : > { %p249_p3 = scmp.ne.s32.totalorder %s4142_s10, %s4138_s30  ;;  %p250_p4 = scmp.eq.s32.totalorder %s3393_s14, 1 }
   0x8   : > { %s4241_s18 = scalar_select %p231_p1, %s4146_s11, %s233_s16  }
   0x9   : > { %p4243_p5 = por %p244_p2, %p243_p0  ;;  %p4247_p6 = por %p250_p4, %p249_p3 }
   0xa   : > { %p3396_p7 = scmp.ge.s32.totalorder %s4150_s12, 1  ;;  %p337_p8 = scmp.lt.s32.totalorder %s4150_s12, 3 }
   0xc   : > { %p338_p9 = pnand %p3396_p7, %p337_p8 }
   0xe   : > { %341 = sbr.rel (%p338_p9) target bundleno = 1583 (0x62f), region = 56 }
  0x15   : > { %v3813_v0 = vld [vmem:[%s6593_s1] sm:$0xff]   ;;  %s3398_s23 = sshll.u32 %s4226_s13, 5  ;;  %vm570_vm0 = vcmask 130048   ;;  %v3831_v18 = vld [vmem:[%s6595_s3 + $0x8] sm:$0xff]   ;;  %vm851_vm1 = vcmask 261120   ;;  %vm1427_vm2 = vcmask 64512  }
  0x16   : > { %p400_p10 = scmp.lt.s32.totalorder %s3398_s23, 47  ;;  %3635 = vmatprep.subr.bf16.mxu0 %v3813_v0  ;;  %3769 = vmatprep.subr.bf16.mxu1 %v3813_v0  ;;  %v3830_v1 = vld [vmem:[%s6595_s3] sm:$0xff]   ;;  %v1094_v20 = vld [vmem:[%s6597_s5 + $0x8] sm:$0xff] }
  0x17   : > { %3636 = vmatpush3.bf16.msra.mxu0 %v3813_v0  ;;  %3770 = vmatpush3.bf16.msra.mxu1 %v3813_v0  ;;  %v1093_v19 = vld [vmem:[%s6597_s5] sm:$0xff] }
  0x18   : > { %s6941_s23 = smov (!%p400_p10, %s3398_s23), 47  ;;  %3669 = vmatprep.subr.bf16.mxu1 %v3830_v1  ;;  %v3761_v21 = vpack.c.bf16 %v1094_v20, %v1093_v19  ;;  %v4312_v22 = vld [vmem:[%s6594_s2] ss:$0 sm:$0xff] }
  0x19   : > { %s3399_s26 = sshll.u32 %s6941_s23, 2  ;;  %s3401_s16 = sshll.u32 %s6941_s23, 3 }
  0x1a   : > { %s4266_s29 = scalar_lea.vmem %s6592_s0, %s3399_s26  ;;  %3762 = vmatprep.subr.bf16.mxu0 %v3761_v21  ;;  %s4383_s22 = scalar_lea.vmem %s6599_s7, %s3401_s16 }
  0x1b   : > { %v3814_v2 = vld [vmem:[%s4266_s29] sm:$0xff]   ;;  %v3815_v3 = vld [vmem:[%s4266_s29 + $0x8] sm:$0xff]   ;;  %v3816_v4 = vld [vmem:[%s4266_s29 + $0x10] sm:$0xff]   ;;  %s4491_s28 = scalar_lea.vmem %s6600_s8, %s3401_s16  ;;  %s392_s23 = sand.u32 1, %s4142_s10  }
  0x1c   : > { %3637 = vmatprep.mubr.msk.bf16.mxu0 %vm570_vm0, %v3814_v2  ;;  %v3817_v5 = vld [vmem:[%s4266_s29 + $0x18] sm:$0xff]   ;;  %v3818_v6 = vld [vmem:[%s4266_s29 + $0x20] sm:$0xff]   ;;  %v3823_v8 = vld [vmem:[%s4266_s29 + $0x48] sm:$0xff]   ;;  %s3397_s16 = sshll.u32 %s392_s23, 4  ;;  %s6538_s21 = scalar_lea.sflag [#allocation3], %s392_s23 }
  0x1d   : > { %3638 = vmatmul.mubr.msk.bf16.vlgmr.msra.gmra.mrb[0].mxu0 %vm570_vm0, %v3815_v3  ;;  %v3822_v7 = vld [vmem:[%s4266_s29 + $0x40] sm:$0xff]   ;;  %v3824_v9 = vld [vmem:[%s4266_s29 + $0x50] sm:$0xff]   ;;  %v3819_v10 = vld [vmem:[%s4266_s29 + $0x28] sm:$0xff]   ;;  %s394_s17 = scalar_lea.vmem [#allocation2], %s3397_s16 }
  0x1e   : > { %3641 = vmatprep.mubr.msk.bf16.mxu0 %vm570_vm0, %v3816_v4  ;;  %3653 = vmatprep.mubr.msk.bf16.mxu1 %vm570_vm0, %v3822_v7  ;;  %v3825_v11 = vld [vmem:[%s4266_s29 + $0x58] sm:$0xff]   ;;  %v3820_v12 = vld [vmem:[%s4266_s29 + $0x30] sm:$0xff]   ;;  %v3826_v13 = vld [vmem:[%s4266_s29 + $0x60] sm:$0xff]  }
  0x1f   : > { %3654 = vmatmul.mubr.msk.bf16.vlgmr.msra.gmra.mrb[0].mxu1 %vm570_vm0, %v3823_v8  ;;  %v3821_v14 = vld [vmem:[%s4266_s29 + $0x38] sm:$0xff]   ;;  %v3827_v15 = vld [vmem:[%s4266_s29 + $0x68] sm:$0xff]   ;;  %v3828_v16 = vld [vmem:[%s4266_s29 + $0x70] sm:$0xff]   ;;  %3764 = vmatpush3.bf16.msra.mxu0 %v3761_v21 }
  0x20   : > { %3657 = vmatprep.mubr.msk.bf16.mxu1 %vm570_vm0, %v3824_v9  ;;  %3670 = vmatpush3.bf16.msra.mxu1 %v3830_v1  ;;  %v3829_v17 = vld [vmem:[%s4266_s29 + $0x78] sm:$0xff]  }
  0x21   : > { %3671 = vmatprep.subr.bf16.mxu1 %v3831_v18 }
  0x24   : > { %3672 = vmatpush3.bf16.msra.mxu1 %v3831_v18 }
  0x25   : > { %3642 = vmatmul.mubr.msk.bf16.gmra.mrb[4].mxu0 %vm570_vm0, %v3817_v5 }
  0x26   : > { %3645 = vmatprep.mubr.msk.bf16.mxu0 %vm570_vm0, %v3818_v6 }
  0x27   : > { %3658 = vmatmul.mubr.msk.bf16.gmra.mrb[4].mxu1 %vm570_vm0, %v3825_v11 }
  0x28   : > { %3661 = vmatprep.mubr.msk.bf16.mxu1 %vm570_vm0, %v3826_v13 }
  0x2d   : > { %3646 = vmatmul.mubr.msk.bf16.gmra.mrb[8].mxu0 %vm570_vm0, %v3819_v10 }
  0x2e   : > { %3649 = vmatprep.mubr.msk.bf16.mxu0 %vm570_vm0, %v3820_v12 }
  0x2f   : > { %3662 = vmatmul.mubr.msk.bf16.gmra.mrb[8].mxu1 %vm570_vm0, %v3827_v15 }
  0x30   : > { %3665 = vmatprep.mubr.msk.bf16.mxu1 %vm570_vm0, %v3828_v16 }
  0x35   : > { %3650 = vmatmul.mubr.msk.bf16.gmra.mrb[12].mxu0 %vm570_vm0, %v3821_v14 }
  0x37   : > { %3666 = vmatmul.mubr.msk.bf16.gmra.mrb[12].mxu1 %vm570_vm0, %v3829_v17 }
  0xf0   : > { %v3639_v23 = vpop.f32.mrb[0].mxu0 }
  0xf1   : > { %v662_v24 = vadd.f32 %v3639_v23, %v4312_v22  ;;  %v653_v25 = vpop.f32.mrb[1].mxu0 }
  0xf2   : > { %v654_v26 = vadd.f32 %v4312_v22, %v653_v25  ;;  %v3640_v27 = vpop.f32.mrb[2].mxu0  ;;  %v3655_v32 = vpop.f32.mrb[0].mxu1 }
  0xf3   : > { %3832 = vtanh.f32 %v662_v24  ;;  %v665_v28 = vadd.f32 %v3640_v27, %v4312_v22  ;;  %v656_v29 = vpop.f32.mrb[3].mxu0  ;;  %v717_v35 = vpop.f32.mrb[1].mxu1  ;;  %v726_v41 = vadd.f32 %v3655_v32, %v4312_v22 }
  0xf4   : > { %3834 = vtanh.f32 %v654_v26  ;;  %v657_v30 = vadd.f32 %v4312_v22, %v656_v29  ;;  %v3656_v38 = vpop.f32.mrb[2].mxu1  ;;  %v718_v44 = vadd.f32 %v4312_v22, %v717_v35 }
  0xf5   : > { %3836 = vtanh.f32 %v665_v28  ;;  %v720_v42 = vpop.f32.mrb[3].mxu1  ;;  %v729_v46 = vadd.f32 %v3656_v38, %v4312_v22 }
  0xf6   : > { %3838 = vtanh.f32 %v657_v30  ;;  %v721_v48 = vadd.f32 %v4312_v22, %v720_v42 }
  0xf8   : > { %v3643_v31 = vpop.f32.mrb[4].mxu0 }
  0xf9   : > { %v678_v33 = vadd.f32 %v3643_v31, %v4312_v22  ;;  %v669_v34 = vpop.f32.mrb[5].mxu0 }
  0xfa   : > { %v670_v36 = vadd.f32 %v4312_v22, %v669_v34  ;;  %v3644_v37 = vpop.f32.mrb[6].mxu0  ;;  %v3659_v53 = vpop.f32.mrb[4].mxu1 }
  0xfb   : > { %3840 = vtanh.f32 %v678_v33  ;;  %v681_v39 = vadd.f32 %v3644_v37, %v4312_v22  ;;  %v672_v40 = vpop.f32.mrb[7].mxu0  ;;  %v733_v57 = vpop.f32.mrb[5].mxu1  ;;  %v742_v63 = vadd.f32 %v3659_v53, %v4312_v22 }
  0xfc   : > { %3842 = vtanh.f32 %v670_v36  ;;  %v673_v43 = vadd.f32 %v4312_v22, %v672_v40  ;;  %v3660_v60 = vpop.f32.mrb[6].mxu1  ;;  %v734_v2 = vadd.f32 %v4312_v22, %v733_v57 }
  0xfd   : > { %v3833_v45 = vpop.eup %3832  ;;  %3844 = vtanh.f32 %v681_v39  ;;  %v736_v0 = vpop.f32.mrb[7].mxu1  ;;  %v745_v4 = vadd.f32 %v3660_v60, %v4312_v22 }
  0xfe   : > { %v3835_v47 = vpop.eup %3834  ;;  %3846 = vtanh.f32 %v673_v43  ;;  %v737_v6 = vadd.f32 %v4312_v22, %v736_v0 }
  0xff   : > { %v3837_v49 = vpop.eup %3836  ;;  %3848 = vtanh.f32 %v726_v41 }
 0x100   : > { %v3839_v50 = vpop.eup %3838  ;;  %v813_v51 = vpack.c.bf16 %v3837_v49, %v3833_v45  ;;  %v3647_v52 = vpop.f32.mrb[8].mxu0  ;;  %3850 = vtanh.f32 %v718_v44 }
 0x101   : > { %v812_v54 = vpack.c.bf16 %v3839_v50, %v3835_v47  ;;  %v694_v55 = vadd.f32 %v3647_v52, %v4312_v22  ;;  %v685_v56 = vpop.f32.mrb[9].mxu0  ;;  %3852 = vtanh.f32 %v729_v46 }
 0x102   : > { %v686_v58 = vadd.f32 %v4312_v22, %v685_v56  ;;  %v3648_v59 = vpop.f32.mrb[10].mxu0  ;;  %3854 = vtanh.f32 %v721_v48  ;;  %v3663_v11 = vpop.f32.mrb[8].mxu1 }
 0x103   : > { %3673 = vmatprep.mubr.msk.bf16.mxu1 %vm851_vm1, %v812_v54  ;;  %3856 = vtanh.f32 %v694_v55  ;;  %v697_v61 = vadd.f32 %v3648_v59, %v4312_v22  ;;  %v688_v62 = vpop.f32.mrb[11].mxu0  ;;  %v749_v16 = vpop.f32.mrb[9].mxu1  ;;  %v758_v25 = vadd.f32 %v3663_v11, %v4312_v22  ;;  %v2741_v11 = vld [vmem:[%s4383_s22 + $0x8] sm:$0xff] }
 0x104   : > { %3674 = vmatmul.mubr.msk.bf16.vlgmr.msra.gmra.mrb[16].mxu1 %vm851_vm1, %v813_v51  ;;  %3858 = vtanh.f32 %v686_v58  ;;  %v689_v1 = vadd.f32 %v4312_v22, %v688_v62  ;;  %v3664_v20 = vpop.f32.mrb[10].mxu1  ;;  %v750_v30 = vadd.f32 %v4312_v22, %v749_v16  ;;  %v2746_v16 = vld [vmem:[%s4383_s22 + $0x30] sm:$0xff] }
 0x105   : > { %v3841_v3 = vpop.eup %3840  ;;  %3860 = vtanh.f32 %v697_v61  ;;  %v752_v26 = vpop.f32.mrb[11].mxu1  ;;  %v761_v33 = vadd.f32 %v3664_v20, %v4312_v22  ;;  %v2749_v20 = vld [vmem:[%s4383_s22 + $0x48] sm:$0xff] }
 0x106   : > { %v3843_v5 = vpop.eup %3842  ;;  %3862 = vtanh.f32 %v689_v1  ;;  %v753_v35 = vadd.f32 %v4312_v22, %v752_v26  ;;  %v2754_v26 = vld [vmem:[%s4383_s22 + $0x70] sm:$0xff] }
 0x107   : > { %v3845_v7 = vpop.eup %3844  ;;  %3864 = vtanh.f32 %v742_v63 }
 0x108   : > { %v3847_v8 = vpop.eup %3846  ;;  %v815_v9 = vpack.c.bf16 %v3845_v7, %v3841_v3  ;;  %v3651_v10 = vpop.f32.mrb[12].mxu0  ;;  %3866 = vtanh.f32 %v734_v2  ;;  %v1095_v7 = vld [vmem:[%s6597_s5 + $0x10] sm:$0xff] }
 0x109   : > { %v4336_v12 = vpop.eup %3848  ;;  %v814_v13 = vpack.c.bf16 %v3847_v8, %v3843_v5  ;;  %v710_v14 = vadd.f32 %v3651_v10, %v4312_v22  ;;  %v701_v15 = vpop.f32.mrb[13].mxu0  ;;  %3868 = vtanh.f32 %v745_v4  ;;  %v1096_v8 = vld [vmem:[%s6597_s5 + $0x18] sm:$0xff]  ;;  %v4152_v10 = vmov 0  }
 0x10a   : > { %v4339_v17 = vpop.eup %3850  ;;  %v702_v18 = vadd.f32 %v4312_v22, %v701_v15  ;;  %v3652_v19 = vpop.f32.mrb[14].mxu0  ;;  %3870 = vtanh.f32 %v737_v6  ;;  %3812 = vset.pattern.permute.xlu1 %v4152_v10  ;;  %3811 = vset.pattern.permute.xlu0 %v4152_v10  ;;  %v2745_v15 = vld [vmem:[%s4383_s22 + $0x28] sm:$0xff] }
 0x10b   : > { %v4342_v21 = vpop.eup %3852  ;;  %3677 = vmatprep.mubr.msk.bf16.mxu1 %vm851_vm1, %v814_v13  ;;  %3872 = vtanh.f32 %v710_v14  ;;  %v713_v23 = vadd.f32 %v3652_v19, %v4312_v22  ;;  %v704_v24 = vpop.f32.mrb[15].mxu0  ;;  %2776 = vperm.xlu1 %3812, %v2741_v11   ;;  %v2743_v13 = vld [vmem:[%s4383_s22 + $0x18] sm:$0xff]  ;;  %v2744_v14 = vld [vmem:[%s4383_s22 + $0x20] sm:$0xff] }
 0x10c   : > { %v3855_v27 = vpop.eup %3854  ;;  %3678 = vmatmul.mubr.msk.bf16.gmra.mrb[20].mxu1 %vm851_vm1, %v815_v9  ;;  %3874 = vtanh.f32 %v702_v18  ;;  %v705_v28 = vadd.f32 %v4312_v22, %v704_v24  ;;  %v821_v29 = vpack.c.bf16 %v4342_v21, %v4336_v12  ;;  %v3667_v39 = vpop.f32.mrb[12].mxu1  ;;  %v3765_v9 = vpack.c.bf16 %v1096_v8, %v1095_v7  ;;  %v2742_v12 = vld [vmem:[%s4383_s22 + $0x10] sm:$0xff]  ;;  %v2748_v18 = vld [vmem:[%s4383_s22 + $0x40] sm:$0xff] }
 0x10d   : > { %v3857_v31 = vpop.eup %3856  ;;  %3876 = vtanh.f32 %v713_v23  ;;  %v820_v32 = vpack.c.bf16 %v3855_v27, %v4339_v17  ;;  %v774_v42 = vadd.f32 %v3667_v39, %v4312_v22  ;;  %v765_v43 = vpop.f32.mrb[13].mxu1  ;;  %v2747_v17 = vld [vmem:[%s4383_s22 + $0x38] sm:$0xff]  ;;  %v2740_v19 = vld [vmem:[%s4383_s22] sm:$0xff]  ;;  %v2750_v21 = vld [vmem:[%s4383_s22 + $0x50] sm:$0xff] }
 0x10e   : > { %v3859_v34 = vpop.eup %3858  ;;  %3878 = vtanh.f32 %v705_v28  ;;  %v766_v45 = vadd.f32 %v4312_v22, %v765_v43  ;;  %v3668_v46 = vpop.f32.mrb[14].mxu1  ;;  %3766 = vmatprep.subr.bf16.mxu0 %v3765_v9  ;;  %2773 = vperm.xlu0 %3811, %v2740_v19   ;;  %v2751_v23 = vld [vmem:[%s4383_s22 + $0x58] sm:$0xff]  ;;  %v2752_v24 = vld [vmem:[%s4383_s22 + $0x60] sm:$0xff] }
 0x10f   : > { %v3861_v36 = vpop.eup %3860  ;;  %3880 = vtanh.f32 %v758_v25  ;;  %v777_v48 = vadd.f32 %v3668_v46, %v4312_v22  ;;  %v768_v49 = vpop.f32.mrb[15].mxu1  ;;  %3768 = vmatpush3.bf16.msra.mxu0 %v3765_v9  ;;  %2779 = vperm.xlu1 %3812, %v2742_v12   ;;  %v2753_v25 = vld [vmem:[%s4383_s22 + $0x68] sm:$0xff]  ;;  %v2755_v27 = vld [vmem:[%s4383_s22 + $0x78] sm:$0xff]  ;;  %v2756_v28 = vld [vmem:[%s4383_s22 + $0x80] sm:$0xff] }
 0x110   : > { %v3863_v37 = vpop.eup %3862  ;;  %v817_v38 = vpack.c.bf16 %v3861_v36, %v3857_v31  ;;  %3882 = vtanh.f32 %v750_v30  ;;  %v769_v52 = vadd.f32 %v4312_v22, %v768_v49  ;;  %v2758_v30 = vld [vmem:[%s4383_s22 + $0x90] sm:$0xff]  ;;  %v2759_v31 = vld [vmem:[%s4383_s22 + $0x98] sm:$0xff]  ;;  %v2764_v36 = vld [vmem:[%s4383_s22 + $0xc0] sm:$0xff] }
 0x111   : > { %v3865_v40 = vpop.eup %3864  ;;  %v816_v41 = vpack.c.bf16 %v3863_v37, %v3859_v34  ;;  %3884 = vtanh.f32 %v761_v33  ;;  %v2761_v33 = vld [vmem:[%s4383_s22 + $0xa8] sm:$0xff]  ;;  %v2762_v34 = vld [vmem:[%s4383_s22 + $0xb0] sm:$0xff]  ;;  %v2767_v39 = vld [vmem:[%s4383_s22 + $0xd8] sm:$0xff] }
 0x112   : > { %v3867_v44 = vpop.eup %3866  ;;  %3886 = vtanh.f32 %v753_v35  ;;  %2800 = vperm.xlu0 %3811, %v2749_v20   ;;  %v2763_v35 = vld [vmem:[%s4383_s22 + $0xb8] sm:$0xff]  ;;  %v2765_v37 = vld [vmem:[%s4383_s22 + $0xc8] sm:$0xff] }
 0x113   : > { %v3869_v47 = vpop.eup %3868  ;;  %3681 = vmatprep.mubr.msk.bf16.mxu1 %vm851_vm1, %v816_v41  ;;  %3888 = vtanh.f32 %v774_v42  ;;  %2782 = vperm.xlu1 %3812, %v2743_v13   ;;  %v2769_v41 = vld [vmem:[%s4383_s22 + $0xe8] sm:$0xff]  ;;  %v2770_v42 = vld [vmem:[%s4383_s22 + $0xf0] sm:$0xff]  ;;  %v2771_v43 = vld [vmem:[%s4383_s22 + $0xf8] sm:$0xff] }
 0x114   : > { %v3871_v50 = vpop.eup %3870  ;;  %3682 = vmatmul.mubr.msk.bf16.gmra.mrb[24].mxu1 %vm851_vm1, %v817_v38  ;;  %v823_v51 = vpack.c.bf16 %v3869_v47, %v3865_v40  ;;  %3890 = vtanh.f32 %v766_v45  ;;  %v2766_v38 = vld [vmem:[%s4383_s22 + $0xd0] sm:$0xff]  ;;  %v2768_v40 = vld [vmem:[%s4383_s22 + $0xe0] sm:$0xff] }
 0x115   : > { %v3873_v53 = vpop.eup %3872  ;;  %v822_v54 = vpack.c.bf16 %v3871_v50, %v3867_v44  ;;  %3892 = vtanh.f32 %v777_v48  ;;  %v4420_v44 = vld [vmem:[%s6596_s4] ss:$0 sm:$0xff] }
 0x116   : > { %v3875_v55 = vpop.eup %3874  ;;  %3894 = vtanh.f32 %v769_v52  ;;  %2806 = vperm.xlu0 %3811, %v2751_v23  }
 0x117   : > { %v3877_v56 = vpop.eup %3876  ;;  %2785 = vperm.xlu1 %3812, %v2744_v14  }
 0x118   : > { %v3879_v57 = vpop.eup %3878  ;;  %v819_v58 = vpack.c.bf16 %v3877_v56, %v3873_v53 }
 0x119   : > { %v3881_v59 = vpop.eup %3880  ;;  %v818_v60 = vpack.c.bf16 %v3879_v57, %v3875_v55 }
 0x11a   : > { %v3883_v61 = vpop.eup %3882  ;;  %2812 = vperm.xlu0 %3811, %v2753_v25  }
 0x11b   : > { %v3885_v62 = vpop.eup %3884  ;;  %3685 = vmatprep.mubr.msk.bf16.mxu1 %vm851_vm1, %v818_v60  ;;  %2788 = vperm.xlu1 %3812, %v2745_v15  }
 0x11c   : > { %v3887_v63 = vpop.eup %3886  ;;  %3686 = vmatmul.mubr.msk.bf16.gmra.mrb[28].mxu1 %vm851_vm1, %v819_v58  ;;  %v825_v0 = vpack.c.bf16 %v3885_v62, %v3881_v59 }
 0x11d   : > { %v3889_v1 = vpop.eup %3888  ;;  %3689 = vmatprep.mubr.msk.bf16.mxu1 %vm851_vm1, %v820_v32  ;;  %v824_v22 = vpack.c.bf16 %v3887_v63, %v3883_v61  ;;  %v2760_v32 = vld [vmem:[%s4383_s22 + $0xa0] sm:$0xff] }
 0x11e   : > { %v3891_v2 = vpop.eup %3890  ;;  %2818 = vperm.xlu0 %3811, %v2755_v27  }
 0x11f   : > { %v3893_v3 = vpop.eup %3892  ;;  %2791 = vperm.xlu1 %3812, %v2746_v16  }
 0x120   : > { %v3895_v4 = vpop.eup %3894  ;;  %v827_v5 = vpack.c.bf16 %v3893_v3, %v3889_v1 }
 0x121   : > { %v826_v6 = vpack.c.bf16 %v3895_v4, %v3891_v2 }
 0x123   : > { %2794 = vperm.xlu1 %3812, %v2747_v17  }
 0x124   : > { %3690 = vmatmul.mubr.msk.bf16.gmra.mrb[32].mxu1 %vm851_vm1, %v821_v29  ;;  %v2757_v29 = vld [vmem:[%s4383_s22 + $0x88] sm:$0xff]  ;;  %s3555_s22 = sshll.u32 (%p4243_p5), %s4226_s13, 1 }
 0x125   : > { %3693 = vmatprep.mubr.msk.bf16.mxu1 %vm851_vm1, %v822_v54  ;;  %2824 = vperm.xlu0 %3811, %v2757_v29   ;;  %s3298_s24 = ssub.s32 (%p4243_p5), 3, %s3555_s22 }
 0x126   : > { %p3299_p11 = scmp.lt.s32.totalorder (%p4243_p5), %s3298_s24, 2 }
 0x127   : > { %2797 = vperm.xlu1 %3812, %v2748_v18  }
 0x129   : > { %2830 = vperm.xlu0 %3811, %v2759_v31  }
 0x12b   : > { %2803 = vperm.xlu1 %3812, %v2750_v21  }
 0x12c   : > { %3694 = vmatmul.mubr.msk.bf16.gmra.mrb[36].mxu1 %vm851_vm1, %v823_v51 }
 0x12d   : > { %3697 = vmatprep.mubr.msk.bf16.mxu1 %vm851_vm1, %v824_v22  ;;  %2836 = vperm.xlu0 %3811, %v2761_v33  }
 0x12f   : > { %2809 = vperm.xlu1 %3812, %v2752_v24  }
 0x131   : > { %2842 = vperm.xlu0 %3811, %v2763_v35  }
 0x133   : > { %2815 = vperm.xlu1 %3812, %v2754_v26  }
 0x134   : > { %3698 = vmatmul.mubr.msk.bf16.gmra.mrb[40].mxu1 %vm851_vm1, %v825_v0 }
 0x135   : > { %3701 = vmatprep.mubr.msk.bf16.mxu1 %vm851_vm1, %v826_v6  ;;  %2848 = vperm.xlu0 %3811, %v2765_v37  }
 0x137   : > { %2821 = vperm.xlu1 %3812, %v2756_v28  }
 0x139   : > { %2854 = vperm.xlu0 %3811, %v2767_v39  }
 0x13b   : > { %2827 = vperm.xlu1 %3812, %v2758_v30  }
 0x13c   : > { %3702 = vmatmul.mubr.msk.bf16.gmra.mrb[44].mxu1 %vm851_vm1, %v827_v5 }
 0x13d   : > { %2860 = vperm.xlu0 %3811, %v2769_v41  }
 0x13f   : > { %2833 = vperm.xlu1 %3812, %v2760_v32  }
 0x141   : > { %2866 = vperm.xlu0 %3811, %v2771_v43  }
 0x143   : > { %2839 = vperm.xlu1 %3812, %v2762_v34  }
 0x147   : > { %2845 = vperm.xlu1 %3812, %v2764_v36  }
 0x14b   : > { %2851 = vperm.xlu1 %3812, %v2766_v38  }
 0x14f   : > { %2857 = vperm.xlu1 %3812, %v2768_v40  }
 0x153   : > { %2863 = vperm.xlu1 %3812, %v2770_v42  }
 0x1d7   : > { %v3675_v45 = vpop.f32.mrb[16].mxu1 }
 0x1d8   : > { %v934_v46 = vpop.f32.mrb[17].mxu1  ;;  %v943_v49 = vadd.f32 %v3675_v45, %v4420_v44 }
 0x1d9   : > { %v935_v47 = vadd.f32 %v4420_v44, %v934_v46  ;;  %v3676_v48 = vpop.f32.mrb[18].mxu1 }
 0x1da   : > { %v937_v50 = vpop.f32.mrb[19].mxu1  ;;  %v946_v52 = vadd.f32 %v3676_v48, %v4420_v44 }
 0x1db   : > { %3896 = vtanh.f32 %v935_v47  ;;  %v938_v51 = vadd.f32 %v4420_v44, %v937_v50 }
 0x1dd   : > { %3898 = vtanh.f32 %v938_v51 }
 0x1de   : > { %3900 = vtanh.f32 %v943_v49 }
 0x1df   : > { %v3679_v53 = vpop.f32.mrb[20].mxu1  ;;  %3902 = vtanh.f32 %v946_v52 }
 0x1e0   : > { %v959_v54 = vadd.f32 %v3679_v53, %v4420_v44  ;;  %v950_v55 = vpop.f32.mrb[21].mxu1 }
 0x1e1   : > { %v951_v56 = vadd.f32 %v4420_v44, %v950_v55  ;;  %v3680_v57 = vpop.f32.mrb[22].mxu1 }
 0x1e2   : > { %v953_v58 = vpop.f32.mrb[23].mxu1  ;;  %v962_v59 = vadd.f32 %v3680_v57, %v4420_v44 }
 0x1e3   : > { %3904 = vtanh.f32 %v951_v56  ;;  %v954_v60 = vadd.f32 %v4420_v44, %v953_v58 }
 0x1e4   : > { %3906 = vtanh.f32 %v959_v54 }
 0x1e5   : > { %v3897_v61 = vpop.eup %3896  ;;  %3908 = vtanh.f32 %v954_v60 }
 0x1e6   : > { %3713 = vmatprep.mubr.msk.f32.mxu0 %vm851_vm1, %v3897_v61  ;;  %3910 = vtanh.f32 %v962_v59 }
 0x1e7   : > { %v3899_v62 = vpop.eup %3898  ;;  %v3683_v63 = vpop.f32.mrb[24].mxu1 }
 0x1e8   : > { %v3901_v0 = vpop.eup %3900  ;;  %3714 = vmatmul.mubr.msk.f32.vlgmr.msra.gmra.mrb[16].mxu0 %vm851_vm1, %v3899_v62  ;;  %v975_v1 = vadd.f32 %v3683_v63, %v4420_v44  ;;  %v966_v22 = vpop.f32.mrb[25].mxu1 }
 0x1e9   : > { %3716 = vmatprep.mubr.msk.f32.mxu0 %vm851_vm1, %v3901_v0  ;;  %v967_v2 = vadd.f32 %v4420_v44, %v966_v22  ;;  %v3684_v3 = vpop.f32.mrb[26].mxu1  ;;  %v3903_v5 = vpop.eup %3902 }
 0x1ea   : > { %v969_v4 = vpop.f32.mrb[27].mxu1  ;;  %v978_v6 = vadd.f32 %v3684_v3, %v4420_v44 }
 0x1eb   : > { %3912 = vtanh.f32 %v967_v2  ;;  %v970_v7 = vadd.f32 %v4420_v44, %v969_v4 }
 0x1ec   : > { %3717 = vmatmul.mubr.msk.f32.gmra.mrb[18].mxu0 %vm851_vm1, %v3903_v5  ;;  %3914 = vtanh.f32 %v975_v1 }
 0x1ed   : > { %v3905_v8 = vpop.eup %3904  ;;  %3916 = vtanh.f32 %v970_v7 }
 0x1ee   : > { %v3907_v9 = vpop.eup %3906  ;;  %3719 = vmatprep.mubr.msk.f32.mxu0 %vm851_vm1, %v3905_v8  ;;  %3918 = vtanh.f32 %v978_v6 }
 0x1ef   : > { %v3909_v10 = vpop.eup %3908  ;;  %v3687_v11 = vpop.f32.mrb[28].mxu1 }
 0x1f0   : > { %3720 = vmatmul.mubr.msk.f32.gmra.mrb[20].mxu0 %vm851_vm1, %v3909_v10  ;;  %v991_v12 = vadd.f32 %v3687_v11, %v4420_v44  ;;  %v982_v13 = vpop.f32.mrb[29].mxu1  ;;  %v3911_v14 = vpop.eup %3910 }
 0x1f1   : > { %3722 = vmatprep.mubr.msk.f32.mxu0 %vm851_vm1, %v3907_v9  ;;  %v983_v15 = vadd.f32 %v4420_v44, %v982_v13  ;;  %v3688_v16 = vpop.f32.mrb[30].mxu1 }
 0x1f2   : > { %v985_v17 = vpop.f32.mrb[31].mxu1  ;;  %v994_v18 = vadd.f32 %v3688_v16, %v4420_v44 }
 0x1f3   : > { %3920 = vtanh.f32 %v983_v15  ;;  %v986_v19 = vadd.f32 %v4420_v44, %v985_v17 }
 0x1f4   : > { %3723 = vmatmul.mubr.msk.f32.gmra.mrb[22].mxu0 %vm851_vm1, %v3911_v14  ;;  %3922 = vtanh.f32 %v991_v12  ;;  %v4496_v12 = vld [vmem:[%s6598_s6] ss:$0 sm:$0xff]  ;;  %v1813_v14 = vld [vmem:[%s4491_s28 + $0x8] sm:$0xff] }
 0x1f5   : > { %v3913_v20 = vpop.eup %3912  ;;  %3924 = vtanh.f32 %v986_v19 }
 0x1f6   : > { %v3915_v21 = vpop.eup %3914  ;;  %3725 = vmatprep.mubr.msk.f32.mxu0 %vm851_vm1, %v3913_v20  ;;  %3926 = vtanh.f32 %v994_v18 }
 0x1f7   : > { %v3917_v23 = vpop.eup %3916  ;;  %v3691_v24 = vpop.f32.mrb[32].mxu1 }
 0x1f8   : > { %3726 = vmatmul.mubr.msk.f32.gmra.mrb[24].mxu0 %vm851_vm1, %v3917_v23  ;;  %v1007_v25 = vadd.f32 %v3691_v24, %v4420_v44  ;;  %v998_v26 = vpop.f32.mrb[33].mxu1  ;;  %v3919_v27 = vpop.eup %3918 }
 0x1f9   : > { %3728 = vmatprep.mubr.msk.f32.mxu0 %vm851_vm1, %v3915_v21  ;;  %v999_v28 = vadd.f32 %v4420_v44, %v998_v26  ;;  %v3692_v29 = vpop.f32.mrb[34].mxu1  ;;  %v1812_v21 = vld [vmem:[%s4491_s28] sm:$0xff] }
 0x1fa   : > { %v1001_v30 = vpop.f32.mrb[35].mxu1  ;;  %v1010_v31 = vadd.f32 %v3692_v29, %v4420_v44 }
 0x1fb   : > { %3928 = vtanh.f32 %v999_v28  ;;  %v1002_v32 = vadd.f32 %v4420_v44, %v1001_v30  ;;  %v1814_v30 = vld [vmem:[%s4491_s28 + $0x10] sm:$0xff] }
 0x1fc   : > { %3729 = vmatmul.mubr.msk.f32.gmra.mrb[26].mxu0 %vm851_vm1, %v3919_v27  ;;  %3930 = vtanh.f32 %v1007_v25 }
 0x1fd   : > { %v3921_v33 = vpop.eup %3920  ;;  %3932 = vtanh.f32 %v1002_v32 }
 0x1fe   : > { %v3923_v34 = vpop.eup %3922  ;;  %3731 = vmatprep.mubr.msk.f32.mxu0 %vm851_vm1, %v3921_v33  ;;  %3934 = vtanh.f32 %v1010_v31  ;;  %v1815_v33 = vld [vmem:[%s4491_s28 + $0x18] sm:$0xff] }
 0x1ff   : > { %v3925_v35 = vpop.eup %3924  ;;  %v3695_v36 = vpop.f32.mrb[36].mxu1 }
 0x200   : > { %3732 = vmatmul.mubr.msk.f32.gmra.mrb[28].mxu0 %vm851_vm1, %v3925_v35  ;;  %v1023_v37 = vadd.f32 %v3695_v36, %v4420_v44  ;;  %v1014_v38 = vpop.f32.mrb[37].mxu1  ;;  %v3927_v39 = vpop.eup %3926 }
 0x201   : > { %3734 = vmatprep.mubr.msk.f32.mxu0 %vm851_vm1, %v3923_v34  ;;  %v1015_v40 = vadd.f32 %v4420_v44, %v1014_v38  ;;  %v3696_v41 = vpop.f32.mrb[38].mxu1 }
 0x202   : > { %v1017_v42 = vpop.f32.mrb[39].mxu1  ;;  %v1026_v43 = vadd.f32 %v3696_v41, %v4420_v44 }
 0x203   : > { %3936 = vtanh.f32 %v1015_v40  ;;  %v1018_v45 = vadd.f32 %v4420_v44, %v1017_v42  ;;  %v1816_v42 = vld [vmem:[%s4491_s28 + $0x20] sm:$0xff] }
 0x204   : > { %3735 = vmatmul.mubr.msk.f32.gmra.mrb[30].mxu0 %vm851_vm1, %v3927_v39  ;;  %3938 = vtanh.f32 %v1023_v37 }
 0x205   : > { %v3929_v46 = vpop.eup %3928  ;;  %3940 = vtanh.f32 %v1018_v45 }
 0x206   : > { %v3931_v47 = vpop.eup %3930  ;;  %3737 = vmatprep.mubr.msk.f32.mxu0 %vm851_vm1, %v3929_v46  ;;  %3942 = vtanh.f32 %v1026_v43 }
 0x207   : > { %v3933_v48 = vpop.eup %3932  ;;  %v3699_v49 = vpop.f32.mrb[40].mxu1 }
 0x208   : > { %3738 = vmatmul.mubr.msk.f32.gmra.mrb[32].mxu0 %vm851_vm1, %v3933_v48  ;;  %v1039_v50 = vadd.f32 %v3699_v49, %v4420_v44  ;;  %v1030_v51 = vpop.f32.mrb[41].mxu1  ;;  %v3935_v52 = vpop.eup %3934  ;;  %v1817_v49 = vld [vmem:[%s4491_s28 + $0x28] sm:$0xff] }
 0x209   : > { %3740 = vmatprep.mubr.msk.f32.mxu0 %vm851_vm1, %v3931_v47  ;;  %v1031_v53 = vadd.f32 %v4420_v44, %v1030_v51  ;;  %v3700_v54 = vpop.f32.mrb[42].mxu1 }
 0x20a   : > { %v1033_v55 = vpop.f32.mrb[43].mxu1  ;;  %v1042_v56 = vadd.f32 %v3700_v54, %v4420_v44 }
 0x20b   : > { %3944 = vtanh.f32 %v1031_v53  ;;  %v1034_v57 = vadd.f32 %v4420_v44, %v1033_v55 }
 0x20c   : > { %3741 = vmatmul.mubr.msk.f32.gmra.mrb[34].mxu0 %vm851_vm1, %v3935_v52  ;;  %3946 = vtanh.f32 %v1039_v50 }
 0x20d   : > { %v3937_v58 = vpop.eup %3936  ;;  %3948 = vtanh.f32 %v1034_v57  ;;  %v1818_v57 = vld [vmem:[%s4491_s28 + $0x30] sm:$0xff] }
 0x20e   : > { %v3939_v59 = vpop.eup %3938  ;;  %3743 = vmatprep.mubr.msk.f32.mxu0 %vm851_vm1, %v3937_v58  ;;  %3950 = vtanh.f32 %v1042_v56 }
 0x20f   : > { %v3941_v60 = vpop.eup %3940  ;;  %v3703_v61 = vpop.f32.mrb[44].mxu1 }
 0x210   : > { %3744 = vmatmul.mubr.msk.f32.gmra.mrb[36].mxu0 %vm851_vm1, %v3941_v60  ;;  %v1055_v62 = vadd.f32 %v3703_v61, %v4420_v44  ;;  %v1046_v63 = vpop.f32.mrb[45].mxu1  ;;  %v3943_v0 = vpop.eup %3942 }
 0x211   : > { %3746 = vmatprep.mubr.msk.f32.mxu0 %vm851_vm1, %v3939_v59  ;;  %v1047_v1 = vadd.f32 %v4420_v44, %v1046_v63  ;;  %v3704_v22 = vpop.f32.mrb[46].mxu1 }
 0x212   : > { %v1049_v2 = vpop.f32.mrb[47].mxu1  ;;  %v1058_v3 = vadd.f32 %v3704_v22, %v4420_v44 }
 0x213   : > { %3952 = vtanh.f32 %v1047_v1  ;;  %v1050_v4 = vadd.f32 %v4420_v44, %v1049_v2 }
 0x214   : > { %3747 = vmatmul.mubr.msk.f32.gmra.mrb[38].mxu0 %vm851_vm1, %v3943_v0  ;;  %3954 = vtanh.f32 %v1055_v62  ;;  %v1819_v62 = vld [vmem:[%s4491_s28 + $0x38] sm:$0xff] }
 0x215   : > { %v3945_v5 = vpop.eup %3944  ;;  %3956 = vtanh.f32 %v1050_v4 }
 0x216   : > { %v3947_v6 = vpop.eup %3946  ;;  %3749 = vmatprep.mubr.msk.f32.mxu0 %vm851_vm1, %v3945_v5  ;;  %3958 = vtanh.f32 %v1058_v3  ;;  %v1820_v5 = vld [vmem:[%s4491_s28 + $0x40] sm:$0xff] }
 0x217   : > { %v3949_v7 = vpop.eup %3948 }
 0x218   : > { %3750 = vmatmul.mubr.msk.f32.gmra.mrb[40].mxu0 %vm851_vm1, %v3949_v7  ;;  %v3951_v8 = vpop.eup %3950 }
 0x219   : > { %3752 = vmatprep.mubr.msk.f32.mxu0 %vm851_vm1, %v3947_v6 }
 0x21c   : > { %3753 = vmatmul.mubr.msk.f32.gmra.mrb[42].mxu0 %vm851_vm1, %v3951_v8  ;;  %v1821_v8 = vld [vmem:[%s4491_s28 + $0x48] sm:$0xff] }
 0x21d   : > { %v3953_v9 = vpop.eup %3952 }
 0x21e   : > { %v3955_v44 = vpop.eup %3954  ;;  %3755 = vmatprep.mubr.msk.f32.mxu0 %vm851_vm1, %v3953_v9 }
 0x21f   : > { %v3957_v10 = vpop.eup %3956 }
 0x220   : > { %3756 = vmatmul.mubr.msk.f32.gmra.mrb[44].mxu0 %vm851_vm1, %v3957_v10  ;;  %v3959_v11 = vpop.eup %3958 }
 0x221   : > { %3758 = vmatprep.mubr.msk.f32.mxu0 %vm851_vm1, %v3955_v44 }
 0x224   : > { %3759 = vmatmul.mubr.msk.f32.gmra.mrb[46].mxu0 %vm851_vm1, %v3959_v11 }
 0x2bb   : > { %v3715_v13 = vpop.f32.mrb[16].mxu0 }
 0x2bc   : > { %v4500_v15 = vadd.f32 %v3715_v13, %v4496_v12  ;;  %v1266_v16 = vpop.f32.mrb[17].mxu0 }
 0x2bd   : > { %v4503_v17 = vadd.f32 %v4496_v12, %v1266_v16 }
 0x2be   : > { %v1431_v18 = vsel %vm1427_vm2, %v4500_v15, -inf  ;;  %v4508_v19 = vadd.f32 %v1813_v14, %v4500_v15 }
 0x2bf   : > { %1432 = vmax.xlane.f32.xlu0 %v1431_v18  ;;  %v3718_v20 = vpop.f32.mrb[18].mxu0  ;;  %v1428_v27 = vsel %vm1427_vm2, %v4503_v17, -inf  ;;  %v4522_v28 = vadd.f32 %v1812_v21, %v4503_v17  ;;  %v4611_v18 = vpop.permute.xlu1 %2776 }
 0x2c0   : > { %v4512_v23 = vadd.f32 %v3718_v20, %v4496_v12  ;;  %v1276_v24 = vpop.f32.mrb[19].mxu0  ;;  %v1879_v25 = vsel %vm1427_vm2, %v4508_v19, -inf  ;;  %6691 = vst [vmem:[#allocation5_spill] sm:$0xff] %v4611_v18 }
 0x2c1   : > { %1880 = vmax.xlane.f32.xlu1 %v1879_v25  ;;  %v4517_v26 = vadd.f32 %v4496_v12, %v1276_v24  ;;  %v1876_v34 = vsel %vm1427_vm2, %v4522_v28, -inf }
 0x2c2   : > { %v1437_v31 = vsel %vm1427_vm2, %v4512_v23, -inf  ;;  %v4539_v40 = vadd.f32 %v1815_v33, %v4512_v23  ;;  %v1822_v33 = vld [vmem:[%s4491_s28 + $0x50] sm:$0xff] }
 0x2c3   : > { %1429 = vmax.xlane.f32.xlu0 %v1428_v27  ;;  %v3721_v29 = vpop.f32.mrb[20].mxu0  ;;  %v4531_v35 = vadd.f32 %v1814_v30, %v4517_v26  ;;  %v1434_v38 = vsel %vm1427_vm2, %v4517_v26, -inf }
 0x2c4   : > { %v1286_v32 = vpop.f32.mrb[21].mxu0  ;;  %v4545_v45 = vadd.f32 %v3721_v29, %v4496_v12  ;;  %v1885_v46 = vsel %vm1427_vm2, %v4539_v40, -inf }
 0x2c5   : > { %1438 = vmax.xlane.f32.xlu1 %v1437_v31  ;;  %v4534_v37 = vadd.f32 %v4496_v12, %v1286_v32  ;;  %v1882_v41 = vsel %vm1427_vm2, %v4531_v35, -inf }
 0x2c6   : > { %v1443_v52 = vsel %vm1427_vm2, %v4545_v45, -inf  ;;  %v4558_v53 = vadd.f32 %v1817_v49, %v4545_v45 }
 0x2c7   : > { %1877 = vmax.xlane.f32.xlu0 %v1876_v34  ;;  %v3724_v36 = vpop.f32.mrb[22].mxu0  ;;  %v1440_v47 = vsel %vm1427_vm2, %v4534_v37, -inf  ;;  %v4553_v50 = vadd.f32 %v1816_v42, %v4534_v37 }
 0x2c8   : > { %v1296_v39 = vpop.f32.mrb[23].mxu0  ;;  %v4569_v59 = vadd.f32 %v3724_v36, %v4496_v12  ;;  %v1891_v60 = vsel %vm1427_vm2, %v4558_v53, -inf  ;;  %v4632_v36 = vpop.permute.xlu1 %2779 }
 0x2c9   : > { %1435 = vmax.xlane.f32.xlu1 %v1434_v38  ;;  %v4561_v55 = vadd.f32 %v4496_v12, %v1296_v39  ;;  %v1888_v56 = vsel %vm1427_vm2, %v4553_v50, -inf  ;;  %6692 = vst [vmem:[#allocation6_spill] sm:$0xff] %v4632_v36 }
 0x2ca   : > { %v1449_v22 = vsel %vm1427_vm2, %v4569_v59, -inf  ;;  %v4587_v3 = vadd.f32 %v1819_v62, %v4569_v59 }
 0x2cb   : > { %1883 = vmax.xlane.f32.xlu0 %v1882_v41  ;;  %v3727_v43 = vpop.f32.mrb[24].mxu0  ;;  %v1446_v63 = vsel %vm1427_vm2, %v4561_v55, -inf  ;;  %v4577_v0 = vadd.f32 %v1818_v57, %v4561_v55  ;;  %v1824_v57 = vld [vmem:[%s4491_s28 + $0x60] sm:$0xff] }
 0x2cc   : > { %v1306_v48 = vpop.f32.mrb[25].mxu0  ;;  %v4593_v6 = vadd.f32 %v3727_v43, %v4496_v12  ;;  %v1897_v44 = vsel %vm1427_vm2, %v4587_v3, -inf  ;;  %v1823_v43 = vld [vmem:[%s4491_s28 + $0x58] sm:$0xff]  ;;  %v4664_v62 = vpop.permute.xlu1 %2782 }
 0x2cd   : > { %1886 = vmax.xlane.f32.xlu1 %v1885_v46  ;;  %v4584_v2 = vadd.f32 %v4496_v12, %v1306_v48  ;;  %v1894_v7 = vsel %vm1427_vm2, %v4577_v0, -inf  ;;  %6695 = vst [vmem:[#allocation9_spill] sm:$0xff] %v4664_v62 }
 0x2ce   : > { %v1455_v20 = vsel %vm1427_vm2, %v4593_v6, -inf  ;;  %v4616_v21 = vadd.f32 %v1821_v8, %v4593_v6 }
 0x2cf   : > { %1441 = vmax.xlane.f32.xlu0 %v1440_v47  ;;  %v3730_v51 = vpop.f32.mrb[26].mxu0  ;;  %v1452_v10 = vsel %vm1427_vm2, %v4584_v2, -inf  ;;  %v4603_v11 = vadd.f32 %v1820_v5, %v4584_v2 }
 0x2d0   : > { %v1316_v54 = vpop.f32.mrb[27].mxu0  ;;  %v1903_v32 = vsel %vm1427_vm2, %v4616_v21, -inf  ;;  %v4635_v38 = vadd.f32 %v3730_v51, %v4496_v12 }
 0x2d1   : > { %1444 = vmax.xlane.f32.xlu1 %v1443_v52  ;;  %v4619_v25 = vadd.f32 %v4496_v12, %v1316_v54  ;;  %v1900_v27 = vsel %vm1427_vm2, %v4603_v11, -inf }
 0x2d2   : > { %v1461_v49 = vsel %vm1427_vm2, %v4635_v38, -inf  ;;  %v4655_v52 = vadd.f32 %v1823_v43, %v4635_v38 }
 0x2d3   : > { %1889 = vmax.xlane.f32.xlu0 %v1888_v56  ;;  %v4566_v58 = vpop.f32.mrb[28].mxu0  ;;  %v1458_v39 = vsel %vm1427_vm2, %v4619_v25, -inf  ;;  %v4647_v47 = vadd.f32 %v1822_v33, %v4619_v25 }
 0x2d4   : > { %v1326_v61 = vpop.f32.mrb[29].mxu0 }
 0x2d5   : > { %1892 = vmax.xlane.f32.xlu1 %v1891_v60  ;;  %v4652_v51 = vadd.f32 %v4496_v12, %v1326_v61  ;;  %v1906_v61 = vsel %vm1427_vm2, %v4647_v47, -inf }
 0x2d7   : > { %1447 = vmax.xlane.f32.xlu0 %v1446_v63  ;;  %v4579_v1 = vpop.f32.mrb[30].mxu0  ;;  %v4668_v63 = vadd.f32 %v4566_v58, %v4496_v12  ;;  %v1464_v8 = vsel %vm1427_vm2, %v4652_v51, -inf }
 0x2d8   : > { %v4589_v4 = vpop.f32.mrb[31].mxu0  ;;  %v4708_v43 = vadd.f32 %v4579_v1, %v4496_v12 }
 0x2d9   : > { %1450 = vmax.xlane.f32.xlu1 %v1449_v22  ;;  %v1825_v22 = vld [vmem:[%s4491_s28 + $0x68] sm:$0xff] }
 0x2db   : > { %1895 = vmax.xlane.f32.xlu0 %v1894_v7  ;;  %v3739_v9 = vpop.f32.mrb[32].mxu0  ;;  %v1909_v7 = vsel %vm1427_vm2, %v4655_v52, -inf }
 0x2dc   : > { %v4606_v13 = vadd.f32 %v3739_v9, %v4496_v12  ;;  %v1346_v14 = vpop.f32.mrb[33].mxu0  ;;  %v4678_v9 = vadd.f32 %v1824_v57, %v4652_v51 }
 0x2dd   : > { %1898 = vmax.xlane.f32.xlu1 %v1897_v44  ;;  %v4609_v16 = vadd.f32 %v4496_v12, %v1346_v14  ;;  %v1467_v14 = vsel %vm1427_vm2, %v4668_v63, -inf }
 0x2df   : > { %1453 = vmax.xlane.f32.xlu0 %v1452_v10  ;;  %v3742_v24 = vpop.f32.mrb[34].mxu0 }
 0x2e0   : > { %v4624_v29 = vadd.f32 %v3742_v24, %v4496_v12  ;;  %v1356_v30 = vpop.f32.mrb[35].mxu0 }
 0x2e1   : > { %1456 = vmax.xlane.f32.xlu1 %v1455_v20  ;;  %v4627_v31 = vadd.f32 %v4496_v12, %v1356_v30  ;;  %v4689_v20 = vadd.f32 %v1825_v22, %v4668_v63  ;;  %v4695_v30 = vadd.f32 %v4496_v12, %v4589_v4 }
 0x2e3   : > { %1901 = vmax.xlane.f32.xlu0 %v1900_v27  ;;  %v3745_v34 = vpop.f32.mrb[36].mxu0  ;;  %v4691_v27 = vpop.permute.xlu1 %2785  ;;  %v1915_v4 = vsel %vm1427_vm2, %v4689_v20, -inf }
 0x2e4   : > { %v4640_v41 = vadd.f32 %v3745_v34, %v4496_v12  ;;  %v1366_v42 = vpop.f32.mrb[37].mxu0  ;;  %6697 = vst [vmem:[#allocation11_spill] sm:$0xff] %v4691_v27  ;;  %v1832_v27 = vld [vmem:[%s4491_s28 + $0xa0] sm:$0xff] }
 0x2e5   : > { %1904 = vmax.xlane.f32.xlu1 %v1903_v32  ;;  %v4644_v46 = vadd.f32 %v4496_v12, %v1366_v42  ;;  %v1912_v32 = vsel %vm1427_vm2, %v4678_v9, -inf }
 0x2e7   : > { %6693 = vst [vmem:[#allocation7_spill] sm:$0xff] %v4644_v46  ;;  %1459 = vmax.xlane.f32.xlu0 %v1458_v39  ;;  %v3748_v48 = vpop.f32.mrb[38].mxu0  ;;  %v1826_v39 = vld [vmem:[%s4491_s28 + $0x70] sm:$0xff] }
 0x2e8   : > { %v4658_v54 = vadd.f32 %v3748_v48, %v4496_v12  ;;  %v1376_v56 = vpop.f32.mrb[39].mxu0  ;;  %v1827_v48 = vld [vmem:[%s4491_s28 + $0x78] sm:$0xff]  ;;  %v4716_v57 = vadd.f32 %v1826_v39, %v4695_v30 }
 0x2e9   : > { %1462 = vmax.xlane.f32.xlu1 %v1461_v49  ;;  %v4662_v60 = vadd.f32 %v4496_v12, %v1376_v56  ;;  %v1470_v56 = vsel %vm1427_vm2, %v4695_v30, -inf }
 0x2eb   : > { %6694 = vst [vmem:[#allocation8_spill] sm:$0xff] %v4662_v60  ;;  %1907 = vmax.xlane.f32.xlu0 %v1906_v61  ;;  %v3751_v5 = vpop.f32.mrb[40].mxu0 }
 0x2ec   : > { %v4681_v44 = vadd.f32 %v3751_v5, %v4496_v12  ;;  %v1386_v58 = vpop.f32.mrb[41].mxu0  ;;  %v4724_v5 = vpop.permute.xlu1 %2788 }
 0x2ed   : > { %1910 = vmax.xlane.f32.xlu1 %v1909_v7  ;;  %v4684_v10 = vadd.f32 %v4496_v12, %v1386_v58  ;;  %6700 = vst [vmem:[#allocation14_spill] sm:$0xff] %v4724_v5  ;;  %v1473_v7 = vsel %vm1427_vm2, %v4708_v43, -inf }
 0x2ef   : > { %6696 = vst [vmem:[#allocation10_spill] sm:$0xff] %v4684_v10  ;;  %1465 = vmax.xlane.f32.xlu0 %v1464_v8  ;;  %v3754_v24 = vpop.f32.mrb[42].mxu0  ;;  %v4729_v8 = vadd.f32 %v1827_v48, %v4708_v43  ;;  %v1829_v48 = vld [vmem:[%s4491_s28 + $0x88] sm:$0xff] }
 0x2f0   : > { %v4700_v33 = vadd.f32 %v3754_v24, %v4496_v12  ;;  %v1396_v34 = vpop.f32.mrb[43].mxu0 }
 0x2f1   : > { %1468 = vmax.xlane.f32.xlu1 %v1467_v14  ;;  %v4704_v42 = vadd.f32 %v4496_v12, %v1396_v34  ;;  %v1918_v14 = vsel %vm1427_vm2, %v4716_v57, -inf  ;;  %v1828_v34 = vld [vmem:[%s4491_s28 + $0x80] sm:$0xff] }
 0x2f3   : > { %6698 = vst [vmem:[#allocation12_spill] sm:$0xff] %v4704_v42  ;;  %1913 = vmax.xlane.f32.xlu0 %v1912_v32  ;;  %v3757_v49 = vpop.f32.mrb[44].mxu0 }
 0x2f4   : > { %v4719_v61 = vadd.f32 %v3757_v49, %v4496_v12  ;;  %v1406_v22 = vpop.f32.mrb[45].mxu0  ;;  %v4743_v49 = vpop.permute.xlu1 %2791 }
 0x2f5   : > { %1916 = vmax.xlane.f32.xlu1 %v1915_v4  ;;  %v4722_v1 = vadd.f32 %v4496_v12, %v1406_v22  ;;  %v1921_v4 = vsel %vm1427_vm2, %v4729_v8, -inf  ;;  %6702 = vst [vmem:[#allocation16_spill] sm:$0xff] %v4743_v49  ;;  %v4748_v22 = vadd.f32 %v1828_v34, %v4609_v16 }
 0x2f7   : > { %6699 = vst [vmem:[#allocation13_spill] sm:$0xff] %v4722_v1  ;;  %1471 = vmax.xlane.f32.xlu0 %v1470_v56  ;;  %v3760_v58 = vpop.f32.mrb[46].mxu0  ;;  %v1476_v56 = vsel %vm1427_vm2, %v4609_v16, -inf }
 0x2f8   : > { %v4734_v24 = vadd.f32 %v3760_v58, %v4496_v12  ;;  %v1416_v32 = vpop.f32.mrb[47].mxu0  ;;  %v4755_v58 = vpop.permute.xlu0 %2773 }
 0x2f9   : > { %1474 = vmax.xlane.f32.xlu1 %v1473_v7  ;;  %v4738_v39 = vadd.f32 %v4496_v12, %v1416_v32  ;;  %v1479_v7 = vsel %vm1427_vm2, %v4606_v13, -inf  ;;  %v4753_v12 = vadd.f32 %v1829_v48, %v4606_v13  ;;  %6703 = vst [vmem:[#allocation17_spill] sm:$0xff] %v4755_v58  ;;  %v1830_v32 = vld [vmem:[%s4491_s28 + $0x90] sm:$0xff]  ;;  %v4760_v62 = vpop.permute.xlu1 %2794  ;;  %v1482_v48 = vsel %vm1427_vm2, %v4627_v31, -inf }
 0x2fa   : > { %6704 = vst [vmem:[#allocation18_spill] sm:$0xff] %v4760_v62 }
 0x2fb   : > { %6701 = vst [vmem:[#allocation15_spill] sm:$0xff] %v4738_v39  ;;  %1919 = vmax.xlane.f32.xlu0 %v1918_v14  ;;  %v1924_v14 = vsel %vm1427_vm2, %v4748_v22, -inf  ;;  %v1927_v34 = vsel %vm1427_vm2, %v4753_v12, -inf }
 0x2fc   : > { %v4770_v58 = vpop.permute.xlu0 %2800 }
 0x2fd   : > { %1922 = vmax.xlane.f32.xlu1 %v1921_v4  ;;  %v1831_v4 = vld [vmem:[%s4491_s28 + $0x98] sm:$0xff]  ;;  %6705 = vst [vmem:[#allocation19_spill] sm:$0xff] %v4770_v58  ;;  %v4777_v62 = vpop.permute.xlu1 %2797 }
 0x2fe   : > { %v4775_v49 = vadd.f32 %v1831_v4, %v4624_v29  ;;  %6706 = vst [vmem:[#allocation20_spill] sm:$0xff] %v4777_v62  ;;  %v1488_v4 = vsel %vm1427_vm2, %v4644_v46, -inf }
 0x2ff   : > { %1477 = vmax.xlane.f32.xlu0 %v1476_v56  ;;  %v4768_v56 = vadd.f32 %v1830_v32, %v4627_v31 }
 0x300   : > { %v1933_v32 = vsel %vm1427_vm2, %v4775_v49, -inf  ;;  %v4785_v58 = vpop.permute.xlu0 %2806 }
 0x301   : > { %1480 = vmax.xlane.f32.xlu1 %v1479_v7  ;;  %v1485_v7 = vsel %vm1427_vm2, %v4624_v29, -inf  ;;  %6707 = vst [vmem:[#allocation21_spill] sm:$0xff] %v4785_v58  ;;  %v4792_v62 = vpop.permute.xlu1 %2803  ;;  %v1834_v58 = vld [vmem:[%s4491_s28 + $0xb0] sm:$0xff] }
 0x302   : > { %6708 = vst [vmem:[#allocation22_spill] sm:$0xff] %v4792_v62 }
 0x303   : > { %1925 = vmax.xlane.f32.xlu0 %v1924_v14  ;;  %v1930_v14 = vsel %vm1427_vm2, %v4768_v56, -inf }
 0x304   : > { %v4802_v36 = vpop.permute.xlu0 %2812 }
 0x305   : > { %1928 = vmax.xlane.f32.xlu1 %v1927_v34  ;;  %v1833_v34 = vld [vmem:[%s4491_s28 + $0xa8] sm:$0xff]  ;;  %6709 = vst [vmem:[#allocation23_spill] sm:$0xff] %v4802_v36  ;;  %v4807_v62 = vpop.permute.xlu1 %2809 }
 0x306   : > { %v4797_v5 = vadd.f32 %v1833_v34, %v4640_v41  ;;  %6710 = vst [vmem:[#allocation24_spill] sm:$0xff] %v4807_v62  ;;  %v1494_v34 = vsel %vm1427_vm2, %v4662_v60, -inf  ;;  %v1836_v62 = vld [vmem:[%s4491_s28 + $0xc0] sm:$0xff] }
 0x307   : > { %1483 = vmax.xlane.f32.xlu0 %v1482_v48  ;;  %v4790_v48 = vadd.f32 %v1832_v27, %v4644_v46 }
 0x308   : > { %v1939_v27 = vsel %vm1427_vm2, %v4797_v5, -inf  ;;  %v4819_v18 = vpop.permute.xlu0 %2818 }
 0x309   : > { %1486 = vmax.xlane.f32.xlu1 %v1485_v7  ;;  %v1491_v7 = vsel %vm1427_vm2, %v4640_v41, -inf  ;;  %6712 = vst [vmem:[#allocation26_spill] sm:$0xff] %v4819_v18  ;;  %v4824_v46 = vpop.permute.xlu1 %2815 }
 0x30a   : > { %6713 = vst [vmem:[#allocation27_spill] sm:$0xff] %v4824_v46 }
 0x30b   : > { %1931 = vmax.xlane.f32.xlu0 %v1930_v14  ;;  %v1936_v14 = vsel %vm1427_vm2, %v4790_v48, -inf }
 0x30c   : > { %v4834_v18 = vpop.permute.xlu0 %2824 }
 0x30d   : > { %1934 = vmax.xlane.f32.xlu1 %v1933_v32  ;;  %v1835_v32 = vld [vmem:[%s4491_s28 + $0xb8] sm:$0xff]  ;;  %6715 = vst [vmem:[#allocation29_spill] sm:$0xff] %v4834_v18 }
 0x30e   : > { %v4817_v36 = vadd.f32 %v1835_v32, %v4658_v54  ;;  %v1500_v32 = vsel %vm1427_vm2, %v4684_v10, -inf }
 0x30f   : > { %1489 = vmax.xlane.f32.xlu0 %v1488_v4  ;;  %v4812_v4 = vadd.f32 %v1834_v58, %v4662_v60  ;;  %v4841_v60 = vpop.permute.xlu1 %2821 }
 0x310   : > { %v1945_v58 = vsel %vm1427_vm2, %v4817_v36, -inf  ;;  %6716 = vst [vmem:[#allocation30_spill] sm:$0xff] %v4841_v60  ;;  %v4849_v18 = vpop.permute.xlu0 %2830 }
 0x311   : > { %1492 = vmax.xlane.f32.xlu1 %v1491_v7  ;;  %6711 = vst [vmem:[#allocation25_spill] sm:$0xff] %v4812_v4  ;;  %v1497_v7 = vsel %vm1427_vm2, %v4658_v54, -inf  ;;  %6717 = vst [vmem:[#allocation31_spill] sm:$0xff] %v4849_v18  ;;  %v1840_v18 = vld [vmem:[%s4491_s28 + $0xe0] sm:$0xff] }
 0x313   : > { %1937 = vmax.xlane.f32.xlu0 %v1936_v14  ;;  %v1942_v14 = vsel %vm1427_vm2, %v4812_v4, -inf  ;;  %v1838_v4 = vld [vmem:[%s4491_s28 + $0xd0] sm:$0xff]  ;;  %v4856_v60 = vpop.permute.xlu1 %2827 }
 0x314   : > { %6719 = vst [vmem:[#allocation33_spill] sm:$0xff] %v4856_v60 }
 0x315   : > { %1940 = vmax.xlane.f32.xlu1 %v1939_v27  ;;  %v1837_v27 = vld [vmem:[%s4491_s28 + $0xc8] sm:$0xff] }
 0x316   : > { %v4839_v46 = vadd.f32 %v1837_v27, %v4681_v44  ;;  %v1506_v27 = vsel %vm1427_vm2, %v4704_v42, -inf }
 0x317   : > { %1495 = vmax.xlane.f32.xlu0 %v1494_v34  ;;  %v4832_v34 = vadd.f32 %v1836_v62, %v4684_v10  ;;  %v4871_v60 = vpop.permute.xlu1 %2833 }
 0x318   : > { %v1951_v62 = vsel %vm1427_vm2, %v4839_v46, -inf  ;;  %6721 = vst [vmem:[#allocation35_spill] sm:$0xff] %v4871_v60  ;;  %v1842_v60 = vld [vmem:[%s4491_s28 + $0xf0] sm:$0xff] }
 0x319   : > { %1498 = vmax.xlane.f32.xlu1 %v1497_v7  ;;  %6714 = vst [vmem:[#allocation28_spill] sm:$0xff] %v4832_v34  ;;  %v1503_v7 = vsel %vm1427_vm2, %v4681_v44, -inf }
 0x31b   : > { %1943 = vmax.xlane.f32.xlu0 %v1942_v14  ;;  %v1948_v14 = vsel %vm1427_vm2, %v4832_v34, -inf  ;;  %v4866_v34 = vpop.permute.xlu0 %2836 }
 0x31c   : > { %6720 = vst [vmem:[#allocation34_spill] sm:$0xff] %v4866_v34 }
 0x31d   : > { %1946 = vmax.xlane.f32.xlu1 %v1945_v58  ;;  %v1839_v58 = vld [vmem:[%s4491_s28 + $0xd8] sm:$0xff] }
 0x31e   : > { %v4861_v10 = vadd.f32 %v1839_v58, %v4700_v33  ;;  %v1512_v58 = vsel %vm1427_vm2, %v4722_v1, -inf }
 0x31f   : > { %1501 = vmax.xlane.f32.xlu0 %v1500_v32  ;;  %v4854_v32 = vadd.f32 %v1838_v4, %v4704_v42  ;;  %v4883_v42 = vpop.permute.xlu0 %2842 }
 0x320   : > { %v1957_v4 = vsel %vm1427_vm2, %v4861_v10, -inf  ;;  %6724 = vst [vmem:[#allocation38_spill] sm:$0xff] %v4883_v42 }
 0x321   : > { %1504 = vmax.xlane.f32.xlu1 %v1503_v7  ;;  %6718 = vst [vmem:[#allocation32_spill] sm:$0xff] %v4854_v32  ;;  %v1509_v7 = vsel %vm1427_vm2, %v4700_v33, -inf }
 0x323   : > { %1949 = vmax.xlane.f32.xlu0 %v1948_v14  ;;  %v1954_v14 = vsel %vm1427_vm2, %v4854_v32, -inf  ;;  %v4888_v32 = vpop.permute.xlu1 %2839 }
 0x324   : > { %6725 = vst [vmem:[#allocation39_spill] sm:$0xff] %v4888_v32 }
 0x325   : > { %1952 = vmax.xlane.f32.xlu1 %v1951_v62  ;;  %v1841_v62 = vld [vmem:[%s4491_s28 + $0xe8] sm:$0xff] }
 0x326   : > { %v4881_v34 = vadd.f32 %v1841_v62, %v4719_v61  ;;  %v4896_v62 = vadd.f32 %v1842_v60, %v4738_v39 }
 0x327   : > { %1507 = vmax.xlane.f32.xlu0 %v1506_v27  ;;  %v4876_v27 = vadd.f32 %v1840_v18, %v4722_v1  ;;  %v1518_v1 = vsel %vm1427_vm2, %v4738_v39, -inf  ;;  %v4905_v32 = vpop.permute.xlu1 %2845 }
 0x328   : > { %6723 = vst [vmem:[#allocation37_spill] sm:$0xff] %v4881_v34  ;;  %v1963_v18 = vsel %vm1427_vm2, %v4881_v34, -inf  ;;  %6726 = vst [vmem:[#allocation40_spill] sm:$0xff] %v4896_v62 }
 0x329   : > { %1510 = vmax.xlane.f32.xlu1 %v1509_v7  ;;  %6722 = vst [vmem:[#allocation36_spill] sm:$0xff] %v4876_v27  ;;  %v1515_v7 = vsel %vm1427_vm2, %v4719_v61, -inf  ;;  %6729 = vst [vmem:[#allocation43_spill] sm:$0xff] %v4905_v32  ;;  %v1425_v32 = vlaneseq }
 0x32b   : > { %1955 = vmax.xlane.f32.xlu0 %v1954_v14  ;;  %v1960_v14 = vsel %vm1427_vm2, %v4876_v27, -inf }
 0x32d   : > { %1958 = vmax.xlane.f32.xlu1 %v1957_v4  ;;  %v1843_v4 = vld [vmem:[%s4491_s28 + $0xf8] sm:$0xff] }
 0x32e   : > { %v4903_v42 = vadd.f32 %v1843_v4, %v4734_v24 }
 0x32f   : > { %1513 = vmax.xlane.f32.xlu0 %v1512_v58  ;;  %v4898_v58 = vpop.permute.xlu0 %2848 }
 0x330   : > { %6727 = vst [vmem:[#allocation41_spill] sm:$0xff] %v4898_v58  ;;  %6728 = vst [vmem:[#allocation42_spill] sm:$0xff] %v4903_v42  ;;  %v1969_v60 = vsel %vm1427_vm2, %v4903_v42, -inf  ;;  %v4913_v58 = vpop.permute.xlu1 %2851  ;;  %v4926_v42 = vand.u32 127, %v1425_v32 }
 0x331   : > { %1516 = vmax.xlane.f32.xlu1 %v1515_v7  ;;  %v1521_v7 = vsel %vm1427_vm2, %v4734_v24, -inf  ;;  %6731 = vst [vmem:[#allocation45_spill] sm:$0xff] %v4913_v58 }
 0x333   : > { %1961 = vmax.xlane.f32.xlu0 %v1960_v14  ;;  %v1966_v14 = vsel %vm1427_vm2, %v4896_v62, -inf }
 0x334   : > { %v4917_v4 = vpop.permute.xlu1 %2857 }
 0x335   : > { %1964 = vmax.xlane.f32.xlu1 %v1963_v18  ;;  %v4911_v18 = vpop.permute.xlu0 %2854  ;;  %6733 = vst [vmem:[#allocation47_spill] sm:$0xff] %v4917_v4 }
 0x336   : > { %6730 = vst [vmem:[#allocation44_spill] sm:$0xff] %v4911_v18 }
 0x337   : > { %1519 = vmax.xlane.f32.xlu0 %v1518_v1 }
 0x338   : > { %v4921_v27 = vpop.permute.xlu1 %2863 }
 0x339   : > { %1522 = vmax.xlane.f32.xlu1 %v1521_v7  ;;  %v4915_v39 = vpop.permute.xlu0 %2860  ;;  %6735 = vst [vmem:[#allocation49_spill] sm:$0xff] %v4921_v27 }
 0x33a   : > { %6732 = vst [vmem:[#allocation46_spill] sm:$0xff] %v4915_v39 }
 0x33b   : > { %1967 = vmax.xlane.f32.xlu0 %v1966_v14 }
 0x33d   : > { %1970 = vmax.xlane.f32.xlu1 %v1969_v60  ;;  %v4919_v1 = vpop.permute.xlu0 %2866 }
 0x33e   : > { %6734 = vst [vmem:[#allocation48_spill] sm:$0xff] %v4919_v1 }
 0x34c   : > { %v1433_v62 = vpop.xlane.xlu0 %1432 }
 0x34d   : > { %v4924_v7 = vsub.f32 %v4500_v15, %v1433_v62 }
 0x34e   : > { %v1881_v14 = vpop.xlane.xlu1 %1880 }
 0x34f   : > { %6736 = vst [vmem:[#allocation50_spill] sm:$0xff] %v4924_v7  ;;  %v1558_v60 = vmul.f32 1.442695, %v4924_v7  ;;  %vm1973_vm3 = vcmp.eq.f32.partialorder %v4508_v19, %v1881_v14 }
 0x350   : > { %v2005_v39 = vsel %vm1973_vm3, %v4926_v42, 8  ;;  %v1430_v58 = vpop.xlane.xlu0 %1429 }
 0x351   : > { %3960 = vpow2.f32 %v1558_v60  ;;  %v4932_v1 = vsel %vm1427_vm2, %v2005_v39, 2147483647  ;;  %v4939_v32 = vsub.f32 %v4503_v17, %v1430_v58 }
 0x352   : > { %v1439_v4 = vpop.xlane.xlu1 %1438  ;;  %v2053_v27 = vshra.s32 %v4932_v1, 16 }
 0x353   : > { %v4936_v15 = vsub.f32 %v4512_v23, %v1439_v4  ;;  %6738 = vst [vmem:[#allocation52_spill] sm:$0xff] %v4939_v32  ;;  %v1556_v23 = vmul.f32 1.442695, %v4939_v32 }
 0x354   : > { %v1878_v62 = vpop.xlane.xlu0 %1877  ;;  %v4941_v18 = vcvt.s32.f32 %v2053_v27 }
 0x355   : > { %6737 = vst [vmem:[#allocation51_spill] sm:$0xff] %v4936_v15  ;;  %v1562_v19 = vmul.f32 1.442695, %v4936_v15  ;;  %vm1972_vm4 = vcmp.eq.f32.partialorder %v4522_v28, %v1878_v62 }
 0x356   : > { %v2004_v14 = vsel %vm1972_vm4, %v4926_v42, 8  ;;  %v1436_v39 = vpop.xlane.xlu1 %1435  ;;  %2056 = vmin.xlane.f32.xlu0 %v4941_v18 }
 0x357   : > { %3962 = vpow2.f32 %v1562_v19  ;;  %v4948_v60 = vsel %vm1427_vm2, %v2004_v14, 2147483647 }
 0x358   : > { %v1884_v17 = vpop.xlane.xlu0 %1883  ;;  %v2038_v58 = vshra.s32 %v4948_v60, 16  ;;  %3964 = vpow2.f32 %v1556_v23  ;;  %v4971_v23 = vsub.f32 %v4517_v26, %v1436_v39 }
 0x359   : > { %vm1974_vm5 = vcmp.eq.f32.partialorder %v4531_v35, %v1884_v17 }
 0x35a   : > { %v2006_v27 = vsel %vm1974_vm5, %v4926_v42, 8  ;;  %v1887_v4 = vpop.xlane.xlu1 %1886  ;;  %v4954_v28 = vcvt.s32.f32 %v2038_v58  ;;  %6740 = vst [vmem:[#allocation54_spill] sm:$0xff] %v4971_v23  ;;  %v1560_v26 = vmul.f32 1.442695, %v4971_v23 }
 0x35b   : > { %v3961_v62 = vpop.eup %3960  ;;  %vm1975_vm6 = vcmp.eq.f32.partialorder %v4539_v40, %v1887_v4  ;;  %v4964_v35 = vsel %vm1427_vm2, %v2006_v27, 2147483647 }
 0x35c   : > { %v2007_v19 = vsel %vm1975_vm6, %v4926_v42, 8  ;;  %2041 = vmin.xlane.f32.xlu0 %v4954_v28  ;;  %v1442_v14 = vpop.xlane.xlu0 %1441  ;;  %v1623_v15 = vsel %vm1427_vm2, %v3961_v62, 0.0 }
 0x35d   : > { %1624 = vadd.xlane.f32.xlu1 %v1623_v15  ;;  %v4961_v32 = vsel %vm1427_vm2, %v2007_v19, 2147483647  ;;  %v2068_v15 = vshra.s32 %v4964_v35, 16 }
 0x35e   : > { %v1445_v17 = vpop.xlane.xlu1 %1444  ;;  %v2083_v58 = vshra.s32 %v4961_v32, 16 }
 0x35f   : > { %v4968_v40 = vsub.f32 %v4545_v45, %v1445_v17  ;;  %v4983_v17 = vcvt.s32.f32 %v2068_v15 }
 0x360   : > { %v1890_v4 = vpop.xlane.xlu0 %1889  ;;  %v4973_v7 = vcvt.s32.f32 %v2083_v58 }
 0x361   : > { %6739 = vst [vmem:[#allocation53_spill] sm:$0xff] %v4968_v40  ;;  %v3963_v62 = vpop.eup %3962  ;;  %v1566_v19 = vmul.f32 1.442695, %v4968_v40  ;;  %vm1976_vm7 = vcmp.eq.f32.partialorder %v4553_v50, %v1890_v4 }
 0x362   : > { %6741 = vst [vmem:[#allocation55_spill] sm:$0xff] %v4973_v7  ;;  %v1893_v34 = vpop.xlane.xlu1 %1892  ;;  %2086 = vmin.xlane.f32.xlu0 %v4973_v7  ;;  %v1629_v27 = vsel %vm1427_vm2, %v3963_v62, 0.0  ;;  %v3965_v40 = vpop.eup %3964  ;;  %v2008_v7 = vsel %vm1976_vm7, %v4926_v42, 8 }
 0x363   : > { %3966 = vpow2.f32 %v1566_v19  ;;  %vm1977_vm8 = vcmp.eq.f32.partialorder %v4558_v53, %v1893_v34  ;;  %1630 = vadd.xlane.f32.xlu1 %v1629_v27  ;;  %v4995_v4 = vsel %vm1427_vm2, %v2008_v7, 2147483647  ;;  %v1620_v19 = vsel %vm1427_vm2, %v3965_v40, 0.0 }
 0x364   : > { %v2009_v45 = vsel %vm1977_vm8, %v4926_v42, 8  ;;  %v1448_v39 = vpop.xlane.xlu0 %1447  ;;  %3968 = vpow2.f32 %v1560_v26 }
 0x365   : > { %v4986_v58 = vsel %vm1427_vm2, %v2009_v45, 2147483647  ;;  %v5001_v45 = vsub.f32 %v4534_v37, %v1442_v14 }
 0x366   : > { %v1451_v62 = vpop.xlane.xlu1 %1450  ;;  %2071 = vmin.xlane.f32.xlu0 %v4983_v17  ;;  %v2113_v34 = vshra.s32 %v4986_v58, 16 }
 0x367   : > { %v4991_v50 = vsub.f32 %v4569_v59, %v1451_v62  ;;  %6743 = vst [vmem:[#allocation57_spill] sm:$0xff] %v5001_v45  ;;  %v2098_v62 = vshra.s32 %v4995_v4, 16  ;;  %v1564_v37 = vmul.f32 1.442695, %v5001_v45 }
 0x368   : > { %v1896_v53 = vpop.xlane.xlu0 %1895  ;;  %v5005_v26 = vcvt.s32.f32 %v2113_v34 }
 0x369   : > { %6742 = vst [vmem:[#allocation56_spill] sm:$0xff] %v4991_v50  ;;  %v1570_v15 = vmul.f32 1.442695, %v4991_v50  ;;  %vm1978_vm10 = vcmp.eq.f32.partialorder %v4577_v0, %v1896_v53  ;;  %v5016_v34 = vcvt.s32.f32 %v2098_v62 }
 0x36a   : > { %v1899_v27 = vpop.xlane.xlu1 %1898  ;;  %1621 = vadd.xlane.f32.xlu0 %v1620_v19  ;;  %6744 = vst [vmem:[#allocation58_spill] sm:$0xff] %v5005_v26 }
 0x36b   : > { %3970 = vpow2.f32 %v1570_v15  ;;  %vm1979_vm9 = vcmp.eq.f32.partialorder %v4587_v3, %v1899_v27 }
 0x36c   : > { %v5003_v59 = vpop.xlane.xlu0 %1453  ;;  %v2011_v23 = vsel %vm1979_vm9, %v4926_v42, 8 }
 0x36d   : > { %v3967_v7 = vpop.eup %3966  ;;  %v5019_v15 = vsel %vm1427_vm2, %v2011_v23, 2147483647 }
 0x36e   : > { %v1457_v50 = vpop.xlane.xlu1 %1456  ;;  %2116 = vmin.xlane.f32.xlu0 %v5005_v26  ;;  %v1635_v40 = vsel %vm1427_vm2, %v3967_v7, 0.0  ;;  %6746 = vst [vmem:[#allocation60_spill] sm:$0xff] %v5019_v15  ;;  %v3969_v27 = vpop.eup %3968  ;;  %v2010_v26 = vsel %vm1978_vm10, %v4926_v42, 8 }
 0x36f   : > { %v5013_v3 = vsub.f32 %v4593_v6, %v1457_v50  ;;  %1636 = vadd.xlane.f32.xlu1 %v1635_v40  ;;  %v2143_v6 = vshra.s32 %v5019_v15, 16  ;;  %v5028_v53 = vsel %vm1427_vm2, %v2010_v26, 2147483647  ;;  %v1626_v23 = vsel %vm1427_vm2, %v3969_v27, 0.0 }
 0x370   : > { %v1902_v14 = vpop.xlane.xlu0 %1901  ;;  %v2128_v26 = vshra.s32 %v5028_v53, 16 }
 0x371   : > { %6745 = vst [vmem:[#allocation59_spill] sm:$0xff] %v5013_v3  ;;  %v1574_v19 = vmul.f32 1.442695, %v5013_v3  ;;  %v5039_v45 = vcvt.s32.f32 %v2143_v6  ;;  %vm1980_vm12 = vcmp.eq.f32.partialorder %v4603_v11, %v1902_v14 }
 0x372   : > { %v1905_v7 = vpop.xlane.xlu1 %1904  ;;  %2101 = vmin.xlane.f32.xlu0 %v5016_v34 }
 0x373   : > { %3972 = vpow2.f32 %v1574_v19  ;;  %vm1981_vm11 = vcmp.eq.f32.partialorder %v4616_v21, %v1905_v7 }
 0x374   : > { %3974 = vpow2.f32 %v1564_v37  ;;  %v5024_v0 = vpop.xlane.xlu0 %1459  ;;  %v5037_v37 = vsub.f32 %v4561_v55, %v1448_v39  ;;  %v5049_v55 = vcvt.s32.f32 %v2128_v26 }
 0x375   : > { %v3971_v50 = vpop.eup %3970 }
 0x376   : > { %v1463_v62 = vpop.xlane.xlu1 %1462  ;;  %1627 = vadd.xlane.f32.xlu0 %v1626_v23  ;;  %v1641_v40 = vsel %vm1427_vm2, %v3971_v50, 0.0  ;;  %6748 = vst [vmem:[#allocation62_spill] sm:$0xff] %v5037_v37  ;;  %v2013_v23 = vsel %vm1981_vm11, %v4926_v42, 8  ;;  %v1568_v21 = vmul.f32 1.442695, %v5037_v37  ;;  %v2012_v50 = vsel %vm1980_vm12, %v4926_v42, 8 }
 0x377   : > { %v5034_v3 = vsub.f32 %v4635_v38, %v1463_v62  ;;  %1642 = vadd.xlane.f32.xlu1 %v1641_v40  ;;  %v5052_v7 = vsel %vm1427_vm2, %v2013_v23, 2147483647 }
 0x378   : > { %v1908_v19 = vpop.xlane.xlu0 %1907  ;;  %v2173_v26 = vshra.s32 %v5052_v7, 16 }
 0x379   : > { %6747 = vst [vmem:[#allocation61_spill] sm:$0xff] %v5034_v3  ;;  %v1578_v27 = vmul.f32 1.442695, %v5034_v3  ;;  %vm1982_vm14 = vcmp.eq.f32.partialorder %v4647_v47, %v1908_v19 }
 0x37a   : > { %v1911_v15 = vpop.xlane.xlu1 %1910  ;;  %2146 = vmin.xlane.f32.xlu0 %v5039_v45 }
 0x37b   : > { %3976 = vpow2.f32 %v1578_v27  ;;  %v5062_v27 = vsel %vm1427_vm2, %v2012_v50, 2147483647  ;;  %vm1983_vm13 = vcmp.eq.f32.partialorder %v4655_v52, %v1911_v15 }
 0x37c   : > { %v5047_v38 = vpop.xlane.xlu0 %1465  ;;  %3978 = vpow2.f32 %v1568_v21  ;;  %v2158_v50 = vshra.s32 %v5062_v27, 16 }
 0x37d   : > { %v3973_v39 = vpop.eup %3972 }
 0x37e   : > { %v3975_v6 = vpop.eup %3974  ;;  %v1469_v62 = vpop.xlane.xlu1 %1468  ;;  %2131 = vmin.xlane.f32.xlu0 %v5049_v55  ;;  %v1647_v40 = vsel %vm1427_vm2, %v3973_v39, 0.0  ;;  %v5073_v39 = vcvt.s32.f32 %v2173_v26  ;;  %v5086_v15 = vcvt.s32.f32 %v2158_v50 }
 0x37f   : > { %v5058_v11 = vsub.f32 %v4668_v63, %v1469_v62  ;;  %1648 = vadd.xlane.f32.xlu1 %v1647_v40  ;;  %v1632_v3 = vsel %vm1427_vm2, %v3975_v6, 0.0  ;;  %v5069_v63 = vsub.f32 %v4584_v2, %v5003_v59  ;;  %v2015_v40 = vsel %vm1983_vm13, %v4926_v42, 8 }
 0x380   : > { %v1914_v14 = vpop.xlane.xlu0 %1913  ;;  %6751 = vst [vmem:[#allocation65_spill] sm:$0xff] %v5073_v39  ;;  %v5089_v6 = vsel %vm1427_vm2, %v2015_v40, 2147483647 }
 0x381   : > { %6749 = vst [vmem:[#allocation63_spill] sm:$0xff] %v5058_v11  ;;  %v1582_v23 = vmul.f32 1.442695, %v5058_v11  ;;  %6750 = vst [vmem:[#allocation64_spill] sm:$0xff] %v5069_v63  ;;  %v1572_v2 = vmul.f32 1.442695, %v5069_v63  ;;  %vm1984_vm0 = vcmp.eq.f32.partialorder %v4678_v9, %v1914_v14 }
 0x382   : > { %v1917_v37 = vpop.xlane.xlu1 %1916  ;;  %1633 = vadd.xlane.f32.xlu0 %v1632_v3 }
 0x383   : > { %3980 = vpow2.f32 %v1582_v23  ;;  %vm1985_vm15 = vcmp.eq.f32.partialorder %v4689_v20, %v1917_v37 }
 0x384   : > { %v5071_v21 = vpop.xlane.xlu0 %1471 }
 0x385   : > { %v3977_v62 = vpop.eup %3976 }
 0x386   : > { %v1475_v11 = vpop.xlane.xlu1 %1474  ;;  %2176 = vmin.xlane.f32.xlu0 %v5073_v39  ;;  %v1653_v3 = vsel %vm1427_vm2, %v3977_v62, 0.0  ;;  %v3979_v23 = vpop.eup %3978  ;;  %v2014_v62 = vsel %vm1982_vm14, %v4926_v42, 8 }
 0x387   : > { %v5081_v52 = vsub.f32 %v4708_v43, %v1475_v11  ;;  %1654 = vadd.xlane.f32.xlu1 %v1653_v3  ;;  %v2203_v43 = vshra.s32 %v5089_v6, 16  ;;  %v5098_v11 = vsel %vm1427_vm2, %v2014_v62, 2147483647  ;;  %v1638_v50 = vsel %vm1427_vm2, %v3979_v23, 0.0 }
 0x388   : > { %v5084_v59 = vpop.xlane.xlu0 %1919  ;;  %v2188_v23 = vshra.s32 %v5098_v11, 16 }
 0x389   : > { %6752 = vst [vmem:[#allocation66_spill] sm:$0xff] %v5081_v52  ;;  %v1586_v26 = vmul.f32 1.442695, %v5081_v52  ;;  %v5112_v62 = vcvt.s32.f32 %v2203_v43  ;;  %vm1986_vm3 = vcmp.eq.f32.partialorder %v4716_v57, %v5084_v59 }
 0x38a   : > { %v1923_v39 = vpop.xlane.xlu1 %1922  ;;  %2161 = vmin.xlane.f32.xlu0 %v5086_v15  ;;  %v5124_v20 = vcvt.s32.f32 %v2188_v23 }
 0x38b   : > { %3982 = vpow2.f32 %v1586_v26  ;;  %6755 = vst [vmem:[#allocation69_spill] sm:$0xff] %v5112_v62  ;;  %vm1987_vm1 = vcmp.eq.f32.partialorder %v4729_v8, %v1923_v39 }
 0x38c   : > { %3984 = vpow2.f32 %v1572_v2  ;;  %v5094_v47 = vpop.xlane.xlu0 %1477  ;;  %v5108_v2 = vsub.f32 %v4619_v25, %v5024_v0 }
 0x38d   : > { %v3981_v19 = vpop.eup %3980 }
 0x38e   : > { %v1481_v40 = vpop.xlane.xlu1 %1480  ;;  %1639 = vadd.xlane.f32.xlu0 %v1638_v50  ;;  %v1659_v3 = vsel %vm1427_vm2, %v3981_v19, 0.0  ;;  %6754 = vst [vmem:[#allocation68_spill] sm:$0xff] %v5108_v2  ;;  %v2017_v19 = vsel %vm1985_vm15, %v4926_v42, 8 }
 0x38f   : > { %v5104_v52 = vsub.f32 %v4606_v13, %v1481_v40  ;;  %1660 = vadd.xlane.f32.xlu1 %v1659_v3  ;;  %v1576_v13 = vmul.f32 1.442695, %v5108_v2  ;;  %v5127_v37 = vsel %vm1427_vm2, %v2017_v19, 2147483647  ;;  %v2016_v40 = vsel %vm1984_vm0, %v4926_v42, 8 }
 0x390   : > { %v5110_v26 = vpop.xlane.xlu0 %1925  ;;  %v2233_v23 = vshra.s32 %v5127_v37, 16 }
 0x391   : > { %6753 = vst [vmem:[#allocation67_spill] sm:$0xff] %v5104_v52  ;;  %v1590_v50 = vmul.f32 1.442695, %v5104_v52  ;;  %vm1988_vm5 = vcmp.eq.f32.partialorder %v4748_v22, %v5110_v26 }
 0x392   : > { %v5117_v63 = vpop.xlane.xlu1 %1928  ;;  %2206 = vmin.xlane.f32.xlu0 %v5112_v62 }
 0x393   : > { %3986 = vpow2.f32 %v1590_v50  ;;  %v5139_v50 = vsel %vm1427_vm2, %v2016_v40, 2147483647  ;;  %vm1989_vm4 = vcmp.eq.f32.partialorder %v4753_v12, %v5117_v63 }
 0x394   : > { %v5122_v25 = vpop.xlane.xlu0 %1483  ;;  %3988 = vpow2.f32 %v1576_v13  ;;  %v2218_v13 = vshra.s32 %v5139_v50, 16 }
 0x395   : > { %v3983_v0 = vpop.eup %3982 }
 0x396   : > { %v3985_v43 = vpop.eup %3984  ;;  %v1487_v3 = vpop.xlane.xlu1 %1486  ;;  %2191 = vmin.xlane.f32.xlu0 %v5124_v20  ;;  %v1665_v52 = vsel %vm1427_vm2, %v3983_v0, 0.0 }
 0x397   : > { %v5133_v9 = vsub.f32 %v4624_v29, %v1487_v3  ;;  %1666 = vadd.xlane.f32.xlu1 %v1665_v52  ;;  %v1644_v2 = vsel %vm1427_vm2, %v3985_v43, 0.0  ;;  %v5148_v29 = vsub.f32 %v4652_v51, %v5047_v38  ;;  %v5150_v52 = vcvt.s32.f32 %v2233_v23 }
 0x398   : > { %v5135_v14 = vpop.xlane.xlu0 %1931  ;;  %v2019_v3 = vsel %vm1987_vm1, %v4926_v42, 8  ;;  %v5164_v38 = vcvt.s32.f32 %v2218_v13 }
 0x399   : > { %6756 = vst [vmem:[#allocation70_spill] sm:$0xff] %v5133_v9  ;;  %v1594_v19 = vmul.f32 1.442695, %v5133_v9  ;;  %6757 = vst [vmem:[#allocation71_spill] sm:$0xff] %v5148_v29  ;;  %v1580_v8 = vmul.f32 1.442695, %v5148_v29  ;;  %vm1990_vm7 = vcmp.eq.f32.partialorder %v4768_v56, %v5135_v14 }
 0x39a   : > { %v5143_v62 = vpop.xlane.xlu1 %1934  ;;  %1645 = vadd.xlane.f32.xlu0 %v1644_v2  ;;  %v5167_v39 = vsel %vm1427_vm2, %v2019_v3, 2147483647  ;;  %v2018_v9 = vsel %vm1986_vm3, %v4926_v42, 8 }
 0x39b   : > { %3990 = vpow2.f32 %v1594_v19  ;;  %v2263_v57 = vshra.s32 %v5167_v39, 16  ;;  %v5178_v13 = vsel %vm1427_vm2, %v2018_v9, 2147483647  ;;  %vm1991_vm6 = vcmp.eq.f32.partialorder %v4775_v49, %v5143_v62 }
 0x39c   : > { %v5153_v40 = vpop.xlane.xlu0 %1489  ;;  %v2248_v9 = vshra.s32 %v5178_v13, 16 }
 0x39d   : > { %v3987_v0 = vpop.eup %3986 }
 0x39e   : > { %v1493_v43 = vpop.xlane.xlu1 %1492  ;;  %2236 = vmin.xlane.f32.xlu0 %v5150_v52  ;;  %v1671_v2 = vsel %vm1427_vm2, %v3987_v0, 0.0  ;;  %v3989_v19 = vpop.eup %3988 }
 0x39f   : > { %v5161_v51 = vsub.f32 %v4640_v41, %v1493_v43  ;;  %1672 = vadd.xlane.f32.xlu1 %v1671_v2  ;;  %v1650_v3 = vsel %vm1427_vm2, %v3989_v19, 0.0 }
 0x3a0   : > { %v5174_v41 = vpop.xlane.xlu0 %1937 }
 0x3a1   : > { %6758 = vst [vmem:[#allocation72_spill] sm:$0xff] %v5161_v51  ;;  %v1598_v23 = vmul.f32 1.442695, %v5161_v51  ;;  %v5191_v51 = vcvt.s32.f32 %v2263_v57  ;;  %v2020_v57 = vsel %vm1988_vm5, %v4926_v42, 8  ;;  %vm1992_vm9 = vcmp.eq.f32.partialorder %v4790_v48, %v5174_v41 }
 0x3a2   : > { %v5171_v0 = vpop.xlane.xlu1 %1940  ;;  %2221 = vmin.xlane.f32.xlu0 %v5164_v38 }
 0x3a3   : > { %3992 = vpow2.f32 %v1598_v23  ;;  %vm1993_vm8 = vcmp.eq.f32.partialorder %v4797_v5, %v5171_v0 }
 0x3a4   : > { %3994 = vpow2.f32 %v1580_v8  ;;  %v5189_v8 = vsub.f32 %v4695_v30, %v5071_v21  ;;  %v5194_v19 = vpop.xlane.xlu0 %1495  ;;  %v5204_v30 = vcvt.s32.f32 %v2248_v9  ;;  %v5219_v9 = vsel %vm1427_vm2, %v2020_v57, 2147483647 }
 0x3a5   : > { %v3991_v59 = vpop.eup %3990 }
 0x3a6   : > { %v1499_v43 = vpop.xlane.xlu1 %1498  ;;  %1651 = vadd.xlane.f32.xlu0 %v1650_v3  ;;  %v1677_v2 = vsel %vm1427_vm2, %v3991_v59, 0.0  ;;  %6760 = vst [vmem:[#allocation74_spill] sm:$0xff] %v5189_v8  ;;  %v2021_v59 = vsel %vm1989_vm4, %v4926_v42, 8 }
 0x3a7   : > { %v5185_v23 = vsub.f32 %v4658_v54, %v1499_v43  ;;  %1678 = vadd.xlane.f32.xlu1 %v1677_v2  ;;  %v1584_v54 = vmul.f32 1.442695, %v5189_v8  ;;  %v5207_v63 = vsel %vm1427_vm2, %v2021_v59, 2147483647 }
 0x3a8   : > { %v2293_v26 = vshra.s32 %v5207_v63, 16 }
 0x3a9   : > { %6759 = vst [vmem:[#allocation73_spill] sm:$0xff] %v5185_v23  ;;  %v1602_v3 = vmul.f32 1.442695, %v5185_v23  ;;  %v5212_v23 = vpop.xlane.xlu0 %1943 }
 0x3aa   : > { %v5198_v29 = vpop.xlane.xlu1 %1946  ;;  %2266 = vmin.xlane.f32.xlu0 %v5191_v51 }
 0x3ab   : > { %3996 = vpow2.f32 %v1602_v3  ;;  %vm1995_vm10 = vcmp.eq.f32.partialorder %v4817_v36, %v5198_v29  ;;  %v6769_v36 = vld [vmem:[#allocation25_spill] sm:$0xff] }
 0x3ac   : > { %3998 = vpow2.f32 %v1584_v54  ;;  %v5231_v54 = vcvt.s32.f32 %v2293_v26  ;;  %vm1994_vm11 = vcmp.eq.f32.partialorder %v6769_v36, %v5212_v23 }
 0x3ad   : > { %v3993_v12 = vpop.eup %3992 }
 0x3ae   : > { %v3995_v21 = vpop.eup %3994  ;;  %v1505_v43 = vpop.xlane.xlu1 %1504  ;;  %2251 = vmin.xlane.f32.xlu0 %v5204_v30  ;;  %v1683_v2 = vsel %vm1427_vm2, %v3993_v12, 0.0  ;;  %v2278_v12 = vshra.s32 %v5219_v9, 16 }
 0x3af   : > { %v5215_v22 = vsub.f32 %v4681_v44, %v1505_v43  ;;  %1684 = vadd.xlane.f32.xlu1 %v1683_v2  ;;  %v1656_v59 = vsel %vm1427_vm2, %v3995_v21, 0.0  ;;  %v5229_v44 = vsub.f32 %v4609_v16, %v5094_v47  ;;  %v5234_v43 = vpop.xlane.xlu0 %1501  ;;  %v2023_v21 = vsel %vm1991_vm6, %v4926_v42, 8 }
 0x3b0   : > { %v5245_v47 = vcvt.s32.f32 %v2278_v12  ;;  %v5248_v62 = vsel %vm1427_vm2, %v2023_v21, 2147483647 }
 0x3b1   : > { %6761 = vst [vmem:[#allocation75_spill] sm:$0xff] %v5215_v22  ;;  %v1606_v3 = vmul.f32 1.442695, %v5215_v22  ;;  %6762 = vst [vmem:[#allocation76_spill] sm:$0xff] %v5229_v44  ;;  %v1588_v49 = vmul.f32 1.442695, %v5229_v44 }
 0x3b2   : > { %v5223_v8 = vpop.xlane.xlu1 %1952  ;;  %1657 = vadd.xlane.f32.xlu0 %v1656_v59  ;;  %v2022_v22 = vsel %vm1990_vm7, %v4926_v42, 8 }
 0x3b3   : > { %4000 = vpow2.f32 %v1606_v3  ;;  %v5255_v56 = vpop.xlane.xlu0 %1949  ;;  %v5259_v12 = vsel %vm1427_vm2, %v2022_v22, 2147483647  ;;  %vm1997_vm12 = vcmp.eq.f32.partialorder %v4839_v46, %v5223_v8 }
 0x3b4   : > { %v2308_v22 = vshra.s32 %v5259_v12, 16 }
 0x3b5   : > { %v3997_v57 = vpop.eup %3996 }
 0x3b6   : > { %v1511_v2 = vpop.xlane.xlu1 %1510  ;;  %2296 = vmin.xlane.f32.xlu0 %v5231_v54  ;;  %v1689_v59 = vsel %vm1427_vm2, %v3997_v57, 0.0  ;;  %v3999_v3 = vpop.eup %3998 }
 0x3b7   : > { %v5242_v16 = vsub.f32 %v4700_v33, %v1511_v2  ;;  %1690 = vadd.xlane.f32.xlu1 %v1689_v59  ;;  %v2323_v33 = vshra.s32 %v5248_v62, 16  ;;  %v1662_v21 = vsel %vm1427_vm2, %v3999_v3, 0.0  ;;  %v5275_v3 = vpop.xlane.xlu0 %1507 }
 0x3b9   : > { %6763 = vst [vmem:[#allocation77_spill] sm:$0xff] %v5242_v16  ;;  %v1610_v26 = vmul.f32 1.442695, %v5242_v16 }
 0x3ba   : > { %v5252_v57 = vpop.xlane.xlu1 %1958  ;;  %2281 = vmin.xlane.f32.xlu0 %v5245_v47 }
 0x3bb   : > { %4002 = vpow2.f32 %v1610_v26  ;;  %v5272_v26 = vcvt.s32.f32 %v2323_v33  ;;  %v2024_v33 = vsel %vm1992_vm9, %v4926_v42, 8  ;;  %vm1999_vm14 = vcmp.eq.f32.partialorder %v4861_v10, %v5252_v57  ;;  %v6778_v10 = vld [vmem:[#allocation32_spill] sm:$0xff] }
 0x3bc   : > { %4004 = vpow2.f32 %v1588_v49  ;;  %v5270_v49 = vsub.f32 %v4627_v31, %v5122_v25 }
 0x3bd   : > { %v4001_v14 = vpop.eup %4000 }
 0x3be   : > { %v1517_v2 = vpop.xlane.xlu1 %1516  ;;  %1663 = vadd.xlane.f32.xlu0 %v1662_v21  ;;  %v1695_v59 = vsel %vm1427_vm2, %v4001_v14, 0.0  ;;  %6765 = vst [vmem:[#allocation79_spill] sm:$0xff] %v5270_v49  ;;  %v2025_v14 = vsel %vm1993_vm8, %v4926_v42, 8  ;;  %v1592_v31 = vmul.f32 1.442695, %v5270_v49 }
 0x3bf   : > { %v5266_v16 = vsub.f32 %v4719_v61, %v1517_v2  ;;  %1696 = vadd.xlane.f32.xlu1 %v1695_v59  ;;  %v5285_v61 = vcvt.s32.f32 %v2308_v22  ;;  %v5288_v25 = vsel %vm1427_vm2, %v2025_v14, 2147483647  ;;  %v5300_v22 = vsel %vm1427_vm2, %v2024_v33, 2147483647 }
 0x3c0   : > { %v2353_v41 = vshra.s32 %v5288_v25, 16 }
 0x3c1   : > { %6764 = vst [vmem:[#allocation78_spill] sm:$0xff] %v5266_v16  ;;  %v1614_v21 = vmul.f32 1.442695, %v5266_v16  ;;  %v5293_v16 = vpop.xlane.xlu0 %1955 }
 0x3c2   : > { %v5279_v44 = vpop.xlane.xlu1 %1964  ;;  %2326 = vmin.xlane.f32.xlu0 %v5272_v26  ;;  %vm1998_vm0 = vcmp.eq.f32.partialorder %v6778_v10, %v5293_v16  ;;  %v2082_v16 = vand.u32 65535, %v4961_v32  ;;  %v6779_v10 = vld [vmem:[#allocation37_spill] sm:$0xff]  ;;  %v6781_v32 = vld [vmem:[#allocation12_spill] sm:$0xff] }
 0x3c3   : > { %4006 = vpow2.f32 %v1614_v21  ;;  %vm2001_vm3 = vcmp.eq.f32.partialorder %v6779_v10, %v5279_v44  ;;  %v6784_v44 = vld [vmem:[#allocation36_spill] sm:$0xff] }
 0x3c4   : > { %4008 = vpow2.f32 %v1592_v31  ;;  %v2338_v31 = vshra.s32 %v5300_v22, 16 }
 0x3c5   : > { %v4003_v5 = vpop.eup %4002  ;;  %v5313_v33 = vpop.xlane.xlu0 %1513 }
 0x3c6   : > { %v4005_v0 = vpop.eup %4004  ;;  %v1523_v2 = vpop.xlane.xlu1 %1522  ;;  %2311 = vmin.xlane.f32.xlu0 %v5285_v61  ;;  %v1701_v59 = vsel %vm1427_vm2, %v4003_v5, 0.0  ;;  %v6767_v5 = vld [vmem:[#allocation7_spill] sm:$0xff] }
 0x3c7   : > { %v5296_v48 = vsub.f32 %v4734_v24, %v1523_v2  ;;  %1702 = vadd.xlane.f32.xlu1 %v1701_v59  ;;  %v1668_v14 = vsel %vm1427_vm2, %v4005_v0, 0.0  ;;  %v5308_v24 = vsub.f32 %v6767_v5, %v5153_v40  ;;  %v5310_v2 = vcvt.s32.f32 %v2353_v41 }
 0x3c8   : > { %v5321_v40 = vcvt.s32.f32 %v2338_v31 }
 0x3c9   : > { %6766 = vst [vmem:[#allocation80_spill] sm:$0xff] %v5296_v48  ;;  %v1618_v21 = vmul.f32 1.442695, %v5296_v48  ;;  %6768 = vst [vmem:[#allocation7_spill] sm:$0xff] %v5308_v24  ;;  %v2027_v48 = vsel %vm1995_vm10, %v4926_v42, 8  ;;  %v5328_v5 = vpop.xlane.xlu0 %1961 }
 0x3ca   : > { %1669 = vadd.xlane.f32.xlu0 %v1668_v14  ;;  %v1596_v29 = vmul.f32 1.442695, %v5308_v24  ;;  %v5324_v41 = vsel %vm1427_vm2, %v2027_v48, 2147483647  ;;  %v2026_v14 = vsel %vm1994_vm11, %v4926_v42, 8  ;;  %vm2000_vm5 = vcmp.eq.f32.partialorder %v6784_v44, %v5328_v5  ;;  %v6786_v44 = vld [vmem:[#allocation13_spill] sm:$0xff] }
 0x3cb   : > { %4010 = vpow2.f32 %v1618_v21  ;;  %6770 = vst [vmem:[#allocation25_spill] sm:$0xff] %v5324_v41  ;;  %v5332_v23 = vsel %vm1427_vm2, %v2026_v14, 2147483647  ;;  %v2029_v14 = vsel %vm1997_vm12, %v4926_v42, 8 }
 0x3cc   : > { %4012 = vpow2.f32 %v1596_v29  ;;  %v2368_v24 = vshra.s32 %v5332_v23, 16 }
 0x3cd   : > { %v4007_v59 = vpop.eup %4006 }
 0x3ce   : > { %2356 = vmin.xlane.f32.xlu0 %v5310_v2  ;;  %v1707_v0 = vsel %vm1427_vm2, %v4007_v59, 0.0  ;;  %v4009_v21 = vpop.eup %4008  ;;  %v2383_v59 = vshra.s32 %v5324_v41, 16  ;;  %v5345_v41 = vpop.xlane.xlu0 %1519  ;;  %v5352_v8 = vcvt.s32.f32 %v2368_v24 }
 0x3cf   : > { %1708 = vadd.xlane.f32.xlu1 %v1707_v0  ;;  %v1674_v31 = vsel %vm1427_vm2, %v4009_v21, 0.0  ;;  %v6771_v0 = vld [vmem:[#allocation8_spill] sm:$0xff] }
 0x3d0   : > { %v5340_v36 = vsub.f32 %v6771_v0, %v5194_v19  ;;  %v5342_v29 = vcvt.s32.f32 %v2383_v59  ;;  %v5355_v19 = vsel %vm1427_vm2, %v2029_v14, 2147483647 }
 0x3d1   : > { %v2413_v0 = vshra.s32 %v5355_v19, 16 }
 0x3d2   : > { %2341 = vmin.xlane.f32.xlu0 %v5321_v40  ;;  %6772 = vst [vmem:[#allocation8_spill] sm:$0xff] %v5340_v36  ;;  %v1600_v46 = vmul.f32 1.442695, %v5340_v36  ;;  %v6776_v36 = vld [vmem:[#allocation10_spill] sm:$0xff] }
 0x3d4   : > { %4014 = vpow2.f32 %v1600_v46 }
 0x3d5   : > { %v4011_v49 = vpop.eup %4010 }
 0x3d6   : > { %1675 = vadd.xlane.f32.xlu0 %v1674_v31  ;;  %v1713_v48 = vsel %vm1427_vm2, %v4011_v49, 0.0  ;;  %v6773_v49 = vld [vmem:[#allocation28_spill] sm:$0xff]  ;;  %v4013_v21 = vpop.eup %4012  ;;  %v2052_v31 = vand.u32 65535, %v4932_v1  ;;  %v5373_v1 = vsub.f32 %v6776_v36, %v5234_v43 }
 0x3d7   : > { %1714 = vadd.xlane.f32.xlu1 %v1713_v48  ;;  %vm1996_vm13 = vcmp.eq.f32.partialorder %v6773_v49, %v5255_v56  ;;  %6774 = vst [vmem:[#allocation28_spill] sm:$0xff] %v5352_v8  ;;  %v5360_v48 = vpop.xlane.xlu0 %1967  ;;  %v1680_v24 = vsel %vm1427_vm2, %v4013_v21, 0.0  ;;  %v2037_v21 = vand.u32 65535, %v4948_v60 }
 0x3d8   : > { %v2028_v59 = vsel %vm1996_vm13, %v4926_v42, 8  ;;  %v2054_v49 = vcvt.s32.f32 %v2052_v31  ;;  %6777 = vst [vmem:[#allocation10_spill] sm:$0xff] %v5373_v1  ;;  %v1604_v43 = vmul.f32 1.442695, %v5373_v1  ;;  %v6790_v1 = vld [vmem:[#allocation58_spill] sm:$0xff] }
 0x3d9   : > { %v5364_v56 = vsel %vm1427_vm2, %v2028_v59, 2147483647  ;;  %v2039_v31 = vcvt.s32.f32 %v2037_v21 }
 0x3da   : > { %2386 = vmin.xlane.f32.xlu0 %v5342_v29  ;;  %v2398_v46 = vshra.s32 %v5364_v56, 16  ;;  %4016 = vpow2.f32 %v1604_v43  ;;  %v5410_v43 = vsub.f32 %v6781_v32, %v5275_v3 }
 0x3dc   : > { %v5386_v57 = vcvt.s32.f32 %v2398_v46  ;;  %6782 = vst [vmem:[#allocation37_spill] sm:$0xff] %v5410_v43 }
 0x3de   : > { %2371 = vmin.xlane.f32.xlu0 %v5352_v8  ;;  %v5375_v8 = vcvt.s32.f32 %v2413_v0  ;;  %v4015_v60 = vpop.eup %4014  ;;  %v2030_v0 = vsel %vm1998_vm0, %v4926_v42, 8 }
 0x3df   : > { %v1686_v21 = vsel %vm1427_vm2, %v4015_v60, 0.0 }
 0x3e2   : > { %1681 = vadd.xlane.f32.xlu0 %v1680_v24  ;;  %v2031_v24 = vsel %vm1999_vm14, %v4926_v42, 8 }
 0x3e3   : > { %v5369_v14 = vpop.xlane.xlu0 %2056  ;;  %v5389_v36 = vsel %vm1427_vm2, %v2031_v24, 2147483647  ;;  %v2067_v24 = vand.u32 65535, %v4964_v35  ;;  %v2033_v35 = vsel %vm2001_vm3, %v4926_v42, 8 }
 0x3e4   : > { %6775 = vst [vmem:[#allocation81_spill] sm:$0xff] %v5369_v14  ;;  %vm2058_vm15 = vcmp.eq.f32.partialorder %v4941_v18, %v5369_v14  ;;  %v2443_v46 = vshra.s32 %v5389_v36, 16  ;;  %v5429_v10 = vsel %vm1427_vm2, %v2033_v35, 2147483647  ;;  %v4017_v32 = vpop.eup %4016 }
 0x3e5   : > { %v2059_v59 = vsel %vm2058_vm15, %v2054_v49, inf  ;;  %v2069_v3 = vcvt.s32.f32 %v2067_v24  ;;  %6785 = vst [vmem:[#allocation12_spill] sm:$0xff] %v5429_v10  ;;  %v2112_v24 = vand.u32 65535, %v4986_v58  ;;  %v1692_v35 = vsel %vm1427_vm2, %v4017_v32, 0.0 }
 0x3e6   : > { %2416 = vmin.xlane.f32.xlu0 %v5375_v8  ;;  %2060 = vmin.xlane.f32.xlu1 %v2059_v59  ;;  %v5400_v59 = vsel %vm1427_vm2, %v2030_v0, 2147483647  ;;  %v6783_v0 = vld [vmem:[#allocation55_spill] sm:$0xff]  ;;  %v2097_v58 = vand.u32 65535, %v4995_v4  ;;  %v6793_v4 = vld [vmem:[#allocation40_spill] sm:$0xff] }
 0x3e7   : > { %v2428_v60 = vshra.s32 %v5400_v59, 16  ;;  %vm2002_vm9 = vcmp.eq.f32.partialorder %v6793_v4, %v5360_v48 }
 0x3e9   : > { %v5391_v18 = vpop.xlane.xlu0 %2041 }
 0x3ea   : > { %2401 = vmin.xlane.f32.xlu0 %v5386_v57  ;;  %vm2043_vm1 = vcmp.eq.f32.partialorder %v4954_v28, %v5391_v18  ;;  %v2084_v28 = vcvt.s32.f32 %v2082_v16 }
 0x3eb   : > { %v2044_v49 = vsel %vm2043_vm1, %v2039_v31, inf  ;;  %v5412_v31 = vcvt.s32.f32 %v2443_v46  ;;  %v1608_v46 = vmul.f32 1.442695, %v5410_v43  ;;  %v2114_v43 = vcvt.s32.f32 %v2112_v24 }
 0x3ec   : > { %2045 = vmin.xlane.f32.xlu1 %v2044_v49 }
 0x3ed   : > { %4018 = vpow2.f32 %v1608_v46 }
 0x3ee   : > { %1687 = vadd.xlane.f32.xlu0 %v1686_v21  ;;  %v5424_v21 = vcvt.s32.f32 %v2428_v60  ;;  %v1971_v60 = vpop.xlane.xlu1 %1970 }
 0x3ef   : > { %v5406_v14 = vpop.xlane.xlu0 %2086 }
 0x3f0   : > { %6780 = vst [vmem:[#allocation32_spill] sm:$0xff] %v5406_v14  ;;  %vm2088_vm4 = vcmp.eq.f32.partialorder %v6783_v0, %v5406_v14  ;;  %v2032_v0 = vsel %vm2000_vm5, %v4926_v42, 8  ;;  %v6788_v14 = vld [vmem:[#allocation42_spill] sm:$0xff] }
 0x3f1   : > { %v2089_v49 = vsel %vm2088_vm4, %v2084_v28, inf  ;;  %vm2003_vm7 = vcmp.eq.f32.partialorder %v6788_v14, %v1971_v60  ;;  %v6791_v14 = vld [vmem:[#allocation15_spill] sm:$0xff] }
 0x3f2   : > { %2446 = vmin.xlane.f32.xlu0 %v5412_v31  ;;  %2090 = vmin.xlane.f32.xlu1 %v2089_v49  ;;  %v2473_v49 = vshra.s32 %v5429_v10, 16  ;;  %v1625_v32 = vpop.xlane.xlu1 %1624  ;;  %v2035_v10 = vsel %vm2003_vm7, %v4926_v42, 8  ;;  %v5459_v24 = vsub.f32 %v6791_v14, %v5345_v41  ;;  %v2034_v14 = vsel %vm2002_vm9, %v4926_v42, 8 }
 0x3f3   : > { %v5421_v16 = vpop.xlane.xlu0 %2071  ;;  %4020 = vlog2.f32 %v1625_v32 }
 0x3f4   : > { %vm2073_vm6 = vcmp.eq.f32.partialorder %v4983_v17, %v5421_v16  ;;  %v5438_v17 = vsel %vm1427_vm2, %v2032_v0, 2147483647  ;;  %v5449_v46 = vcvt.s32.f32 %v2473_v49  ;;  %6792 = vst [vmem:[#allocation13_spill] sm:$0xff] %v5459_v24  ;;  %v1616_v48 = vmul.f32 1.442695, %v5459_v24 }
 0x3f5   : > { %v2074_v28 = vsel %vm2073_vm6, %v2069_v3, inf  ;;  %v5443_v3 = vsub.f32 %v6786_v44, %v5313_v33  ;;  %v2458_v0 = vshra.s32 %v5438_v17, 16 }
 0x3f6   : > { %2431 = vmin.xlane.f32.xlu0 %v5424_v21  ;;  %2075 = vmin.xlane.f32.xlu1 %v2074_v28  ;;  %v5472_v44 = vpop.xlane.xlu1 %1630 }
 0x3f7   : > { %v5433_v5 = vpop.xlane.xlu0 %1621  ;;  %6787 = vst [vmem:[#allocation55_spill] sm:$0xff] %v5443_v3  ;;  %v1612_v33 = vmul.f32 1.442695, %v5443_v3  ;;  %v5465_v49 = vcvt.s32.f32 %v2458_v0  ;;  %v4019_v41 = vpop.eup %4018  ;;  %v6794_v0 = vld [vmem:[#allocation60_spill] sm:$0xff] }
 0x3f8   : > { %v2142_v32 = vand.u32 65535, %v6794_v0 }
 0x3f9   : > { %4022 = vpow2.f32 %v1612_v33  ;;  %v2127_v33 = vand.u32 65535, %v5028_v53 }
 0x3fa   : > { %1693 = vadd.xlane.f32.xlu0 %v1692_v35 }
 0x3fb   : > { %v5446_v28 = vpop.xlane.xlu0 %2116 }
 0x3fc   : > { %6789 = vst [vmem:[#allocation36_spill] sm:$0xff] %v5446_v28  ;;  %vm2118_vm8 = vcmp.eq.f32.partialorder %v6790_v1, %v5446_v28  ;;  %v2099_v1 = vcvt.s32.f32 %v2097_v58  ;;  %v1637_v4 = vpop.xlane.xlu1 %1636 }
 0x3fd   : > { %v2119_v35 = vsel %vm2118_vm8, %v2114_v43, inf  ;;  %v5470_v43 = vsel %vm1427_vm2, %v2035_v10, 2147483647  ;;  %v5480_v10 = vsel %vm1427_vm2, %v2034_v14, 2147483647  ;;  %v4021_v0 = vpop.eup %4020 }
 0x3fe   : > { %2476 = vmin.xlane.f32.xlu0 %v5449_v46  ;;  %2120 = vmin.xlane.f32.xlu1 %v2119_v35  ;;  %6795 = vst [vmem:[#allocation42_spill] sm:$0xff] %v5480_v10 }
 0x3ff   : > { %v5463_v60 = vpop.xlane.xlu0 %2101 }
 0x400   : > { %vm2103_vm10 = vcmp.eq.f32.partialorder %v5016_v34, %v5463_v60  ;;  %v2503_v34 = vshra.s32 %v5470_v43, 16 }
 0x401   : > { %v2104_v35 = vsel %vm2103_vm10, %v2099_v1, inf  ;;  %v1698_v1 = vsel %vm1427_vm2, %v4019_v41, 0.0 }
 0x402   : > { %2461 = vmin.xlane.f32.xlu0 %v5465_v49  ;;  %2105 = vmin.xlane.f32.xlu1 %v2104_v35  ;;  %v2144_v35 = vcvt.s32.f32 %v2142_v32  ;;  %v5486_v24 = vcvt.s32.f32 %v2503_v34  ;;  %v1719_v34 = vmul.f32 0.6931472, %v4021_v0 }
 0x403   : > { %v1628_v58 = vpop.xlane.xlu0 %1627  ;;  %v4023_v53 = vpop.eup %4022 }
 0x404   : > { %4024 = vlog2.f32 %v1628_v58  ;;  %6797 = vst [vmem:[#allocation15_spill] sm:$0xff] %v5486_v24  ;;  %v2488_v58 = vshra.s32 %v5480_v10, 16  ;;  %v1704_v3 = vsel %vm1427_vm2, %v4023_v53, 0.0  ;;  %v6803_v53 = vld [vmem:[#allocation65_spill] sm:$0xff] }
 0x405   : > { %4026 = vpow2.f32 %v1616_v48  ;;  %v2129_v48 = vcvt.s32.f32 %v2127_v33  ;;  %v6800_v33 = vld [vmem:[#allocation5_spill] sm:$0xff] }
 0x406   : > { %1699 = vadd.xlane.f32.xlu0 %v1698_v1  ;;  %4028 = vlog2.f32 %v1637_v4  ;;  %v1643_v1 = vpop.xlane.xlu1 %1642  ;;  %v5494_v32 = vcvt.s32.f32 %v2488_v58  ;;  %vm2869_vm13 = vcmp.eq.s32.totalorder %v4926_v42, %v6800_v33 }
 0x407   : > { %v5483_v28 = vpop.xlane.xlu0 %2146  ;;  %4030 = vlog2.f32 %v1643_v1  ;;  %v2157_v1 = vand.u32 65535, %v5062_v27 }
 0x408   : > { %6796 = vst [vmem:[#allocation58_spill] sm:$0xff] %v5483_v28  ;;  %vm2148_vm11 = vcmp.eq.f32.partialorder %v5039_v45, %v5483_v28  ;;  %6799 = vst [vmem:[#allocation60_spill] sm:$0xff] %v5494_v32 }
 0x409   : > { %v2149_v14 = vsel %vm2148_vm11, %v2144_v35, inf }
 0x40a   : > { %2506 = vmin.xlane.f32.xlu0 %v5486_v24  ;;  %2150 = vmin.xlane.f32.xlu1 %v2149_v14  ;;  %v2172_v14 = vand.u32 65535, %v5052_v7  ;;  %v6804_v24 = vld [vmem:[#allocation54_spill] sm:$0xff] }
 0x40b   : > { %v5492_v41 = vpop.xlane.xlu0 %2131 }
 0x40c   : > { %6798 = vst [vmem:[#allocation40_spill] sm:$0xff] %v5492_v41  ;;  %vm2133_vm12 = vcmp.eq.f32.partialorder %v5049_v55, %v5492_v41  ;;  %v6801_v55 = vld [vmem:[#allocation50_spill] sm:$0xff]  ;;  %v1649_v33 = vpop.xlane.xlu1 %1648 }
 0x40d   : > { %v2134_v4 = vsel %vm2133_vm12, %v2129_v48, inf  ;;  %v5504_v10 = vsub.f32 %v6801_v55, %v1719_v34  ;;  %v6805_v41 = vld [vmem:[#allocation14_spill] sm:$0xff] }
 0x40e   : > { %v4025_v45 = vpop.eup %4024  ;;  %2491 = vmin.xlane.f32.xlu0 %v5494_v32  ;;  %2135 = vmin.xlane.f32.xlu1 %v2134_v4  ;;  %v2174_v4 = vcvt.s32.f32 %v2172_v14  ;;  %v6666_v32 = vmov 0.0   ;;  %vm2873_vm0 = vcmp.eq.s32.totalorder %v4926_v42, %v6805_v41  ;;  %v2202_v41 = vand.u32 65535, %v5089_v6 }
 0x40f   : > { %v1634_v35 = vpop.xlane.xlu0 %1633  ;;  %v4027_v28 = vpop.eup %4026  ;;  %v1721_v58 = vmul.f32 0.6931472, %v4025_v45  ;;  %v3523_v7 = vsel %vm2869_vm13, 1.0, %v6666_v32 }
 0x410   : > { %4032 = vlog2.f32 %v1634_v35  ;;  %v4029_v0 = vpop.eup %4028  ;;  %v6802_v35 = vld [vmem:[#allocation6_spill] sm:$0xff]  ;;  %v1710_v45 = vsel %vm1427_vm2, %v4027_v28, 0.0  ;;  %v2204_v6 = vcvt.s32.f32 %v2202_v41 }
 0x411   : > { %vm2870_vm14 = vcmp.eq.s32.totalorder %v4926_v42, %v6802_v35  ;;  %v1727_v34 = vmul.f32 0.6931472, %v4029_v0  ;;  %v5517_v14 = vsub.f32 %v6804_v24, %v1721_v58  ;;  %4034 = vlog2.f32 %v5433_v5  ;;  %v4031_v0 = vpop.eup %4030 }
 0x412   : > { %1705 = vadd.xlane.f32.xlu0 %v1704_v3  ;;  %v2965_v3 = vmul.f32 %v3523_v7, %v5504_v10  ;;  %v2159_v35 = vcvt.s32.f32 %v2157_v1  ;;  %v3524_v28 = vsel %vm2870_vm14, 1.0, %v6666_v32  ;;  %4036 = vlog2.f32 %v1649_v33  ;;  %v6806_v7 = vld [vmem:[#allocation53_spill] sm:$0xff]  ;;  %v6808_v33 = vld [vmem:[#allocation11_spill] sm:$0xff] }
 0x413   : > { %v5506_v48 = vpop.xlane.xlu0 %2176  ;;  %v5530_v5 = vsub.f32 %v6806_v7, %v1727_v34  ;;  %vm2872_vm3 = vcmp.eq.s32.totalorder %v4926_v42, %v6808_v33  ;;  %v6809_v34 = vld [vmem:[#allocation57_spill] sm:$0xff] }
 0x414   : > { %vm2178_vm15 = vcmp.eq.f32.partialorder %v6803_v53, %v5506_v48  ;;  %v2999_v24 = vsel %vm1427_vm2, %v2965_v3, 0.0  ;;  %v3526_v7 = vsel %vm2872_vm3, 1.0, %v6666_v32 }
 0x415   : > { %v2179_v55 = vsel %vm2178_vm15, %v2174_v4, inf  ;;  %v2966_v4 = vmul.f32 %v3524_v28, %v5517_v14  ;;  %6807 = vst [vmem:[#allocation5_spill] sm:$0xff] %v5530_v5 }
 0x416   : > { %1711 = vadd.xlane.f32.xlu0 %v1710_v45  ;;  %2180 = vmin.xlane.f32.xlu1 %v2179_v55  ;;  %v1731_v55 = vmul.f32 0.6931472, %v4031_v0  ;;  %v6811_v0 = vld [vmem:[#allocation69_spill] sm:$0xff] }
 0x417   : > { %v5520_v27 = vpop.xlane.xlu0 %2161  ;;  %v3002_v3 = vsel %vm1427_vm2, %v2966_v4, 0.0 }
 0x418   : > { %vm2163_vm1 = vcmp.eq.f32.partialorder %v5086_v15, %v5520_v27  ;;  %v3527_v15 = vsel %vm2873_vm0, 1.0, %v6666_v32 }
 0x419   : > { %v2164_v58 = vsel %vm2163_vm1, %v2159_v35, inf  ;;  %v2969_v35 = vmul.f32 %v3527_v15, %v5530_v5  ;;  %v6812_v15 = vld [vmem:[#allocation56_spill] sm:$0xff] }
 0x41a   : > { %v4033_v45 = vpop.eup %4032  ;;  %3000 = vadd.xlane.f32.xlu0 %v2999_v24  ;;  %2165 = vmin.xlane.f32.xlu1 %v2164_v58  ;;  %v2187_v58 = vand.u32 65535, %v5098_v11 }
 0x41b   : > { %v1725_v1 = vmul.f32 0.6931472, %v4033_v45  ;;  %v1640_v53 = vpop.xlane.xlu0 %1639  ;;  %v6810_v45 = vld [vmem:[#allocation18_spill] sm:$0xff]  ;;  %v4035_v4 = vpop.eup %4034 }
 0x41c   : > { %4038 = vlog2.f32 %v1640_v53  ;;  %vm2875_vm4 = vcmp.eq.s32.totalorder %v4926_v42, %v6810_v45  ;;  %v1655_v53 = vpop.xlane.xlu1 %1654  ;;  %v4037_v41 = vpop.eup %4036  ;;  %v1717_v5 = vmul.f32 0.6931472, %v4035_v4  ;;  %v2232_v4 = vand.u32 65535, %v5127_v37 }
 0x41d   : > { %v5539_v28 = vsub.f32 %v6809_v34, %v1725_v1  ;;  %4040 = vlog2.f32 %v5472_v44  ;;  %v3011_v1 = vsel %vm1427_vm2, %v2969_v35, 0.0  ;;  %v2189_v34 = vcvt.s32.f32 %v2187_v58 }
 0x41e   : > { %3003 = vadd.xlane.f32.xlu0 %v3002_v3  ;;  %v5553_v3 = vsub.f32 %v6812_v15, %v1731_v55  ;;  %v3529_v45 = vsel %vm2875_vm4, 1.0, %v6666_v32  ;;  %4042 = vlog2.f32 %v1655_v53  ;;  %v1735_v35 = vmul.f32 0.6931472, %v4037_v41  ;;  %v6815_v53 = vld [vmem:[#allocation17_spill] sm:$0xff]  ;;  %v6817_v41 = vld [vmem:[#allocation62_spill] sm:$0xff] }
 0x41f   : > { %v5542_v24 = vpop.xlane.xlu0 %2206  ;;  %v2968_v44 = vmul.f32 %v3526_v7, %v5539_v28  ;;  %vm2868_vm8 = vcmp.eq.s32.totalorder %v4926_v42, %v6815_v53 }
 0x420   : > { %vm2208_vm5 = vcmp.eq.f32.partialorder %v6811_v0, %v5542_v24  ;;  %6813 = vst [vmem:[#allocation50_spill] sm:$0xff] %v5553_v3  ;;  %v2971_v55 = vmul.f32 %v3529_v45, %v5553_v3  ;;  %v6818_v45 = vld [vmem:[#allocation59_spill] sm:$0xff] }
 0x421   : > { %v2209_v33 = vsel %vm2208_vm5, %v2204_v6, inf  ;;  %v3008_v6 = vsel %vm1427_vm2, %v2968_v44, 0.0 }
 0x422   : > { %3012 = vadd.xlane.f32.xlu0 %v3011_v1  ;;  %2210 = vmin.xlane.f32.xlu1 %v2209_v33  ;;  %v6814_v1 = vld [vmem:[#allocation16_spill] sm:$0xff]  ;;  %v3017_v15 = vsel %vm1427_vm2, %v2971_v55, 0.0 }
 0x423   : > { %v5555_v11 = vpop.xlane.xlu0 %2191  ;;  %vm2874_vm7 = vcmp.eq.s32.totalorder %v4926_v42, %v6814_v1 }
 0x424   : > { %vm2193_vm6 = vcmp.eq.f32.partialorder %v5124_v20, %v5555_v11  ;;  %v6816_v20 = vld [vmem:[#allocation19_spill] sm:$0xff]  ;;  %v3528_v37 = vsel %vm2874_vm7, 1.0, %v6666_v32 }
 0x425   : > { %v2194_v7 = vsel %vm2193_vm6, %v2189_v34, inf  ;;  %vm2877_vm9 = vcmp.eq.s32.totalorder %v4926_v42, %v6816_v20  ;;  %v3522_v20 = vsel %vm2868_vm8, 1.0, %v6666_v32 }
 0x426   : > { %v4039_v0 = vpop.eup %4038  ;;  %3009 = vadd.xlane.f32.xlu0 %v3008_v6  ;;  %2195 = vmin.xlane.f32.xlu1 %v2194_v7  ;;  %v5574_v6 = vsub.f32 %v6818_v45, %v1735_v35  ;;  %v6820_v7 = vld [vmem:[#allocation52_spill] sm:$0xff]  ;;  %v3531_v55 = vsel %vm2877_vm9, 1.0, %v6666_v32  ;;  %v1661_v35 = vpop.xlane.xlu1 %1660  ;;  %v6821_v32 = vld [vmem:[#allocation9_spill] sm:$0xff] }
 0x427   : > { %v1729_v58 = vmul.f32 0.6931472, %v4039_v0  ;;  %v1646_v33 = vpop.xlane.xlu0 %1645  ;;  %v4041_v44 = vpop.eup %4040  ;;  %v5577_v0 = vsub.f32 %v6820_v7, %v1717_v5  ;;  %vm2871_vm11 = vcmp.eq.s32.totalorder %v4926_v42, %v6821_v32 }
 0x428   : > { %4044 = vlog2.f32 %v1646_v33  ;;  %6819 = vst [vmem:[#allocation6_spill] sm:$0xff] %v5574_v6  ;;  %v2234_v33 = vcvt.s32.f32 %v2232_v4  ;;  %v2973_v45 = vmul.f32 %v3531_v55, %v5574_v6  ;;  %v4043_v7 = vpop.eup %4042  ;;  %v2262_v6 = vand.u32 65535, %v5167_v39 }
 0x429   : > { %v5571_v34 = vsub.f32 %v6817_v41, %v1729_v58  ;;  %v1723_v58 = vmul.f32 0.6931472, %v4041_v44  ;;  %4046 = vlog2.f32 %v1661_v35  ;;  %v2247_v39 = vand.u32 65535, %v5178_v13  ;;  %v6829_v13 = vld [vmem:[#allocation23_spill] sm:$0xff] }
 0x42a   : > { %3018 = vadd.xlane.f32.xlu0 %v3017_v15  ;;  %v2964_v15 = vmul.f32 %v3522_v20, %v5577_v0  ;;  %v3023_v44 = vsel %vm1427_vm2, %v2973_v45, 0.0  ;;  %v6825_v45 = vld [vmem:[#allocation21_spill] sm:$0xff]  ;;  %vm2881_vm3 = vcmp.eq.s32.totalorder %v4926_v42, %v6829_v13 }
 0x42b   : > { %v5580_v1 = vpop.xlane.xlu0 %2236  ;;  %v2970_v53 = vmul.f32 %v3528_v37, %v5571_v34  ;;  %v2217_v37 = vand.u32 65535, %v5139_v50  ;;  %vm2879_vm14 = vcmp.eq.s32.totalorder %v4926_v42, %v6825_v45 }
 0x42c   : > { %vm2238_vm10 = vcmp.eq.f32.partialorder %v5150_v52, %v5580_v1  ;;  %v1739_v52 = vmul.f32 0.6931472, %v4043_v7 }
 0x42d   : > { %v3014_v5 = vsel %vm1427_vm2, %v2970_v53, 0.0  ;;  %v2239_v41 = vsel %vm2238_vm10, %v2234_v33, inf  ;;  %v2996_v53 = vsel %vm1427_vm2, %v2964_v15, 0.0  ;;  %v6822_v33 = vld [vmem:[#allocation51_spill] sm:$0xff]  ;;  %v2219_v35 = vcvt.s32.f32 %v2217_v37  ;;  %v6826_v15 = vld [vmem:[#allocation64_spill] sm:$0xff] }
 0x42e   : > { %3015 = vadd.xlane.f32.xlu0 %v3014_v5  ;;  %2240 = vmin.xlane.f32.xlu1 %v2239_v41  ;;  %v5598_v55 = vsub.f32 %v6822_v33, %v1723_v58  ;;  %v6823_v5 = vld [vmem:[#allocation20_spill] sm:$0xff]  ;;  %v6824_v41 = vmov 0.0  }
 0x42f   : > { %v5590_v4 = vpop.xlane.xlu0 %2221  ;;  %vm2876_vm13 = vcmp.eq.s32.totalorder %v4926_v42, %v6823_v5  ;;  %v3525_v7 = vsel %vm2871_vm11, 1.0, %v6824_v41 }
 0x430   : > { %vm2223_vm12 = vcmp.eq.f32.partialorder %v5164_v38, %v5590_v4  ;;  %v3530_v5 = vsel %vm2876_vm13, 1.0, %v6824_v41 }
 0x431   : > { %v2224_v58 = vsel %vm2223_vm12, %v2219_v35, inf  ;;  %v1667_v35 = vpop.xlane.xlu1 %1666 }
 0x432   : > { %v4045_v20 = vpop.eup %4044  ;;  %3024 = vadd.xlane.f32.xlu0 %v3023_v44  ;;  %2997 = vadd.xlane.f32.xlu1 %v2996_v53  ;;  %v2967_v44 = vmul.f32 %v3525_v7, %v5598_v55  ;;  %v6827_v53 = vld [vmem:[#allocation61_spill] sm:$0xff] }
 0x433   : > { %v1733_v50 = vmul.f32 0.6931472, %v4045_v20  ;;  %v1652_v32 = vpop.xlane.xlu0 %1651  ;;  %v5612_v38 = vsub.f32 %v6827_v53, %v1739_v52  ;;  %v4047_v52 = vpop.eup %4046 }
 0x434   : > { %4048 = vlog2.f32 %v1652_v32  ;;  %v3533_v32 = vsel %vm2879_vm14, 1.0, %v6824_v41  ;;  %v3005_v45 = vsel %vm1427_vm2, %v2967_v44, 0.0  ;;  %v1743_v53 = vmul.f32 0.6931472, %v4047_v52  ;;  %v6828_v44 = vld [vmem:[#allocation22_spill] sm:$0xff]  ;;  %v6831_v52 = vld [vmem:[#allocation63_spill] sm:$0xff] }
 0x435   : > { %v5608_v33 = vsub.f32 %v6826_v15, %v1733_v50  ;;  %v2975_v7 = vmul.f32 %v3533_v32, %v5612_v38  ;;  %v2264_v15 = vcvt.s32.f32 %v2262_v6  ;;  %4050 = vlog2.f32 %v1667_v35 }
 0x436   : > { %2225 = vmin.xlane.f32.xlu1 %v2224_v58  ;;  %vm2878_vm1 = vcmp.eq.s32.totalorder %v4926_v42, %v6828_v44  ;;  %v2292_v6 = vand.u32 65535, %v5207_v63  ;;  %v2277_v63 = vand.u32 65535, %v5219_v9  ;;  %v1673_v44 = vpop.xlane.xlu1 %1672 }
 0x437   : > { %v5615_v20 = vpop.xlane.xlu0 %2266  ;;  %v2972_v37 = vmul.f32 %v3530_v5, %v5608_v33  ;;  %v3029_v5 = vsel %vm1427_vm2, %v2975_v7, 0.0 }
 0x438   : > { %vm2268_vm15 = vcmp.eq.f32.partialorder %v5191_v51, %v5615_v20 }
 0x439   : > { %v3020_v50 = vsel %vm1427_vm2, %v2972_v37, 0.0  ;;  %v2269_v37 = vsel %vm2268_vm15, %v2264_v15, inf  ;;  %v5640_v15 = vsub.f32 %v6831_v52, %v1743_v53 }
 0x43a   : > { %3021 = vadd.xlane.f32.xlu0 %v3020_v50  ;;  %3006 = vadd.xlane.f32.xlu1 %v3005_v45  ;;  %v2249_v50 = vcvt.s32.f32 %v2247_v39  ;;  %v6830_v45 = vld [vmem:[#allocation68_spill] sm:$0xff]  ;;  %v2294_v39 = vcvt.s32.f32 %v2292_v6  ;;  %v1679_v6 = vpop.xlane.xlu1 %1678 }
 0x43b   : > { %v5625_v58 = vpop.xlane.xlu0 %2251 }
 0x43c   : > { %vm2253_vm0 = vcmp.eq.f32.partialorder %v5204_v30, %v5625_v58  ;;  %v3532_v30 = vsel %vm2878_vm1, 1.0, %v6824_v41 }
 0x43d   : > { %v2254_v35 = vsel %vm2253_vm0, %v2249_v50, inf }
 0x43e   : > { %v4049_v3 = vpop.eup %4048  ;;  %3030 = vadd.xlane.f32.xlu0 %v3029_v5  ;;  %2270 = vmin.xlane.f32.xlu1 %v2269_v37  ;;  %v3535_v37 = vsel %vm2881_vm3, 1.0, %v6824_v41 }
 0x43f   : > { %v1737_v51 = vmul.f32 0.6931472, %v4049_v3  ;;  %v1658_v32 = vpop.xlane.xlu0 %1657  ;;  %v4051_v50 = vpop.eup %4050 }
 0x440   : > { %4052 = vlog2.f32 %v1658_v32  ;;  %v2977_v32 = vmul.f32 %v3535_v37, %v5640_v15  ;;  %v1747_v9 = vmul.f32 0.6931472, %v4051_v50  ;;  %v6833_v37 = vld [vmem:[#allocation26_spill] sm:$0xff] }
 0x441   : > { %v5637_v7 = vsub.f32 %v6830_v45, %v1737_v51  ;;  %4054 = vlog2.f32 %v1673_v44  ;;  %vm2883_vm7 = vcmp.eq.s32.totalorder %v4926_v42, %v6833_v37 }
 0x442   : > { %2255 = vmin.xlane.f32.xlu1 %v2254_v35  ;;  %v2279_v35 = vcvt.s32.f32 %v2277_v63  ;;  %v3035_v45 = vsel %vm1427_vm2, %v2977_v32, 0.0  ;;  %4056 = vlog2.f32 %v1679_v6  ;;  %v2322_v63 = vand.u32 65535, %v5248_v62 }
 0x443   : > { %v5643_v5 = vpop.xlane.xlu0 %2296  ;;  %v2974_v3 = vmul.f32 %v3532_v30, %v5637_v7  ;;  %v6832_v30 = vld [vmem:[#allocation24_spill] sm:$0xff]  ;;  %v3537_v62 = vsel %vm2883_vm7, 1.0, %v6824_v41 }
 0x444   : > { %vm2298_vm4 = vcmp.eq.f32.partialorder %v5231_v54, %v5643_v5  ;;  %vm2880_vm6 = vcmp.eq.s32.totalorder %v4926_v42, %v6832_v30  ;;  %v2324_v6 = vcvt.s32.f32 %v2322_v63 }
 0x445   : > { %v3026_v51 = vsel %vm1427_vm2, %v2974_v3, 0.0  ;;  %v2299_v53 = vsel %vm2298_vm4, %v2294_v39, inf  ;;  %v3534_v32 = vsel %vm2880_vm6, 1.0, %v6824_v41 }
 0x446   : > { %3027 = vadd.xlane.f32.xlu0 %v3026_v51  ;;  %2300 = vmin.xlane.f32.xlu1 %v2299_v53  ;;  %v6835_v51 = vld [vmem:[#allocation66_spill] sm:$0xff] }
 0x447   : > { %v5652_v13 = vpop.xlane.xlu0 %2281  ;;  %v5666_v53 = vsub.f32 %v6835_v51, %v1747_v9  ;;  %v6836_v51 = vld [vmem:[#allocation27_spill] sm:$0xff] }
 0x448   : > { %vm2283_vm5 = vcmp.eq.f32.partialorder %v5245_v47, %v5652_v13  ;;  %v6834_v47 = vld [vmem:[#allocation71_spill] sm:$0xff]  ;;  %vm2882_vm10 = vcmp.eq.s32.totalorder %v4926_v42, %v6836_v51 }
 0x449   : > { %v2284_v54 = vsel %vm2283_vm5, %v2279_v35, inf  ;;  %v2979_v9 = vmul.f32 %v3537_v62, %v5666_v53  ;;  %v6837_v62 = vld [vmem:[#allocation29_spill] sm:$0xff]  ;;  %v6841_v51 = vld [vmem:[#allocation31_spill] sm:$0xff] }
 0x44a   : > { %v4053_v52 = vpop.eup %4052  ;;  %3036 = vadd.xlane.f32.xlu0 %v3035_v45  ;;  %2285 = vmin.xlane.f32.xlu1 %v2284_v54  ;;  %v2307_v45 = vand.u32 65535, %v5259_v12  ;;  %vm2885_vm11 = vcmp.eq.s32.totalorder %v4926_v42, %v6837_v62  ;;  %vm2887_vm12 = vcmp.eq.s32.totalorder %v4926_v42, %v6841_v51  ;;  %v6844_v51 = vld [vmem:[#allocation25_spill] sm:$0xff] }
 0x44b   : > { %v1741_v3 = vmul.f32 0.6931472, %v4053_v52  ;;  %v1664_v39 = vpop.xlane.xlu0 %1663  ;;  %v4055_v30 = vpop.eup %4054  ;;  %v3041_v37 = vsel %vm1427_vm2, %v2979_v9, 0.0 }
 0x44c   : > { %4058 = vlog2.f32 %v1664_v39  ;;  %v2309_v39 = vcvt.s32.f32 %v2307_v45  ;;  %v4057_v12 = vpop.eup %4056  ;;  %v1751_v63 = vmul.f32 0.6931472, %v4055_v30  ;;  %v3536_v30 = vsel %vm2882_vm10, 1.0, %v6824_v41 }
 0x44d   : > { %v5663_v44 = vsub.f32 %v6834_v47, %v1741_v3  ;;  %v1755_v45 = vmul.f32 0.6931472, %v4057_v12  ;;  %v5704_v12 = vpop.xlane.xlu1 %1684 }
 0x44f   : > { %v5669_v50 = vpop.xlane.xlu0 %2326  ;;  %v2976_v35 = vmul.f32 %v3534_v32, %v5663_v44 }
 0x450   : > { %vm2328_vm8 = vcmp.eq.f32.partialorder %v5272_v26, %v5669_v50 }
 0x451   : > { %v3032_v54 = vsel %vm1427_vm2, %v2976_v35, 0.0  ;;  %v2329_v52 = vsel %vm2328_vm8, %v2324_v6, inf  ;;  %v2352_v6 = vand.u32 65535, %v5288_v25  ;;  %v3539_v25 = vsel %vm2885_vm11, 1.0, %v6824_v41 }
 0x452   : > { %3033 = vadd.xlane.f32.xlu0 %v3032_v54  ;;  %2330 = vmin.xlane.f32.xlu1 %v2329_v52  ;;  %v6839_v52 = vld [vmem:[#allocation67_spill] sm:$0xff] }
 0x453   : > { %v5678_v3 = vpop.xlane.xlu0 %2311  ;;  %v5692_v9 = vsub.f32 %v6839_v52, %v1751_v63 }
 0x454   : > { %vm2313_vm9 = vcmp.eq.f32.partialorder %v5285_v61, %v5678_v3  ;;  %v6838_v61 = vld [vmem:[#allocation74_spill] sm:$0xff] }
 0x455   : > { %v2314_v47 = vsel %vm2313_vm9, %v2309_v39, inf  ;;  %6840 = vst [vmem:[#allocation65_spill] sm:$0xff] %v5692_v9  ;;  %v2981_v62 = vmul.f32 %v3539_v25, %v5692_v9  ;;  %v2367_v9 = vand.u32 65535, %v5332_v23  ;;  %v2412_v23 = vand.u32 65535, %v5355_v19 }
 0x456   : > { %v4059_v26 = vpop.eup %4058  ;;  %3042 = vadd.xlane.f32.xlu0 %v3041_v37  ;;  %2315 = vmin.xlane.f32.xlu1 %v2314_v47  ;;  %v2354_v47 = vcvt.s32.f32 %v2352_v6 }
 0x457   : > { %v1745_v32 = vmul.f32 0.6931472, %v4059_v26  ;;  %v1670_v35 = vpop.xlane.xlu0 %1669  ;;  %v2337_v26 = vand.u32 65535, %v5300_v22 }
 0x458   : > { %4060 = vlog2.f32 %v1670_v35 }
 0x459   : > { %v5689_v54 = vsub.f32 %v6838_v61, %v1745_v32  ;;  %v6842_v61 = vld [vmem:[#allocation70_spill] sm:$0xff]  ;;  %v2339_v6 = vcvt.s32.f32 %v2337_v26 }
 0x45a   : > { %v5709_v52 = vsub.f32 %v6842_v61, %v1755_v45 }
 0x45b   : > { %v5695_v39 = vpop.xlane.xlu0 %2356  ;;  %v2978_v37 = vmul.f32 %v3536_v30, %v5689_v54  ;;  %v3541_v30 = vsel %vm2887_vm12, 1.0, %v6824_v41 }
 0x45c   : > { %vm2358_vm13 = vcmp.eq.f32.partialorder %v5310_v2, %v5695_v39  ;;  %6843 = vst [vmem:[#allocation54_spill] sm:$0xff] %v5709_v52  ;;  %v5716_v2 = vpop.xlane.xlu1 %1690  ;;  %v2983_v25 = vmul.f32 %v3541_v30, %v5709_v52 }
 0x45d   : > { %v3038_v63 = vsel %vm1427_vm2, %v2978_v37, 0.0  ;;  %v2359_v32 = vsel %vm2358_vm13, %v2354_v47, inf  ;;  %v3047_v37 = vsel %vm1427_vm2, %v2981_v62, 0.0 }
 0x45e   : > { %3039 = vadd.xlane.f32.xlu0 %v3038_v63  ;;  %2360 = vmin.xlane.f32.xlu1 %v2359_v32  ;;  %v2382_v63 = vand.u32 65535, %v6844_v51  ;;  %v3053_v26 = vsel %vm1427_vm2, %v2983_v25, 0.0 }
 0x45f   : > { %v5711_v22 = vpop.xlane.xlu0 %2341 }
 0x460   : > { %vm2343_vm14 = vcmp.eq.f32.partialorder %v5321_v40, %v5711_v22  ;;  %v5721_v32 = vpop.xlane.xlu1 %1696  ;;  %v2384_v40 = vcvt.s32.f32 %v2382_v63 }
 0x461   : > { %v2344_v47 = vsel %vm2343_vm14, %v2339_v6, inf }
 0x462   : > { %3048 = vadd.xlane.f32.xlu0 %v3047_v37  ;;  %2345 = vmin.xlane.f32.xlu1 %v2344_v47  ;;  %v2369_v37 = vcvt.s32.f32 %v2367_v9  ;;  %v6847_v47 = vld [vmem:[#allocation28_spill] sm:$0xff] }
 0x463   : > { %v1676_v45 = vpop.xlane.xlu0 %1675 }
 0x464   : > { %v5729_v62 = vpop.xlane.xlu1 %1702  ;;  %4062 = vlog2.f32 %v1676_v45 }
 0x465   : > { %4064 = vlog2.f32 %v5704_v12 }
 0x466   : > { %3054 = vadd.xlane.f32.xlu0 %v3053_v26 }
 0x467   : > { %v5724_v61 = vpop.xlane.xlu0 %2386 }
 0x468   : > { %6845 = vst [vmem:[#allocation14_spill] sm:$0xff] %v5724_v61  ;;  %vm2388_vm15 = vcmp.eq.f32.partialorder %v5342_v29, %v5724_v61  ;;  %v5735_v25 = vpop.xlane.xlu1 %1708 }
 0x469   : > { %v2389_v6 = vsel %vm2388_vm15, %v2384_v40, inf  ;;  %v2414_v40 = vcvt.s32.f32 %v2412_v23 }
 0x46a   : > { %2390 = vmin.xlane.f32.xlu1 %v2389_v6  ;;  %v2397_v6 = vand.u32 65535, %v5364_v56 }
 0x46b   : > { %v5731_v30 = vpop.xlane.xlu0 %2371 }
 0x46c   : > { %6846 = vst [vmem:[#allocation53_spill] sm:$0xff] %v5731_v30  ;;  %vm2373_vm0 = vcmp.eq.f32.partialorder %v6847_v47, %v5731_v30  ;;  %v5740_v26 = vpop.xlane.xlu1 %1714  ;;  %v2399_v30 = vcvt.s32.f32 %v2397_v6 }
 0x46d   : > { %v2374_v51 = vsel %vm2373_vm0, %v2369_v37, inf  ;;  %v2048_v37 = vcvt.f32.s32 %v5391_v18 }
 0x46e   : > { %2375 = vmin.xlane.f32.xlu1 %v2374_v51 }
 0x46f   : > { %v5737_v63 = vpop.xlane.xlu0 %1681  ;;  %v2049_v52 = vshll.u32 %v2048_v37, 16  ;;  %v4061_v37 = vpop.eup %4060 }
 0x470   : > { %4066 = vlog2.f32 %v5737_v63 }
 0x471   : > { %4068 = vlog2.f32 %v5716_v2 }
 0x473   : > { %v5742_v29 = vpop.xlane.xlu0 %2416  ;;  %v5747_v9 = vpop.xlane.xlu1 %2060 }
 0x474   : > { %vm2418_vm1 = vcmp.eq.f32.partialorder %v5375_v8, %v5742_v29  ;;  %v2442_v8 = vand.u32 65535, %v5389_v36 }
 0x475   : > { %v2419_v47 = vsel %vm2418_vm1, %v2414_v40, inf }
 0x476   : > { %2420 = vmin.xlane.f32.xlu1 %v2419_v47  ;;  %v2444_v6 = vcvt.s32.f32 %v2442_v8  ;;  %v2078_v47 = vcvt.f32.s32 %v5421_v16  ;;  %v1749_v16 = vmul.f32 0.6931472, %v4061_v37 }
 0x477   : > { %v5750_v51 = vpop.xlane.xlu0 %2401 }
 0x478   : > { %vm2403_vm3 = vcmp.eq.f32.partialorder %v5386_v57, %v5750_v51 }
 0x479   : > { %v2046_v19 = vpop.xlane.xlu1 %2045  ;;  %v2404_v23 = vsel %vm2403_vm3, %v2399_v30, inf  ;;  %v2427_v30 = vand.u32 65535, %v5400_v59 }
 0x47a   : > { %v2047_v56 = vcvt.f32.s32 %v2046_v19  ;;  %2405 = vmin.xlane.f32.xlu1 %v2404_v23 }
 0x47b   : > { %v5754_v61 = vpop.xlane.xlu0 %1687  ;;  %v2429_v8 = vcvt.s32.f32 %v2427_v30  ;;  %v6853_v30 = vld [vmem:[#allocation76_spill] sm:$0xff] }
 0x47c   : > { %v5757_v40 = vadd.s32 %v2049_v52, %v2047_v56  ;;  %4070 = vlog2.f32 %v5754_v61 }
 0x47d   : > { %4072 = vlog2.f32 %v5721_v32 }
 0x47e   : > { %6848 = vst [vmem:[#allocation11_spill] sm:$0xff] %v5757_v40  ;;  %vm2516_vm4 = vcmp.eq.s32.totalorder %v4926_v42, %v5757_v40  ;;  %v2079_v40 = vshll.u32 %v2078_v47, 16  ;;  %v5787_v47 = vsub.f32 %v6853_v30, %v1749_v16  ;;  %v4063_v16 = vpop.eup %4062 }
 0x47f   : > { %v5761_v18 = vpop.xlane.xlu1 %2090  ;;  %v5763_v35 = vpop.xlane.xlu0 %2446  ;;  %v3490_v57 = vsel %vm2516_vm4, 1.0, %v6824_v41  ;;  %v1753_v12 = vmul.f32 0.6931472, %v4063_v16 }
 0x480   : > { %6849 = vst [vmem:[#allocation57_spill] sm:$0xff] %v5763_v35  ;;  %vm2448_vm5 = vcmp.eq.f32.partialorder %v5412_v31, %v5763_v35  ;;  %v2612_v36 = vmul.f32 %v3490_v57, %v5577_v0 }
 0x481   : > { %v2449_v52 = vsel %vm2448_vm5, %v2444_v6, inf  ;;  %v6851_v6 = vld [vmem:[#allocation12_spill] sm:$0xff] }
 0x482   : > { %2450 = vmin.xlane.f32.xlu1 %v2449_v52  ;;  %v2644_v19 = vsel %vm1427_vm2, %v2612_v36, 0.0  ;;  %v2472_v57 = vand.u32 65535, %v6851_v6  ;;  %v6852_v36 = vld [vmem:[#allocation30_spill] sm:$0xff] }
 0x483   : > { %v2076_v23 = vpop.xlane.xlu1 %2075  ;;  %2645 = vadd.xlane.f32.xlu0 %v2644_v19  ;;  %v5772_v56 = vpop.xlane.xlu0 %2431  ;;  %vm2884_vm7 = vcmp.eq.s32.totalorder %v4926_v42, %v6852_v36 }
 0x484   : > { %v2077_v59 = vcvt.f32.s32 %v2076_v23  ;;  %vm2433_vm6 = vcmp.eq.f32.partialorder %v5424_v21, %v5772_v56  ;;  %v2474_v19 = vcvt.s32.f32 %v2472_v57  ;;  %v2108_v23 = vcvt.f32.s32 %v5463_v60 }
 0x485   : > { %v2434_v31 = vsel %vm2433_vm6, %v2429_v8, inf  ;;  %v2457_v57 = vand.u32 65535, %v5438_v17  ;;  %v2502_v17 = vand.u32 65535, %v5470_v43 }
 0x486   : > { %v5776_v35 = vadd.s32 %v2079_v40, %v2077_v59  ;;  %2435 = vmin.xlane.f32.xlu1 %v2434_v31  ;;  %v3538_v40 = vsel %vm2884_vm7, 1.0, %v6824_v41  ;;  %v2109_v36 = vshll.u32 %v2108_v23, 16  ;;  %v6856_v23 = vld [vmem:[#allocation79_spill] sm:$0xff] }
 0x487   : > { %v5778_v0 = vpop.xlane.xlu0 %1693  ;;  %v2504_v16 = vcvt.s32.f32 %v2502_v17  ;;  %v6861_v17 = vld [vmem:[#allocation42_spill] sm:$0xff] }
 0x488   : > { %6850 = vst [vmem:[#allocation18_spill] sm:$0xff] %v5776_v35  ;;  %vm2518_vm8 = vcmp.eq.s32.totalorder %v4926_v42, %v5776_v35  ;;  %4074 = vlog2.f32 %v5778_v0 }
 0x489   : > { %v3492_v45 = vsel %vm2518_vm8, 1.0, %v6824_v41  ;;  %4076 = vlog2.f32 %v5729_v62  ;;  %v6870_v62 = vld [vmem:[#allocation39_spill] sm:$0xff] }
 0x48a   : > { %v2614_v21 = vmul.f32 %v3492_v45, %v5517_v14  ;;  %v2980_v14 = vmul.f32 %v3538_v40, %v5787_v47  ;;  %v6855_v40 = vld [vmem:[#allocation33_spill] sm:$0xff]  ;;  %vm2890_vm4 = vcmp.eq.s32.totalorder %v4926_v42, %v6870_v62 }
 0x48b   : > { %v5791_v52 = vpop.xlane.xlu1 %2120  ;;  %v5793_v37 = vpop.xlane.xlu0 %2476  ;;  %vm2886_vm11 = vcmp.eq.s32.totalorder %v4926_v42, %v6855_v40  ;;  %v6873_v62 = vld [vmem:[#allocation41_spill] sm:$0xff] }
 0x48c   : > { %vm2478_vm9 = vcmp.eq.f32.partialorder %v5449_v46, %v5793_v37  ;;  %v2650_v8 = vsel %vm1427_vm2, %v2614_v21, 0.0  ;;  %v3044_v46 = vsel %vm1427_vm2, %v2980_v14, 0.0  ;;  %v2459_v21 = vcvt.s32.f32 %v2457_v57 }
 0x48d   : > { %2651 = vadd.xlane.f32.xlu0 %v2650_v8  ;;  %v2479_v59 = vsel %vm2478_vm9, %v2474_v19, inf  ;;  %v5820_v8 = vsub.f32 %v6856_v23, %v1753_v12  ;;  %vm2893_vm5 = vcmp.eq.s32.totalorder %v4926_v42, %v6873_v62 }
 0x48e   : > { %2480 = vmin.xlane.f32.xlu1 %v2479_v59  ;;  %v3540_v59 = vsel %vm2886_vm11, 1.0, %v6824_v41 }
 0x48f   : > { %v2106_v31 = vpop.xlane.xlu1 %2105  ;;  %v5801_v6 = vpop.xlane.xlu0 %2461 }
 0x490   : > { %v2107_v60 = vcvt.f32.s32 %v2106_v31  ;;  %vm2463_vm10 = vcmp.eq.f32.partialorder %v5465_v49, %v5801_v6  ;;  %v4065_v49 = vpop.eup %4064  ;;  %v6858_v31 = vld [vmem:[#allocation40_spill] sm:$0xff] }
 0x491   : > { %v2464_v63 = vsel %vm2463_vm10, %v2459_v21, inf  ;;  %v2138_v57 = vcvt.f32.s32 %v6858_v31  ;;  %v1759_v12 = vmul.f32 0.6931472, %v4065_v49  ;;  %v4067_v21 = vpop.eup %4066 }
 0x492   : > { %v5806_v45 = vadd.s32 %v2109_v36, %v2107_v60  ;;  %3045 = vadd.xlane.f32.xlu1 %v3044_v46  ;;  %v6859_v36 = vld [vmem:[#allocation15_spill] sm:$0xff]  ;;  %v4069_v31 = vpop.eup %4068  ;;  %v1757_v49 = vmul.f32 0.6931472, %v4067_v21 }
 0x493   : > { %v5811_v30 = vpop.xlane.xlu0 %1699  ;;  %v2139_v23 = vshll.u32 %v2138_v57, 16  ;;  %v6866_v57 = vld [vmem:[#allocation35_spill] sm:$0xff] }
 0x494   : > { %6854 = vst [vmem:[#allocation69_spill] sm:$0xff] %v5806_v45  ;;  %vm2520_vm12 = vcmp.eq.s32.totalorder %v4926_v42, %v5806_v45  ;;  %vm2888_vm0 = vcmp.eq.s32.totalorder %v4926_v42, %v6866_v57  ;;  %4078 = vlog2.f32 %v5811_v30  ;;  %v6889_v45 = vld [vmem:[#allocation48_spill] sm:$0xff] }
 0x495   : > { %v3494_v19 = vsel %vm2520_vm12, 1.0, %v6824_v41  ;;  %4080 = vlog2.f32 %v5735_v25  ;;  %v3547_v25 = vsel %vm2893_vm5, 1.0, %v6824_v41 }
 0x496   : > { %2465 = vmin.xlane.f32.xlu1 %v2464_v63  ;;  %v2616_v2 = vmul.f32 %v3494_v19, %v5539_v28  ;;  %v2982_v28 = vmul.f32 %v3540_v59, %v5820_v8  ;;  %v2487_v19 = vand.u32 65535, %v6861_v17  ;;  %v1763_v17 = vmul.f32 0.6931472, %v4069_v31  ;;  %v6868_v31 = vld [vmem:[#allocation38_spill] sm:$0xff] }
 0x497   : > { %v5824_v14 = vpop.xlane.xlu1 %2150  ;;  %v5826_v43 = vpop.xlane.xlu0 %2506  ;;  %vm2891_vm3 = vcmp.eq.s32.totalorder %v4926_v42, %v6868_v31  ;;  %v6871_v31 = vld [vmem:[#allocation8_spill] sm:$0xff] }
 0x498   : > { %6857 = vst [vmem:[#allocation56_spill] sm:$0xff] %v5826_v43  ;;  %vm2508_vm13 = vcmp.eq.f32.partialorder %v6859_v36, %v5826_v43  ;;  %v2656_v60 = vsel %vm1427_vm2, %v2616_v2, 0.0  ;;  %v6862_v36 = vld [vmem:[#allocation34_spill] sm:$0xff]  ;;  %v3050_v2 = vsel %vm1427_vm2, %v2982_v28, 0.0  ;;  %v2489_v32 = vcvt.s32.f32 %v2487_v19 }
 0x499   : > { %2657 = vadd.xlane.f32.xlu0 %v2656_v60  ;;  %v2509_v46 = vsel %vm2508_vm13, %v2504_v16, inf  ;;  %vm2889_vm14 = vcmp.eq.s32.totalorder %v4926_v42, %v6862_v36  ;;  %v6863_v16 = vld [vmem:[#allocation72_spill] sm:$0xff]  ;;  %v4071_v36 = vpop.eup %4070  ;;  %vm2899_vm13 = vcmp.eq.s32.totalorder %v4926_v42, %v6889_v45 }
 0x49a   : > { %2510 = vmin.xlane.f32.xlu1 %v2509_v46  ;;  %v5842_v59 = vsub.f32 %v6863_v16, %v1759_v12  ;;  %v6865_v46 = vld [vmem:[#allocation60_spill] sm:$0xff]  ;;  %v6867_v12 = vld [vmem:[#allocation7_spill] sm:$0xff] }
 0x49b   : > { %v2136_v40 = vpop.xlane.xlu1 %2135  ;;  %v5834_v63 = vpop.xlane.xlu0 %2491  ;;  %v5855_v28 = vsub.f32 %v6867_v12, %v1757_v49  ;;  %v2168_v49 = vcvt.f32.s32 %v5520_v27 }
 0x49c   : > { %6860 = vst [vmem:[#allocation16_spill] sm:$0xff] %v5834_v63  ;;  %v2137_v61 = vcvt.f32.s32 %v2136_v40  ;;  %vm2493_vm15 = vcmp.eq.f32.partialorder %v6865_v46, %v5834_v63  ;;  %v3543_v40 = vsel %vm2889_vm14, 1.0, %v6824_v41  ;;  %v6869_v46 = vld [vmem:[#allocation73_spill] sm:$0xff]  ;;  %v4073_v12 = vpop.eup %4072  ;;  %v6891_v63 = vld [vmem:[#allocation80_spill] sm:$0xff] }
 0x49d   : > { %v2494_v21 = vsel %vm2493_vm15, %v2489_v32, inf  ;;  %v5869_v57 = vsub.f32 %v6869_v46, %v1763_v17  ;;  %v1761_v32 = vmul.f32 0.6931472, %v4071_v36  ;;  %v2169_v27 = vshll.u32 %v2168_v49, 16 }
 0x49e   : > { %v5844_v60 = vadd.s32 %v2139_v23, %v2137_v61  ;;  %3051 = vadd.xlane.f32.xlu1 %v3050_v2  ;;  %v2985_v61 = vmul.f32 %v3543_v40, %v5842_v59  ;;  %v3542_v2 = vsel %vm2888_vm0, 1.0, %v6824_v41  ;;  %v1767_v36 = vmul.f32 0.6931472, %v4073_v12 }
 0x49f   : > { %v2984_v40 = vmul.f32 %v3542_v2, %v5855_v28  ;;  %v4075_v2 = vpop.eup %4074  ;;  %v1706_v12 = vpop.xlane.xlu0 %1705 }
 0x4a0   : > { %6864 = vst [vmem:[#allocation17_spill] sm:$0xff] %v5844_v60  ;;  %vm2522_vm1 = vcmp.eq.s32.totalorder %v4926_v42, %v5844_v60  ;;  %v4077_v49 = vpop.eup %4076  ;;  %4082 = vlog2.f32 %v1706_v12  ;;  %v6880_v60 = vld [vmem:[#allocation45_spill] sm:$0xff] }
 0x4a1   : > { %v3496_v23 = vsel %vm2522_vm1, 1.0, %v6824_v41  ;;  %4084 = vlog2.f32 %v5740_v26  ;;  %vm2894_vm9 = vcmp.eq.s32.totalorder %v4926_v42, %v6880_v60 }
 0x4a2   : > { %2495 = vmin.xlane.f32.xlu1 %v2494_v21  ;;  %v2618_v19 = vmul.f32 %v3496_v23, %v5571_v34  ;;  %v3059_v34 = vsel %vm1427_vm2, %v2985_v61, 0.0  ;;  %v3545_v21 = vsel %vm2891_vm3, 1.0, %v6824_v41  ;;  %v3056_v61 = vsel %vm1427_vm2, %v2984_v40, 0.0 }
 0x4a3   : > { %v5862_v0 = vpop.xlane.xlu1 %2180  ;;  %v2987_v17 = vmul.f32 %v3545_v21, %v5869_v57  ;;  %v3548_v60 = vsel %vm2894_vm9, 1.0, %v6824_v41 }
 0x4a4   : > { %v2662_v16 = vsel %vm1427_vm2, %v2618_v19, 0.0 }
 0x4a5   : > { %2663 = vadd.xlane.f32.xlu0 %v2662_v16  ;;  %v5879_v16 = vsub.f32 %v6871_v31, %v1761_v32  ;;  %v3065_v30 = vsel %vm1427_vm2, %v2987_v17, 0.0  ;;  %v1765_v32 = vmul.f32 0.6931472, %v4075_v2  ;;  %v6875_v31 = vld [vmem:[#allocation43_spill] sm:$0xff]  ;;  %v1771_v2 = vmul.f32 0.6931472, %v4077_v49 }
 0x4a6   : > { %3060 = vadd.xlane.f32.xlu1 %v3059_v34  ;;  %v3544_v34 = vsel %vm2890_vm4, 1.0, %v6824_v41  ;;  %vm2892_vm7 = vcmp.eq.s32.totalorder %v4926_v42, %v6875_v31 }
 0x4a7   : > { %v2166_v23 = vpop.xlane.xlu1 %2165  ;;  %v2986_v21 = vmul.f32 %v3544_v34, %v5879_v16  ;;  %v6876_v34 = vld [vmem:[#allocation10_spill] sm:$0xff] }
 0x4a8   : > { %v2167_v19 = vcvt.f32.s32 %v2166_v23  ;;  %v6874_v23 = vld [vmem:[#allocation75_spill] sm:$0xff] }
 0x4aa   : > { %v5882_v46 = vadd.s32 %v2169_v27, %v2167_v19  ;;  %3057 = vadd.xlane.f32.xlu1 %v3056_v61  ;;  %v5894_v27 = vsub.f32 %v6874_v23, %v1767_v36  ;;  %v2198_v61 = vcvt.f32.s32 %v5555_v11  ;;  %v3062_v36 = vsel %vm1427_vm2, %v2986_v21, 0.0  ;;  %v6877_v23 = vld [vmem:[#allocation44_spill] sm:$0xff] }
 0x4ab   : > { %vm2895_vm8 = vcmp.eq.s32.totalorder %v4926_v42, %v6877_v23 }
 0x4ac   : > { %6872 = vst [vmem:[#allocation19_spill] sm:$0xff] %v5882_v46  ;;  %vm2524_vm6 = vcmp.eq.s32.totalorder %v4926_v42, %v5882_v46  ;;  %v5905_v46 = vsub.f32 %v6876_v34, %v1765_v32  ;;  %v2199_v49 = vshll.u32 %v2198_v61, 16  ;;  %v3549_v23 = vsel %vm2895_vm8, 1.0, %v6824_v41 }
 0x4ad   : > { %v3498_v40 = vsel %vm2524_vm6, 1.0, %v6824_v41 }
 0x4ae   : > { %3066 = vadd.xlane.f32.xlu1 %v3065_v30  ;;  %v2620_v19 = vmul.f32 %v3498_v40, %v5608_v33  ;;  %v2989_v33 = vmul.f32 %v3547_v25, %v5894_v27  ;;  %v4079_v30 = vpop.eup %4078  ;;  %v3546_v40 = vsel %vm2892_vm7, 1.0, %v6824_v41 }
 0x4af   : > { %v5900_v17 = vpop.xlane.xlu1 %2210  ;;  %v1769_v31 = vmul.f32 0.6931472, %v4079_v30  ;;  %v2988_v25 = vmul.f32 %v3546_v40, %v5905_v46  ;;  %v4081_v34 = vpop.eup %4080 }
 0x4b0   : > { %v2668_v62 = vsel %vm1427_vm2, %v2620_v19, 0.0  ;;  %v6878_v19 = vld [vmem:[#allocation77_spill] sm:$0xff]  ;;  %v3071_v21 = vsel %vm1427_vm2, %v2989_v33, 0.0  ;;  %v1775_v61 = vmul.f32 0.6931472, %v4081_v34  ;;  %v6883_v34 = vld [vmem:[#allocation78_spill] sm:$0xff] }
 0x4b1   : > { %2669 = vadd.xlane.f32.xlu0 %v2668_v62  ;;  %v5914_v32 = vsub.f32 %v6878_v19, %v1771_v2  ;;  %v1712_v62 = vpop.xlane.xlu0 %1711  ;;  %v6881_v2 = vld [vmem:[#allocation37_spill] sm:$0xff]  ;;  %v3068_v30 = vsel %vm1427_vm2, %v2988_v25, 0.0  ;;  %v6882_v19 = vld [vmem:[#allocation46_spill] sm:$0xff] }
 0x4b2   : > { %3063 = vadd.xlane.f32.xlu1 %v3062_v36  ;;  %4086 = vlog2.f32 %v1712_v62  ;;  %v5927_v33 = vsub.f32 %v6881_v2, %v1769_v31  ;;  %vm2897_vm11 = vcmp.eq.s32.totalorder %v4926_v42, %v6882_v19  ;;  %v6887_v19 = vld [vmem:[#allocation81_spill] sm:$0xff] }
 0x4b3   : > { %v2196_v11 = vpop.xlane.xlu1 %2195  ;;  %v2991_v26 = vmul.f32 %v3549_v23, %v5914_v32  ;;  %v5941_v23 = vsub.f32 %v6883_v34, %v1775_v61 }
 0x4b4   : > { %v2197_v12 = vcvt.f32.s32 %v2196_v11  ;;  %v4083_v11 = vpop.eup %4082  ;;  %v2990_v25 = vmul.f32 %v3548_v60, %v5927_v33 }
 0x4b5   : > { %v3077_v31 = vsel %vm1427_vm2, %v2991_v26, 0.0  ;;  %6884 = vst [vmem:[#allocation59_spill] sm:$0xff] %v5941_v23  ;;  %v4085_v2 = vpop.eup %4084  ;;  %v6888_v26 = vld [vmem:[#allocation55_spill] sm:$0xff] }
 0x4b6   : > { %v5918_v36 = vadd.s32 %v2199_v49, %v2197_v12  ;;  %3072 = vadd.xlane.f32.xlu1 %v3071_v21  ;;  %v1773_v21 = vmul.f32 0.6931472, %v4083_v11  ;;  %v2228_v11 = vcvt.f32.s32 %v5590_v4  ;;  %v3074_v61 = vsel %vm1427_vm2, %v2990_v25, 0.0  ;;  %v6890_v4 = vld [vmem:[#allocation32_spill] sm:$0xff] }
 0x4b8   : > { %6879 = vst [vmem:[#allocation62_spill] sm:$0xff] %v5918_v36  ;;  %vm2526_vm10 = vcmp.eq.s32.totalorder %v4926_v42, %v5918_v36  ;;  %v5951_v36 = vsub.f32 %v6888_v26, %v1773_v21 }
 0x4b9   : > { %v3500_v40 = vsel %vm2526_vm10, 1.0, %v6824_v41 }
 0x4ba   : > { %3069 = vadd.xlane.f32.xlu1 %v3068_v30  ;;  %v2622_v49 = vmul.f32 %v3500_v40, %v5637_v7  ;;  %v6886_v30 = vld [vmem:[#allocation47_spill] sm:$0xff]  ;;  %v3551_v40 = vsel %vm2897_vm11, 1.0, %v6824_v41 }
 0x4bb   : > { %v5932_v12 = vpop.xlane.xlu1 %2240  ;;  %vm2896_vm12 = vcmp.eq.s32.totalorder %v4926_v42, %v6886_v30  ;;  %v2993_v60 = vmul.f32 %v3551_v40, %v5941_v23  ;;  %v2062_v30 = vcvt.f32.s32 %v5747_v9  ;;  %v6892_v23 = vld [vmem:[#allocation49_spill] sm:$0xff] }
 0x4bc   : > { %v2674_v62 = vsel %vm1427_vm2, %v2622_v49, 0.0  ;;  %v2063_v49 = vcvt.f32.s32 %v6887_v19  ;;  %v3550_v34 = vsel %vm2896_vm12, 1.0, %v6824_v41  ;;  %vm2898_vm14 = vcmp.eq.s32.totalorder %v4926_v42, %v6892_v23 }
 0x4bd   : > { %2675 = vadd.xlane.f32.xlu0 %v2674_v62  ;;  %v1779_v62 = vmul.f32 0.6931472, %v4085_v2  ;;  %v2093_v2 = vcvt.f32.s32 %v6890_v4  ;;  %v3083_v25 = vsel %vm1427_vm2, %v2993_v60, 0.0  ;;  %v2992_v40 = vmul.f32 %v3550_v34, %v5951_v36 }
 0x4be   : > { %3078 = vadd.xlane.f32.xlu1 %v3077_v31  ;;  %v4087_v31 = vpop.eup %4086  ;;  %v2064_v35 = vshll.u32 %v2063_v49, 16  ;;  %v2092_v49 = vcvt.f32.s32 %v5761_v18  ;;  %v3553_v60 = vsel %vm2899_vm13, 1.0, %v6824_v41  ;;  %v2122_v4 = vcvt.f32.s32 %v5791_v52 }
 0x4bf   : > { %v5943_v7 = vpop.xlane.xlu1 %2997  ;;  %v1777_v26 = vmul.f32 0.6931472, %v4087_v31  ;;  %v2094_v31 = vshll.u32 %v2093_v2, 16  ;;  %v2152_v23 = vcvt.f32.s32 %v5824_v14  ;;  %v2182_v14 = vcvt.f32.s32 %v5862_v0 }
 0x4c0   : > { %6885 = vst [vmem:[#allocation52_spill] sm:$0xff] %v5943_v7  ;;  %v2229_v7 = vshll.u32 %v2228_v11, 16  ;;  %v5969_v9 = vadd.s32 %v2064_v35, %v2062_v30  ;;  %v3080_v35 = vsel %vm1427_vm2, %v2992_v40, 0.0 }
 0x4c1   : > { %v5988_v45 = vadd.s32 %v2094_v31, %v2092_v49 }
 0x4c2   : > { %3075 = vadd.xlane.f32.xlu1 %v3074_v61  ;;  %v5963_v61 = vsub.f32 %v6891_v63, %v1779_v62  ;;  %v6893_v63 = vld [vmem:[#allocation36_spill] sm:$0xff]  ;;  %vm2517_vm0 = vcmp.eq.s32.totalorder %v4926_v42, %v5969_v9 }
 0x4c3   : > { %v2226_v19 = vpop.xlane.xlu1 %2225  ;;  %v2123_v62 = vcvt.f32.s32 %v6893_v63  ;;  %v3491_v31 = vsel %vm2517_vm0, 1.0, %v6824_v41  ;;  %vm2519_vm1 = vcmp.eq.s32.totalorder %v4926_v42, %v5988_v45 }
 0x4c4   : > { %v2227_v21 = vcvt.f32.s32 %v2226_v19  ;;  %v2995_v30 = vmul.f32 %v3553_v60, %v5963_v61 }
 0x4c5   : > { %v2124_v40 = vshll.u32 %v2123_v62, 16 }
 0x4c6   : > { %v5965_v43 = vadd.s32 %v2229_v7, %v2227_v21  ;;  %3084 = vadd.xlane.f32.xlu1 %v3083_v25  ;;  %v6894_v7 = vld [vmem:[#allocation13_spill] sm:$0xff]  ;;  %v3552_v21 = vsel %vm2898_vm14, 1.0, %v6824_v41  ;;  %v3089_v52 = vsel %vm1427_vm2, %v2995_v30, 0.0 }
 0x4c7   : > { %v5972_v11 = vpop.xlane.xlu1 %3006  ;;  %v5982_v34 = vsub.f32 %v6894_v7, %v1777_v26  ;;  %v2258_v26 = vcvt.f32.s32 %v5625_v58  ;;  %v6005_v63 = vadd.s32 %v2124_v40, %v2122_v4  ;;  %v2183_v58 = vcvt.f32.s32 %v5506_v48 }
 0x4c8   : > { %vm2528_vm15 = vcmp.eq.s32.totalorder %v4926_v42, %v5965_v43  ;;  %v3493_v4 = vsel %vm2519_vm1, 1.0, %v6824_v41 }
 0x4c9   : > { %v3502_v18 = vsel %vm2528_vm15, 1.0, %v6824_v41  ;;  %v2994_v60 = vmul.f32 %v3552_v21, %v5982_v34  ;;  %v2259_v62 = vshll.u32 %v2258_v26, 16  ;;  %vm2521_vm3 = vcmp.eq.s32.totalorder %v4926_v42, %v6005_v63 }
 0x4ca   : > { %3081 = vadd.xlane.f32.xlu1 %v3080_v35  ;;  %v2624_v19 = vmul.f32 %v3502_v18, %v5663_v44  ;;  %v6895_v44 = vld [vmem:[#allocation58_spill] sm:$0xff]  ;;  %v2184_v48 = vshll.u32 %v2183_v58, 16  ;;  %v2288_v26 = vcvt.f32.s32 %v5652_v13  ;;  %v2212_v13 = vcvt.f32.s32 %v5900_v17 }
 0x4cb   : > { %v5991_v2 = vpop.xlane.xlu1 %2270  ;;  %v2153_v49 = vcvt.f32.s32 %v6895_v44  ;;  %v3086_v30 = vsel %vm1427_vm2, %v2994_v60, 0.0  ;;  %v3495_v60 = vsel %vm2521_vm3, 1.0, %v6824_v41 }
 0x4cc   : > { %v2680_v25 = vsel %vm1427_vm2, %v2624_v19, 0.0  ;;  %v2613_v19 = vmul.f32 %v3491_v31, %v5504_v10  ;;  %v2213_v10 = vcvt.f32.s32 %v5542_v24  ;;  %v6032_v31 = vadd.s32 %v2184_v48, %v2182_v14 }
 0x4cd   : > { %2681 = vadd.xlane.f32.xlu0 %v2680_v25  ;;  %v2154_v18 = vshll.u32 %v2153_v49, 16  ;;  %v2243_v24 = vcvt.f32.s32 %v5580_v1  ;;  %v2273_v14 = vcvt.f32.s32 %v5615_v20  ;;  %v2318_v20 = vcvt.f32.s32 %v5678_v3 }
 0x4ce   : > { %3090 = vadd.xlane.f32.xlu1 %v3089_v52  ;;  %v2647_v44 = vsel %vm1427_vm2, %v2613_v19, 0.0  ;;  %v2615_v52 = vmul.f32 %v3493_v4, %v5598_v55  ;;  %v2214_v55 = vshll.u32 %v2213_v10, 16  ;;  %v2242_v4 = vcvt.f32.s32 %v5932_v12  ;;  %v6897_v10 = vld [vmem:[#allocation50_spill] sm:$0xff] }
 0x4cf   : > { %v2256_v7 = vpop.xlane.xlu1 %2255  ;;  %v6016_v25 = vadd.s32 %v2154_v18, %v2152_v23  ;;  %vm2525_vm6 = vcmp.eq.s32.totalorder %v4926_v42, %v6032_v31  ;;  %v2244_v1 = vshll.u32 %v2243_v24, 16  ;;  %v2303_v24 = vcvt.f32.s32 %v5643_v5 }
 0x4d0   : > { %v2257_v35 = vcvt.f32.s32 %v2256_v7  ;;  %v2289_v7 = vshll.u32 %v2288_v26, 16  ;;  %v6044_v19 = vadd.s32 %v2214_v55, %v2212_v13  ;;  %v3499_v12 = vsel %vm2525_vm6, 1.0, %v6824_v41 }
 0x4d1   : > { %vm2523_vm5 = vcmp.eq.s32.totalorder %v4926_v42, %v6016_v25  ;;  %v2333_v3 = vcvt.f32.s32 %v5669_v50  ;;  %v2363_v50 = vcvt.f32.s32 %v5695_v39 }
 0x4d2   : > { %v6013_v21 = vadd.s32 %v2259_v62, %v2257_v35  ;;  %3087 = vadd.xlane.f32.xlu1 %v3086_v30  ;;  %v6896_v35 = vld [vmem:[#allocation5_spill] sm:$0xff]  ;;  %v3497_v17 = vsel %vm2523_vm5, 1.0, %v6824_v41  ;;  %vm2527_vm8 = vcmp.eq.s32.totalorder %v4926_v42, %v6044_v19 }
 0x4d3   : > { %v6019_v40 = vpop.xlane.xlu1 %2300  ;;  %v2617_v18 = vmul.f32 %v3495_v60, %v6896_v35  ;;  %v2319_v35 = vshll.u32 %v2318_v20, 16  ;;  %v2348_v20 = vcvt.f32.s32 %v5711_v22 }
 0x4d4   : > { %vm2530_vm4 = vcmp.eq.s32.totalorder %v4926_v42, %v6013_v21  ;;  %v2302_v55 = vcvt.f32.s32 %v6019_v40 }
 0x4d5   : > { %v3504_v49 = vsel %vm2530_vm4, 1.0, %v6824_v41  ;;  %v2659_v48 = vsel %vm1427_vm2, %v2617_v18, 0.0  ;;  %v2304_v18 = vshll.u32 %v2303_v24, 16 }
 0x4d6   : > { %2648 = vadd.xlane.f32.xlu1 %v2647_v44  ;;  %v2626_v0 = vmul.f32 %v3504_v49, %v5689_v54  ;;  %v2653_v54 = vsel %vm1427_vm2, %v2615_v52, 0.0  ;;  %v2619_v44 = vmul.f32 %v3497_v17, %v6897_v10  ;;  %v6057_v52 = vadd.s32 %v2244_v1, %v2242_v4 }
 0x4d7   : > { %v2286_v23 = vpop.xlane.xlu1 %2285  ;;  %v6081_v40 = vadd.s32 %v2304_v18, %v2302_v55  ;;  %v6899_v55 = vld [vmem:[#allocation65_spill] sm:$0xff] }
 0x4d8   : > { %v2287_v58 = vcvt.f32.s32 %v2286_v23  ;;  %v2686_v62 = vsel %vm1427_vm2, %v2626_v0, 0.0  ;;  %v2272_v0 = vcvt.f32.s32 %v5991_v2  ;;  %v2274_v23 = vshll.u32 %v2273_v14, 16 }
 0x4d9   : > { %2687 = vadd.xlane.f32.xlu0 %v2686_v62  ;;  %v3501_v62 = vsel %vm2527_vm8, 1.0, %v6824_v41  ;;  %vm2529_vm9 = vcmp.eq.s32.totalorder %v4926_v42, %v6057_v52  ;;  %vm2533_vm12 = vcmp.eq.s32.totalorder %v4926_v42, %v6081_v40 }
 0x4da   : > { %v6041_v30 = vadd.s32 %v2289_v7, %v2287_v58  ;;  %2654 = vadd.xlane.f32.xlu1 %v2653_v54  ;;  %v6898_v7 = vld [vmem:[#allocation6_spill] sm:$0xff]  ;;  %v6068_v2 = vadd.s32 %v2274_v23, %v2272_v0  ;;  %v2623_v4 = vmul.f32 %v3501_v62, %v5612_v38  ;;  %v3503_v14 = vsel %vm2529_vm9, 1.0, %v6824_v41 }
 0x4db   : > { %v2621_v58 = vmul.f32 %v3499_v12, %v6898_v7  ;;  %v2364_v23 = vshll.u32 %v2363_v50, 16 }
 0x4dc   : > { %vm2532_vm7 = vcmp.eq.s32.totalorder %v4926_v42, %v6041_v30  ;;  %vm2531_vm10 = vcmp.eq.s32.totalorder %v4926_v42, %v6068_v2  ;;  %v2677_v10 = vsel %vm1427_vm2, %v2623_v4, 0.0  ;;  %v6901_v4 = vld [vmem:[#allocation54_spill] sm:$0xff] }
 0x4dd   : > { %v3506_v26 = vsel %vm2532_vm7, 1.0, %v6824_v41  ;;  %v2671_v17 = vsel %vm1427_vm2, %v2621_v58, 0.0  ;;  %v3505_v12 = vsel %vm2531_vm10, 1.0, %v6824_v41  ;;  %v2349_v58 = vshll.u32 %v2348_v20, 16 }
 0x4de   : > { %2660 = vadd.xlane.f32.xlu1 %v2659_v48  ;;  %v2628_v49 = vmul.f32 %v3506_v26, %v5787_v47  ;;  %v2665_v47 = vsel %vm1427_vm2, %v2619_v44, 0.0  ;;  %v2334_v26 = vshll.u32 %v2333_v3, 16  ;;  %v2625_v44 = vmul.f32 %v3503_v14, %v5640_v15 }
 0x4df   : > { %v2331_v60 = vpop.xlane.xlu1 %2330  ;;  %v2627_v24 = vmul.f32 %v3505_v12, %v5666_v53 }
 0x4e0   : > { %v2692_v13 = vsel %vm1427_vm2, %v2628_v49, 0.0  ;;  %v2332_v48 = vcvt.f32.s32 %v2331_v60  ;;  %v2683_v15 = vsel %vm1427_vm2, %v2625_v44, 0.0 }
 0x4e1   : > { %2693 = vadd.xlane.f32.xlu0 %v2692_v13  ;;  %v2689_v62 = vsel %vm1427_vm2, %v2627_v24, 0.0 }
 0x4e2   : > { %2666 = vadd.xlane.f32.xlu1 %v2665_v47  ;;  %v6093_v0 = vadd.s32 %v2334_v26, %v2332_v48 }
 0x4e3   : > { %v2316_v54 = vpop.xlane.xlu1 %2315 }
 0x4e4   : > { %v2317_v5 = vcvt.f32.s32 %v2316_v54  ;;  %vm2535_vm13 = vcmp.eq.s32.totalorder %v4926_v42, %v6093_v0 }
 0x4e5   : > { %v3509_v53 = vsel %vm2535_vm13, 1.0, %v6824_v41 }
 0x4e6   : > { %v6076_v1 = vadd.s32 %v2319_v35, %v2317_v5  ;;  %2672 = vadd.xlane.f32.xlu1 %v2671_v17  ;;  %v6900_v35 = vld [vmem:[#allocation14_spill] sm:$0xff]  ;;  %v2631_v14 = vmul.f32 %v3509_v53, %v6901_v4 }
 0x4e7   : > { %v2393_v5 = vcvt.f32.s32 %v6900_v35 }
 0x4e8   : > { %vm2534_vm11 = vcmp.eq.s32.totalorder %v4926_v42, %v6076_v1  ;;  %v2701_v20 = vsel %vm1427_vm2, %v2631_v14, 0.0 }
 0x4e9   : > { %v3508_v38 = vsel %vm2534_vm11, 1.0, %v6824_v41  ;;  %vm3125_vm11 = vcmp.eq.s32.totalorder %v4926_v42, 1 }
 0x4ea   : > { %2678 = vadd.xlane.f32.xlu1 %v2677_v10  ;;  %v2630_v49 = vmul.f32 %v3508_v38, %v5820_v8  ;;  %v3507_v8 = vsel %vm2533_vm12, 1.0, %v6824_v41  ;;  %v2394_v10 = vshll.u32 %v2393_v5, 16  ;;  %v6902_v38 = vld [vmem:[#allocation53_spill] sm:$0xff]  ;;  %v2408_v5 = vcvt.f32.s32 %v5750_v51 }
 0x4eb   : > { %v2361_v60 = vpop.xlane.xlu1 %2360  ;;  %v2629_v54 = vmul.f32 %v3507_v8, %v6899_v55  ;;  %v2378_v44 = vcvt.f32.s32 %v6902_v38  ;;  %vm3092_vm12 = vcmp.eq.s32.totalorder %v4926_v42, 0 }
 0x4ec   : > { %v2362_v39 = vcvt.f32.s32 %v2361_v60  ;;  %v2698_v13 = vsel %vm1427_vm2, %v2630_v49, 0.0  ;;  %v6120_v49 = vpop.xlane.xlu0 %3000  ;;  %v2409_v14 = vshll.u32 %v2408_v5, 16 }
 0x4ed   : > { %2699 = vadd.xlane.f32.xlu0 %v2698_v13  ;;  %v2695_v18 = vsel %vm1427_vm2, %v2629_v54, 0.0 }
 0x4ee   : > { %2684 = vadd.xlane.f32.xlu1 %v2683_v15  ;;  %v6102_v47 = vadd.s32 %v2364_v23, %v2362_v39  ;;  %v2379_v23 = vshll.u32 %v2378_v44, 16 }
 0x4ef   : > { %v2346_v7 = vpop.xlane.xlu1 %2345 }
 0x4f0   : > { %v2347_v22 = vcvt.f32.s32 %v2346_v7  ;;  %vm2537_vm14 = vcmp.eq.s32.totalorder %v4926_v42, %v6102_v47  ;;  %v6131_v7 = vpop.xlane.xlu0 %3003 }
 0x4f1   : > { %v3511_v26 = vsel %vm2537_vm14, 1.0, %v6824_v41 }
 0x4f2   : > { %v6106_v3 = vadd.s32 %v2349_v58, %v2347_v22  ;;  %2690 = vadd.xlane.f32.xlu1 %v2689_v62  ;;  %v2633_v39 = vmul.f32 %v3511_v26, %v5842_v59  ;;  %v2423_v22 = vcvt.f32.s32 %v5742_v29 }
 0x4f4   : > { %vm2536_vm15 = vcmp.eq.s32.totalorder %v4926_v42, %v6106_v3  ;;  %v2707_v24 = vsel %vm1427_vm2, %v2633_v39, 0.0  ;;  %v2424_v35 = vshll.u32 %v2423_v22, 16 }
 0x4f5   : > { %v3510_v17 = vsel %vm2536_vm15, 1.0, %v6824_v41 }
 0x4f6   : > { %2696 = vadd.xlane.f32.xlu1 %v2695_v18  ;;  %v2632_v48 = vmul.f32 %v3510_v17, %v5855_v28  ;;  %v6143_v18 = vpop.xlane.xlu0 %3012 }
 0x4f7   : > { %v2391_v50 = vpop.xlane.xlu1 %2390 }
 0x4f8   : > { %v2392_v12 = vcvt.f32.s32 %v2391_v50  ;;  %v2704_v60 = vsel %vm1427_vm2, %v2632_v48, 0.0 }
 0x4f9   : > { %2705 = vadd.xlane.f32.xlu0 %v2704_v60 }
 0x4fa   : > { %v6125_v13 = vadd.s32 %v2394_v10, %v2392_v12  ;;  %2702 = vadd.xlane.f32.xlu1 %v2701_v20  ;;  %v6151_v26 = vpop.xlane.xlu0 %3009  ;;  %v6903_v10 = vld [vmem:[#allocation57_spill] sm:$0xff] }
 0x4fb   : > { %v2376_v28 = vpop.xlane.xlu1 %2375  ;;  %v2453_v38 = vcvt.f32.s32 %v6903_v10  ;;  %v6906_v10 = vld [vmem:[#allocation59_spill] sm:$0xff] }
 0x4fc   : > { %vm2539_vm0 = vcmp.eq.s32.totalorder %v4926_v42, %v6125_v13  ;;  %v2377_v15 = vcvt.f32.s32 %v2376_v28  ;;  %v2438_v28 = vcvt.f32.s32 %v5772_v56 }
 0x4fd   : > { %v3513_v8 = vsel %vm2539_vm0, 1.0, %v6824_v41  ;;  %v2454_v39 = vshll.u32 %v2453_v38, 16 }
 0x4fe   : > { %v6133_v58 = vadd.s32 %v2379_v23, %v2377_v15  ;;  %2708 = vadd.xlane.f32.xlu1 %v2707_v24  ;;  %v2635_v59 = vmul.f32 %v3513_v8, %v5869_v57  ;;  %v6163_v23 = vpop.xlane.xlu0 %3018 }
 0x500   : > { %vm2538_vm1 = vcmp.eq.s32.totalorder %v4926_v42, %v6133_v58  ;;  %v2713_v62 = vsel %vm1427_vm2, %v2635_v59, 0.0  ;;  %v2439_v59 = vshll.u32 %v2438_v28, 16 }
 0x501   : > { %v3512_v55 = vsel %vm2538_vm1, 1.0, %v6824_v41 }
 0x502   : > { %2714 = vadd.xlane.f32.xlu1 %v2713_v62  ;;  %v2634_v54 = vmul.f32 %v3512_v55, %v5879_v16  ;;  %v6171_v62 = vpop.xlane.xlu0 %3015 }
 0x503   : > { %v2421_v53 = vpop.xlane.xlu1 %2420 }
 0x504   : > { %v2422_v17 = vcvt.f32.s32 %v2421_v53  ;;  %v2710_v57 = vsel %vm1427_vm2, %v2634_v54, 0.0  ;;  %v2483_v54 = vcvt.f32.s32 %v5793_v37 }
 0x505   : > { %2711 = vadd.xlane.f32.xlu0 %v2710_v57 }
 0x506   : > { %v6146_v29 = vadd.s32 %v2424_v35, %v2422_v17  ;;  %v2484_v57 = vshll.u32 %v2483_v54, 16 }
 0x507   : > { %v2406_v4 = vpop.xlane.xlu1 %2405 }
 0x508   : > { %vm2541_vm3 = vcmp.eq.s32.totalorder %v4926_v42, %v6146_v29  ;;  %v2407_v48 = vcvt.f32.s32 %v2406_v4  ;;  %v6182_v4 = vpop.xlane.xlu0 %3024 }
 0x509   : > { %v3515_v16 = vsel %vm2541_vm3, 1.0, %v6824_v41 }
 0x50a   : > { %v6153_v50 = vadd.s32 %v2409_v14, %v2407_v48  ;;  %v2637_v51 = vmul.f32 %v3515_v16, %v5894_v27  ;;  %v2468_v16 = vcvt.f32.s32 %v5801_v6 }
 0x50c   : > { %vm2540_vm4 = vcmp.eq.s32.totalorder %v4926_v42, %v6153_v50  ;;  %v2719_v44 = vsel %vm1427_vm2, %v2637_v51, 0.0  ;;  %v6190_v51 = vpop.xlane.xlu0 %3021 }
 0x50d   : > { %2720 = vadd.xlane.f32.xlu1 %v2719_v44  ;;  %v3514_v12 = vsel %vm2540_vm4, 1.0, %v6824_v41 }
 0x50e   : > { %v2636_v60 = vmul.f32 %v3514_v12, %v5905_v46  ;;  %v2469_v12 = vshll.u32 %v2468_v16, 16 }
 0x50f   : > { %v2451_v20 = vpop.xlane.xlu1 %2450 }
 0x510   : > { %v2452_v15 = vcvt.f32.s32 %v2451_v20  ;;  %v2716_v27 = vsel %vm1427_vm2, %v2636_v60, 0.0  ;;  %v6907_v60 = vld [vmem:[#allocation56_spill] sm:$0xff] }
 0x511   : > { %2717 = vadd.xlane.f32.xlu0 %v2716_v27  ;;  %v2513_v20 = vcvt.f32.s32 %v6907_v60 }
 0x512   : > { %v6166_v24 = vadd.s32 %v2454_v39, %v2452_v15  ;;  %v6198_v15 = vpop.xlane.xlu0 %3030 }
 0x513   : > { %v2436_v8 = vpop.xlane.xlu1 %2435 }
 0x514   : > { %6904 = vst [vmem:[#allocation9_spill] sm:$0xff] %v6166_v24  ;;  %vm2543_vm5 = vcmp.eq.s32.totalorder %v4926_v42, %v6166_v24  ;;  %v2437_v22 = vcvt.f32.s32 %v2436_v8  ;;  %v2514_v8 = vshll.u32 %v2513_v20, 16 }
 0x515   : > { %v3517_v46 = vsel %vm2543_vm5, 1.0, %v6824_v41 }
 0x516   : > { %v6173_v55 = vadd.s32 %v2439_v59, %v2437_v22  ;;  %v2639_v56 = vmul.f32 %v3517_v46, %v5914_v32  ;;  %v6205_v46 = vpop.xlane.xlu0 %3027 }
 0x518   : > { %vm2542_vm6 = vcmp.eq.s32.totalorder %v4926_v42, %v6173_v55  ;;  %v2725_v53 = vsel %vm1427_vm2, %v2639_v56, 0.0 }
 0x519   : > { %2726 = vadd.xlane.f32.xlu1 %v2725_v53  ;;  %v3516_v35 = vsel %vm2542_vm6, 1.0, %v6824_v41 }
 0x51a   : > { %v2638_v5 = vmul.f32 %v3516_v35, %v5927_v33  ;;  %v6910_v35 = vld [vmem:[#allocation16_spill] sm:$0xff] }
 0x51b   : > { %v2481_v17 = vpop.xlane.xlu1 %2480 }
 0x51c   : > { %v2482_v14 = vcvt.f32.s32 %v2481_v17  ;;  %v2722_v48 = vsel %vm1427_vm2, %v2638_v5, 0.0  ;;  %v2498_v5 = vcvt.f32.s32 %v6910_v35 }
 0x51d   : > { %2723 = vadd.xlane.f32.xlu0 %v2722_v48 }
 0x51e   : > { %v6185_v32 = vadd.s32 %v2484_v57, %v2482_v14  ;;  %v2499_v16 = vshll.u32 %v2498_v5, 16 }
 0x51f   : > { %v6187_v37 = vpop.xlane.xlu1 %3045 }
 0x520   : > { %6905 = vst [vmem:[#allocation51_spill] sm:$0xff] %v6185_v32  ;;  %vm2545_vm7 = vcmp.eq.s32.totalorder %v4926_v42, %v6185_v32 }
 0x521   : > { %v3519_v33 = vsel %vm2545_vm7, 1.0, %v6824_v41 }
 0x522   : > { %v2641_v38 = vmul.f32 %v3519_v33, %v6906_v10  ;;  %v6218_v33 = vpop.xlane.xlu0 %3036 }
 0x523   : > { %v2466_v44 = vpop.xlane.xlu1 %2465 }
 0x524   : > { %v2467_v39 = vcvt.f32.s32 %v2466_v44  ;;  %v2731_v28 = vsel %vm1427_vm2, %v2641_v38, 0.0 }
 0x525   : > { %2732 = vadd.xlane.f32.xlu1 %v2731_v28 }
 0x526   : > { %v6200_v6 = vadd.s32 %v2469_v12, %v2467_v39  ;;  %v6225_v12 = vpop.xlane.xlu0 %3033 }
 0x527   : > { %v2511_v27 = vpop.xlane.xlu1 %2510 }
 0x528   : > { %6908 = vst [vmem:[#allocation20_spill] sm:$0xff] %v6200_v6  ;;  %vm2544_vm8 = vcmp.eq.s32.totalorder %v4926_v42, %v6200_v6  ;;  %v2512_v59 = vcvt.f32.s32 %v2511_v27 }
 0x529   : > { %v3518_v22 = vsel %vm2544_vm8, 1.0, %v6824_v41 }
 0x52a   : > { %v6207_v56 = vadd.s32 %v2514_v8, %v2512_v59  ;;  %v2640_v54 = vmul.f32 %v3518_v22, %v5951_v36  ;;  %v6234_v28 = vpop.xlane.xlu0 %3042 }
 0x52b   : > { %v6210_v53 = vpop.xlane.xlu1 %3051 }
 0x52c   : > { %6909 = vst [vmem:[#allocation21_spill] sm:$0xff] %v6207_v56  ;;  %vm2547_vm9 = vcmp.eq.s32.totalorder %v4926_v42, %v6207_v56  ;;  %v2728_v17 = vsel %vm1427_vm2, %v2640_v54, 0.0  ;;  %v6918_v56 = vld [vmem:[#allocation52_spill] sm:$0xff] }
 0x52d   : > { %2729 = vadd.xlane.f32.xlu0 %v2728_v17  ;;  %v3521_v57 = vsel %vm2547_vm9, 1.0, %v6824_v41 }
 0x52e   : > { %v2643_v14 = vmul.f32 %v3521_v57, %v5963_v61  ;;  %v6238_v8 = vpop.xlane.xlu0 %3039 }
 0x52f   : > { %v2496_v48 = vpop.xlane.xlu1 %2495 }
 0x530   : > { %v2497_v10 = vcvt.f32.s32 %v2496_v48  ;;  %v2737_v36 = vsel %vm1427_vm2, %v2643_v14, 0.0 }
 0x531   : > { %2738 = vadd.xlane.f32.xlu1 %v2737_v36 }
 0x532   : > { %v6221_v38 = vadd.s32 %v2499_v16, %v2497_v10  ;;  %v6244_v54 = vpop.xlane.xlu0 %3048 }
 0x533   : > { %v6223_v44 = vpop.xlane.xlu1 %3060 }
 0x534   : > { %6911 = vst [vmem:[#allocation64_spill] sm:$0xff] %v6221_v38  ;;  %vm2546_vm10 = vcmp.eq.s32.totalorder %v4926_v42, %v6221_v38 }
 0x535   : > { %v3520_v60 = vsel %vm2546_vm10, 1.0, %v6824_v41 }
 0x536   : > { %v2642_v61 = vmul.f32 %v3520_v60, %v5982_v34  ;;  %v6248_v34 = vpop.xlane.xlu0 %3054 }
 0x537   : > { %v6231_v20 = vpop.xlane.xlu1 %3057 }
 0x538   : > { %v2734_v39 = vsel %vm1427_vm2, %v2642_v61, 0.0  ;;  %vm3126_vm2 = vcmp.eq.s32.totalorder %v4926_v42, 2 }
 0x539   : > { %2735 = vadd.xlane.f32.xlu0 %v2734_v39 }
 0x53a   : > { %v2646_v5 = vpop.xlane.xlu0 %2645 }
 0x53b   : > { %v6236_v27 = vpop.xlane.xlu1 %3066  ;;  %v3127_v61 = vsel %vm3126_vm2, %v2646_v5, 0.0 }
 0x53c   : > { %v3159_v38 = vsel %vm3125_vm11, %v6918_v56, %v3127_v61  ;;  %v3094_v56 = vcvt.s32.f32 %v5969_v9 }
 0x53e   : > { %v2652_v57 = vpop.xlane.xlu0 %2651 }
 0x53f   : > { %v6240_v59 = vpop.xlane.xlu1 %3063  ;;  %v3129_v61 = vsel %vm3126_vm2, %v2652_v57, 0.0 }
 0x542   : > { %v2658_v48 = vpop.xlane.xlu0 %2657 }
 0x543   : > { %v6242_v22 = vpop.xlane.xlu1 %3072 }
 0x546   : > { %v2664_v10 = vpop.xlane.xlu0 %2663 }
 0x547   : > { %v6246_v41 = vpop.xlane.xlu1 %3069 }
 0x54a   : > { %v2670_v60 = vpop.xlane.xlu0 %2669 }
 0x54b   : > { %v6250_v35 = vpop.xlane.xlu1 %3078 }
 0x54c   : > { %6912 = vst [vmem:[#allocation61_spill] sm:$0xff] %v6250_v35 }
 0x54e   : > { %v6269_v32 = vpop.xlane.xlu0 %2675 }
 0x54f   : > { %v6252_v17 = vpop.xlane.xlu1 %3075 }
 0x550   : > { %6913 = vst [vmem:[#allocation22_spill] sm:$0xff] %v6252_v17 }
 0x553   : > { %v6254_v14 = vpop.xlane.xlu1 %3084 }
 0x554   : > { %6914 = vst [vmem:[#allocation23_spill] sm:$0xff] %v6254_v14  ;;  %v6919_v14 = vld [vmem:[#allocation11_spill] sm:$0xff] }
 0x557   : > { %v6256_v16 = vpop.xlane.xlu1 %3081 }
 0x558   : > { %6915 = vst [vmem:[#allocation68_spill] sm:$0xff] %v6256_v16 }
 0x55a   : > { %v6277_v5 = vpop.xlane.xlu0 %2681 }
 0x55b   : > { %v6258_v36 = vpop.xlane.xlu1 %3090 }
 0x55c   : > { %6916 = vst [vmem:[#allocation63_spill] sm:$0xff] %v6258_v36  ;;  %v3093_v36 = vcvt.s32.f32 %v6919_v14 }
 0x55e   : > { %v3191_v24 = vsel %vm3092_vm12, %v3093_v36, %v3159_v38  ;;  %v3161_v38 = vsel %vm3125_vm11, %v6131_v7, %v3129_v61  ;;  %v6920_v36 = vld [vmem:[#allocation18_spill] sm:$0xff]  ;;  %v3096_v7 = vcvt.s32.f32 %v5988_v45 }
 0x55f   : > { %v6264_v39 = vpop.xlane.xlu1 %3087  ;;  %v3095_v17 = vcvt.s32.f32 %v6920_v36 }
 0x560   : > { %6917 = vst [vmem:[#allocation24_spill] sm:$0xff] %v6264_v39 }
 0x563   : > { %v2649_v16 = vpop.xlane.xlu1 %2648 }
 0x564   : > { %v3128_v6 = vsel %vm3126_vm2, %v2649_v16, 0.0 }
 0x565   : > { %v3160_v39 = vsel %vm3125_vm11, %v6120_v49, %v3128_v6 }
 0x566   : > { %3223 = vxpose.xlu0.b32.start [1/16] (narrow) %v3191_v24, 8  ;;  %v3192_v35 = vsel %vm3092_vm12, %v3094_v56, %v3160_v39  ;;  %v6290_v16 = vpop.xlane.xlu0 %2687  ;;  %v3193_v24 = vsel %vm3092_vm12, %v3095_v17, %v3161_v38  ;;  %v3109_v39 = vcvt.s32.f32 %v6041_v30  ;;  %v6921_v30 = vld [vmem:[#allocation69_spill] sm:$0xff] }
 0x567   : > { %v2655_v14 = vpop.xlane.xlu1 %2654 }
 0x568   : > { %v3130_v49 = vsel %vm3126_vm2, %v2655_v14, 0.0 }
 0x569   : > { %v3162_v6 = vsel %vm3125_vm11, %v5972_v11, %v3130_v49 }
 0x56a   : > { %3224 = vxpose.xlu0.b32.cont [2/16] (narrow) %v3192_v35, 8  ;;  %v3131_v35 = vsel %vm3126_vm2, %v2658_v48, 0.0  ;;  %v3194_v11 = vsel %vm3092_vm12, %v3096_v7, %v3162_v6  ;;  %v3097_v48 = vcvt.s32.f32 %v6921_v30  ;;  %v6922_v7 = vld [vmem:[#allocation17_spill] sm:$0xff] }
 0x56b   : > { %v2661_v9 = vpop.xlane.xlu1 %2660  ;;  %v3163_v45 = vsel %vm3125_vm11, %v6151_v26, %v3131_v35  ;;  %v3133_v26 = vsel %vm3126_vm2, %v2664_v10, 0.0 }
 0x56c   : > { %v3132_v38 = vsel %vm3126_vm2, %v2661_v9, 0.0  ;;  %v3165_v9 = vsel %vm3125_vm11, %v6171_v62, %v3133_v26  ;;  %v3135_v62 = vsel %vm3126_vm2, %v2670_v60, 0.0 }
 0x56d   : > { %v3164_v49 = vsel %vm3125_vm11, %v6143_v18, %v3132_v38 }
 0x56e   : > { %3225 = vxpose.xlu0.b32.cont [3/16] (narrow) %v3193_v24, 8  ;;  %v2694_v57 = vpop.xlane.xlu0 %2693  ;;  %v3098_v24 = vcvt.s32.f32 %v6005_v63 }
 0x56f   : > { %v3143_v56 = vsel %vm3126_vm2, %v2694_v57, 0.0  ;;  %v2667_v61 = vpop.xlane.xlu1 %2666 }
 0x570   : > { %v3175_v17 = vsel %vm3125_vm11, %v6187_v37, %v3143_v56  ;;  %v3195_v37 = vsel %vm3092_vm12, %v3097_v48, %v3163_v45  ;;  %v3196_v57 = vsel %vm3092_vm12, %v3098_v24, %v3164_v49  ;;  %v3134_v18 = vsel %vm3126_vm2, %v2667_v61, 0.0  ;;  %v6923_v45 = vld [vmem:[#allocation19_spill] sm:$0xff] }
 0x571   : > { %v3207_v14 = vsel %vm3092_vm12, %v3109_v39, %v3175_v17  ;;  %v3099_v39 = vcvt.s32.f32 %v6922_v7  ;;  %v3166_v10 = vsel %vm3125_vm11, %v6163_v23, %v3134_v18  ;;  %v3100_v56 = vcvt.s32.f32 %v6016_v25 }
 0x572   : > { %3226 = vxpose.xlu0.b32.cont [4/16] (narrow) %v3194_v11, 8  ;;  %3255 = vxpose.xlu1.b32.start [1/16] (narrow) %v3207_v14, 8  ;;  %v3167_v14 = vsel %vm3125_vm11, %v6190_v51, %v3135_v62  ;;  %v3101_v30 = vcvt.s32.f32 %v6923_v45  ;;  %v3110_v48 = vcvt.s32.f32 %v6081_v40  ;;  %v3102_v49 = vcvt.s32.f32 %v6032_v31 }
 0x573   : > { %v2673_v36 = vpop.xlane.xlu1 %2672  ;;  %v3197_v63 = vsel %vm3092_vm12, %v3099_v39, %v3165_v9  ;;  %v3198_v61 = vsel %vm3092_vm12, %v3100_v56, %v3166_v10  ;;  %v3137_v24 = vsel %vm3126_vm2, %v6269_v32, 0.0  ;;  %v6924_v39 = vld [vmem:[#allocation62_spill] sm:$0xff]  ;;  %v3104_v62 = vcvt.s32.f32 %v6044_v19 }
 0x574   : > { %v3136_v23 = vsel %vm3126_vm2, %v2673_v36, 0.0  ;;  %v3199_v51 = vsel %vm3092_vm12, %v3101_v30, %v3167_v14  ;;  %v3103_v18 = vcvt.s32.f32 %v6924_v39  ;;  %v6927_v39 = vld [vmem:[#allocation9_spill] sm:$0xff] }
 0x575   : > { %v3168_v36 = vsel %vm3125_vm11, %v6182_v4, %v3136_v23  ;;  %v3111_v4 = vcvt.s32.f32 %v6076_v1  ;;  %v3114_v23 = vcvt.s32.f32 %v6102_v47  ;;  %v3141_v47 = vsel %vm3126_vm2, %v6290_v16, 0.0 }
 0x576   : > { %3227 = vxpose.xlu0.b32.cont [5/16] (narrow) %v3195_v37, 8  ;;  %v3200_v32 = vsel %vm3092_vm12, %v3102_v49, %v3168_v36  ;;  %v3116_v36 = vcvt.s32.f32 %v6125_v13 }
 0x577   : > { %v2679_v6 = vpop.xlane.xlu1 %2678 }
 0x57a   : > { %3228 = vxpose.xlu0.b32.cont [6/16] (narrow) %v3196_v57, 8  ;;  %v2700_v11 = vpop.xlane.xlu0 %2699  ;;  %v3112_v57 = vcvt.s32.f32 %v6093_v0 }
 0x57b   : > { %v2685_v35 = vpop.xlane.xlu1 %2684  ;;  %v3145_v60 = vsel %vm3126_vm2, %v2700_v11, 0.0 }
 0x57e   : > { %3229 = vxpose.xlu0.b32.cont [7/16] (narrow) %v3197_v63, 8  ;;  %v3138_v63 = vsel %vm3126_vm2, %v2679_v6, 0.0  ;;  %v3139_v6 = vsel %vm3126_vm2, %v6277_v5, 0.0 }
 0x57f   : > { %v6343_v17 = vpop.xlane.xlu1 %2690  ;;  %v3170_v56 = vsel %vm3125_vm11, %v6198_v15, %v3138_v63  ;;  %v3171_v19 = vsel %vm3125_vm11, %v6225_v12, %v3139_v6  ;;  %v6929_v6 = vld [vmem:[#allocation68_spill] sm:$0xff] }
 0x580   : > { %v3202_v15 = vsel %vm3092_vm12, %v3104_v62, %v3170_v56 }
 0x582   : > { %3230 = vxpose.xlu0.b32.cont [8/16] (narrow) %v3198_v61, 8  ;;  %v3113_v61 = vcvt.s32.f32 %v6106_v3  ;;  %v3140_v3 = vsel %vm3126_vm2, %v2685_v35, 0.0 }
 0x583   : > { %v2697_v25 = vpop.xlane.xlu1 %2696 }
 0x584   : > { %v3144_v38 = vsel %vm3126_vm2, %v2697_v25, 0.0 }
 0x585   : > { %v3176_v37 = vsel %vm3125_vm11, %v6244_v54, %v3144_v38  ;;  %v3177_v54 = vsel %vm3125_vm11, %v6210_v53, %v3145_v60  ;;  %v3169_v53 = vsel %vm3125_vm11, %v6205_v46, %v3137_v24  ;;  %v3115_v38 = vcvt.s32.f32 %v6133_v58 }
 0x586   : > { %3231 = vxpose.xlu0.b32.cont [9/16] (narrow) %v3199_v51, 8  ;;  %v3208_v40 = vsel %vm3092_vm12, %v3110_v48, %v3176_v37  ;;  %v2706_v7 = vpop.xlane.xlu0 %2705  ;;  %v3209_v0 = vsel %vm3092_vm12, %v3111_v4, %v3177_v54  ;;  %v3201_v46 = vsel %vm3092_vm12, %v3103_v18, %v3169_v53  ;;  %v3107_v51 = vcvt.s32.f32 %v6013_v21  ;;  %v6925_v53 = vld [vmem:[#allocation22_spill] sm:$0xff] }
 0x587   : > { %v2703_v26 = vpop.xlane.xlu1 %2702  ;;  %3256 = vxpose.xlu1.b32.cont [2/16] (narrow) %v3208_v40, 8  ;;  %v3142_v58 = vsel %vm3126_vm2, %v6343_v17, 0.0  ;;  %v3108_v24 = vcvt.s32.f32 %v6068_v2 }
 0x588   : > { %v3146_v9 = vsel %vm3126_vm2, %v2703_v26, 0.0  ;;  %v3174_v49 = vsel %vm3125_vm11, %v6234_v28, %v3142_v58 }
 0x589   : > { %v3178_v31 = vsel %vm3125_vm11, %v6248_v34, %v3146_v9  ;;  %v3147_v34 = vsel %vm3126_vm2, %v2706_v7, 0.0  ;;  %v3206_v26 = vsel %vm3092_vm12, %v3108_v24, %v3174_v49  ;;  %v3119_v7 = vcvt.s32.f32 %v6173_v55 }
 0x58a   : > { %3232 = vxpose.xlu0.b32.cont [10/16] (narrow) %v3200_v32, 8  ;;  %v3210_v1 = vsel %vm3092_vm12, %v3112_v57, %v3178_v31  ;;  %v3179_v11 = vsel %vm3125_vm11, %v6231_v20, %v3147_v34  ;;  %v3105_v20 = vcvt.s32.f32 %v5965_v43  ;;  %v3172_v43 = vsel %vm3125_vm11, %v6218_v33, %v3140_v3 }
 0x58b   : > { %3257 = vxpose.xlu1.b32.cont [3/16] (narrow) %v3209_v0, 8  ;;  %v2709_v10 = vpop.xlane.xlu1 %2708  ;;  %v3211_v5 = vsel %vm3092_vm12, %v3113_v61, %v3179_v11  ;;  %v6926_v0 = vld [vmem:[#allocation61_spill] sm:$0xff]  ;;  %v3120_v55 = vcvt.s32.f32 %v6927_v39 }
 0x58c   : > { %v3148_v14 = vsel %vm3126_vm2, %v2709_v10, 0.0  ;;  %v3203_v48 = vsel %vm3092_vm12, %v3105_v20, %v3171_v19  ;;  %v6928_v10 = vld [vmem:[#allocation20_spill] sm:$0xff]  ;;  %v6931_v19 = vld [vmem:[#allocation51_spill] sm:$0xff] }
 0x58d   : > { %v3180_v30 = vsel %vm3125_vm11, %v6223_v44, %v3148_v14  ;;  %v3106_v44 = vcvt.s32.f32 %v6057_v52  ;;  %v3173_v52 = vsel %vm3125_vm11, %v6238_v8, %v3141_v47  ;;  %v6930_v14 = vld [vmem:[#allocation23_spill] sm:$0xff] }
 0x58e   : > { %3233 = vxpose.xlu0.b32.cont [11/16] (narrow) %v3201_v46, 8  ;;  %v3212_v35 = vsel %vm3092_vm12, %v3114_v23, %v3180_v30  ;;  %v3205_v8 = vsel %vm3092_vm12, %v3107_v51, %v3173_v52  ;;  %v3121_v46 = vcvt.s32.f32 %v6928_v10  ;;  %v6932_v30 = vld [vmem:[#allocation64_spill] sm:$0xff] }
 0x58f   : > { %3258 = vxpose.xlu1.b32.cont [4/16] (narrow) %v3210_v1, 8  ;;  %v2715_v25 = vpop.xlane.xlu1 %2714  ;;  %v3204_v37 = vsel %vm3092_vm12, %v3106_v44, %v3172_v43  ;;  %v3123_v23 = vcvt.s32.f32 %v6932_v30  ;;  %v6934_v44 = vld [vmem:[#allocation63_spill] sm:$0xff] }
 0x590   : > { %v3150_v33 = vsel %vm3126_vm2, %v2715_v25, 0.0 }
 0x592   : > { %3234 = vxpose.xlu0.b32.cont [12/16] (narrow) %v3202_v15, 8  ;;  %v2712_v45 = vpop.xlane.xlu0 %2711 }
 0x593   : > { %3259 = vxpose.xlu1.b32.cont [5/16] (narrow) %v3211_v5, 8  ;;  %v3149_v12 = vsel %vm3126_vm2, %v2712_v45, 0.0  ;;  %v3122_v45 = vcvt.s32.f32 %v6931_v19 }
 0x594   : > { %v3181_v60 = vsel %vm3125_vm11, %v6240_v59, %v3149_v12  ;;  %v3182_v59 = vsel %vm3125_vm11, %v6236_v27, %v3150_v33  ;;  %v3117_v27 = vcvt.s32.f32 %v6153_v50  ;;  %v3118_v50 = vcvt.s32.f32 %v6146_v29 }
 0x595   : > { %v3213_v16 = vsel %vm3092_vm12, %v3115_v38, %v3181_v60  ;;  %v3214_v17 = vsel %vm3092_vm12, %v3116_v36, %v3182_v59  ;;  %v6935_v60 = vld [vmem:[#allocation21_spill] sm:$0xff] }
 0x596   : > { %3235 = vxpose.xlu0.b32.cont [13/16] (narrow) %v3203_v48, 8  ;;  %v6933_v48 = vld [vmem:[#allocation24_spill] sm:$0xff]  ;;  %v3124_v38 = vcvt.s32.f32 %v6935_v60 }
 0x597   : > { %3260 = vxpose.xlu1.b32.cont [6/16] (narrow) %v3212_v35, 8 }
 0x59a   : > { %3236 = vxpose.xlu0.b32.cont [14/16] (narrow) %v3204_v37, 8  ;;  %v2721_v40 = vpop.xlane.xlu1 %2720 }
 0x59b   : > { %3261 = vxpose.xlu1.b32.cont [7/16] (narrow) %v3213_v16, 8  ;;  %v3152_v54 = vsel %vm3126_vm2, %v2721_v40, 0.0 }
 0x59c   : > { %v3184_v2 = vsel %vm3125_vm11, %v6242_v22, %v3152_v54 }
 0x59d   : > { %v3216_v4 = vsel %vm3092_vm12, %v3118_v50, %v3184_v2 }
 0x59e   : > { %3237 = vxpose.xlu0.b32.cont [15/16] (narrow) %v3205_v8, 8  ;;  %v2718_v21 = vpop.xlane.xlu0 %2717 }
 0x59f   : > { %v3151_v13 = vsel %vm3126_vm2, %v2718_v21, 0.0  ;;  %3262 = vxpose.xlu1.b32.cont [8/16] (narrow) %v3214_v17, 8 }
 0x5a0   : > { %v3183_v28 = vsel %vm3125_vm11, %v6246_v41, %v3151_v13 }
 0x5a1   : > { %v3215_v57 = vsel %vm3092_vm12, %v3117_v27, %v3183_v28 }
 0x5a2   : > { %3238 = vxpose.xlu0.b32.end [16/16] (narrow) %v3206_v26, 8 }
 0x5a3   : > { %3263 = vxpose.xlu1.b32.cont [9/16] (narrow) %v3215_v57, 8 }
 0x5a6   : > { %v2727_v9 = vpop.xlane.xlu1 %2726 }
 0x5a7   : > { %3264 = vxpose.xlu1.b32.cont [10/16] (narrow) %v3216_v4, 8  ;;  %v3154_v31 = vsel %vm3126_vm2, %v2727_v9, 0.0 }
 0x5a8   : > { %v3186_v1 = vsel %vm3125_vm11, %v6926_v0, %v3154_v31 }
 0x5a9   : > { %v3218_v18 = vsel %vm3092_vm12, %v3120_v55, %v3186_v1 }
 0x5aa   : > { %v2724_v41 = vpop.xlane.xlu0 %2723 }
 0x5ab   : > { %v3153_v32 = vsel %vm3126_vm2, %v2724_v41, 0.0 }
 0x5ac   : > { %v3185_v22 = vsel %vm3125_vm11, %v6925_v53, %v3153_v32 }
 0x5ad   : > { %v3217_v29 = vsel %vm3092_vm12, %v3119_v7, %v3185_v22 }
 0x5ae   : > { %3265 = vxpose.xlu1.b32.cont [11/16] (narrow) %v3217_v29, 8 }
 0x5b2   : > { %3266 = vxpose.xlu1.b32.cont [12/16] (narrow) %v3218_v18, 8  ;;  %v2733_v63 = vpop.xlane.xlu1 %2732 }
 0x5b3   : > { %v3156_v56 = vsel %vm3126_vm2, %v2733_v63, 0.0 }
 0x5b4   : > { %v3188_v15 = vsel %vm3125_vm11, %v6930_v14, %v3156_v56 }
 0x5b5   : > { %v3220_v5 = vsel %vm3092_vm12, %v3122_v45, %v3188_v15 }
 0x5ba   : > { %v2730_v34 = vpop.xlane.xlu0 %2729 }
 0x5bb   : > { %v3155_v62 = vsel %vm3126_vm2, %v2730_v34, 0.0 }
 0x5bc   : > { %v3187_v11 = vsel %vm3125_vm11, %v6929_v6, %v3155_v62 }
 0x5bd   : > { %v3219_v61 = vsel %vm3092_vm12, %v3121_v46, %v3187_v11 }
 0x5be   : > { %3267 = vxpose.xlu1.b32.cont [13/16] (narrow) %v3219_v61, 8  ;;  %v2739_v20 = vpop.xlane.xlu1 %2738 }
 0x5bf   : > { %v3158_v12 = vsel %vm3126_vm2, %v2739_v20, 0.0 }
 0x5c0   : > { %v3190_v47 = vsel %vm3125_vm11, %v6934_v44, %v3158_v12 }
 0x5c1   : > { %v3222_v33 = vsel %vm3092_vm12, %v3124_v38, %v3190_v47 }
 0x5c2   : > { %3268 = vxpose.xlu1.b32.cont [14/16] (narrow) %v3220_v5, 8 }
 0x5c6   : > { %v2736_v3 = vpop.xlane.xlu0 %2735 }
 0x5c7   : > { %v3157_v25 = vsel %vm3126_vm2, %v2736_v3, 0.0 }
 0x5c8   : > { %v3189_v43 = vsel %vm3125_vm11, %v6933_v48, %v3157_v25 }
 0x5c9   : > { %v3221_v35 = vsel %vm3092_vm12, %v3123_v23, %v3189_v43 }
 0x5ca   : > { %3269 = vxpose.xlu1.b32.cont [15/16] (narrow) %v3221_v35, 8 }
 0x5ce   : > { %3270 = vxpose.xlu1.b32.end [16/16] (narrow) %v3222_v33, 8 }
 0x5e6   : > { %v3239_v37 = vpop.trf.xlu0 }
 0x5e7   : > { %3287 = vst [vmem:[%s394_s17] sm:$0xff] %v3239_v37 }
 0x60d   : > { %3296 = sbr.rel (!%p4243_p5) target bundleno = 1583 (0x62f), region = 60 }
 0x612   : > { %v3271_v52 = vpop.trf.xlu1 }
 0x613   : > { %3288 = vst [vmem:[%s394_s17 + $0x8] sm:$0xff] %v3271_v52 }
 0x614   : > { %s6943_s24 = smov (!%p3299_p11, %s3298_s24), 2 }
 0x615   : > { %s6543_s25 = sshll.u32 %s6943_s24, 7 }
 0x616   : > { %s3303_s26 = ssub.s32 256, %s6543_s25 }
 0x617   : > { %3304 = vsyncadd %s6538_s21, %s3303_s26  ;;  %p3557_p12 = scmp.ne.s32.totalorder %s6543_s25, 0  ;;  %s3563_s27 = sshll.u32 %s4226_s13, 8 }
 0x618   : > { %s6552_s29 = scalar_lea.hbm %s6601_s9, %s3563_s27  ;;  %s3310_s14 = sshll.u32 %s394_s17, 4  ;;  %s3311_s14 = int_to_ptr.vmem [resolvable:$true] %s3310_s14 }
 0x619   : > { %s4088_s23 = scalar_lea.vmem %s3311_s14, %s6543_s25  ;;  %s4154_s16 = smov [#allocation2]  }
 0x61a   : > { %p4089_p13 = scmp.ne.s32.totalorder %s3311_s14, %s4088_s23  ;;  %s4092_s22 = sshll.u32 %s4154_s16, 4  ;;  %s4093_s22 = int_to_ptr.vmem [resolvable:$false] %s4092_s22 }
 0x61b   : > { %s4094_s24 = scalar_lea.vmem %s4093_s22, 512  ;;  %p4095_p2 = scmp.lt.s32.totalorder %s3311_s14, %s4093_s22 }
 0x61c   : > { %p4090_p0 = pnand %p4089_p13, %p3557_p12  ;;  %p4096_p3 = scmp.lt.s32.totalorder %s4094_s24, %s4088_s23 }
 0x61e   : > { %p4091_p1 = pneg %p4090_p0  ;;  %p4097_p4 = por %p4096_p3, %p4095_p2 }
 0x620   : > { %p4098_p5 = pnand %p4097_p4, %p4091_p1 }
 0x622   : > { %4101 = shalt.err (!%p4098_p5)
}
 0x623   : > { %s4102_s13 = scalar_lea.hbm %s6552_s29, %s6543_s25  ;;  %s4106_s27 = scalar_lea.hbm %s6601_s9, 384 }
 0x624   : > { %p4103_p7 = scmp.ne.s32.totalorder %s6552_s29, %s4102_s13  ;;  %p4107_p10 = scmp.lt.u32.totalorder %s6552_s29, %s6601_s9 }
 0x625   : > { %p4108_p11 = scmp.lt.u32.totalorder %s4106_s27, %s4102_s13  ;;  %p4110_p0 = scmp.lt.u32.totalorder %s4102_s13, %s6552_s29 }
 0x626   : > { %p4104_p8 = pnand %p4103_p7, %p3557_p12 }
 0x627   : > { %p4109_p13 = por %p4108_p11, %p4107_p10 }
 0x628   : > { %p4105_p9 = pneg %p4104_p8 }
 0x629   : > { %p4111_p1 = por %p4110_p0, %p4109_p13 }
 0x62b   : > { %p4112_p2 = pnand %p4111_p1, %p4105_p9 }
 0x62d   : > { %4115 = shalt.err (!%p4112_p2)
}
 0x62e   : > { %3313 = dma.vmem_to_hbm [thread:$0]  (%p3557_p12), %s3311_s14, %s6543_s25, %s6552_s29, %s6538_s21  }
 0x62f PF: > { %p3776_p3 = scmp.ge.s32.totalorder %s4150_s12, 2  ;;  %s3322_s23 = sand.u32 1, %s4138_s30  }
 0x630   : > { %s3323_s16 = scalar_lea.sflag [#allocation3], %s3322_s23 }
 0x631   : > { %p3773_p4 = pnand %p3776_p3, %p4247_p6 }
 0x633   : > { %4133 = dma.done.wait (!%p3773_p4), %s3323_s16, 256  }
 0x634   : > { %4135 = vsyncadd (!%p3773_p4), %s3323_s16, 4294967040  ;;  %p19_p5 = scmp.ge.s32.totalorder %s4230_s15, 4   ;;  %s6936_s30 = smov %s4142_s10 }
 0x635   : > { %s6937_s10 = smov %s4146_s11  ;;  %s6938_s11 = smov %s4241_s18 }
 0x636   : > { %s6939_s12 = smov %s4230_s15  ;;  %21 = sbr.rel (!%p19_p5) target bundleno = 3 (0x3), region = 97 }
 0x63d   :  { %3328 = vsyncpa [#allocation3], 1 }
 0x63e   :  { %3330 = vsyncpa [#allocation3 + $0x1], 1 }

</bundles_post_ra>
